<compile_context>
chip_gen: v7x
topology: tpu7x:2x2x1
jax: 0.10.0
libtpu: 0.0.40
codegen_flags: <defaults>
</compile_context>

<pallas_src>
import functools

import jax
import jax.numpy as jnp
from jax.experimental import pallas as pl
from jax.experimental.pallas import tpu as pltpu


# --------------------------- fused Pallas kernel -----------------------------

def _cheb_layer(lap, l2, x, w_ref, b_ref, cfg, activation):
    """One ChebConv layer, fully VMEM/vreg resident.

    lap   : [N, N]  f32 scaled Laplacian L_hat (value).
    l2    : [N, N]  f32 T_2(L_hat) = 2 L_hat^2 - I (value, hoisted by caller).
    x     : [N, Cin] f32 layer input (value).
    w_ref : VMEM ref, row-stacked weights [K_pad*Cin, Cout]
            ([W_0; W_1; ...], zero-padded to an even Chebyshev order when
            K is odd and >= 4) — read in small static slices at point of use.
    b_ref : VMEM ref [1, Cout] or None.
    cfg   : (K, Cin, Cout) compile-time constants.
    """
    K, cin, _ = cfg
    f32 = jnp.float32

    if K >= 4:
        # Seeds T_0..T_3.  T_2 = L2 x is independent of T_1; T_3 = 2 L2 T_1 - T_1
        # (Chebyshev composition T_{m+n} = 2 T_m T_n - T_{m-n}).
        t1 = jnp.dot(lap, x, preferred_element_type=f32)                 # T_1
        t2 = jnp.dot(l2, x, preferred_element_type=f32)                  # T_2
        t3 = 2.0 * jnp.dot(l2, t1, preferred_element_type=f32) - t1      # T_3
        pair_prev = jnp.concatenate([x, t1], axis=1)                     # [T_0|T_1]
        pair_curr = jnp.concatenate([t2, t3], axis=1)                    # [T_2|T_3]
        # Project all four seeds with a single matmul against rows 0..4*cin.
        acc = jnp.dot(jnp.concatenate([pair_prev, pair_curr], axis=1),
                      w_ref[0:4 * cin, :], preferred_element_type=f32)
        # Paired recursion: one dependent MXU step produces two orders.
        for k in range(4, K, 2):                                          # unrolled
            pair_next = (2.0 * jnp.dot(l2, pair_curr, preferred_element_type=f32)
                         - pair_prev)                                     # [T_k|T_{k+1}]
            # On-the-fly projection (weight slice read only here; zero rows
            # absorb the unused T_K term when K is odd).
            acc += jnp.dot(pair_next, w_ref[k * cin:(k + 2) * cin, :],
                           preferred_element_type=f32)
            pair_prev, pair_curr = pair_curr, pair_next
    else:
        # Small-K fallback (conv4: K=1 -> just x @ W_0).
        acc = jnp.dot(x, w_ref[0:cin, :], preferred_element_type=f32)
        t_prev, t_curr = None, x
        for k in range(1, K):
            lt = jnp.dot(lap, t_curr, preferred_element_type=f32)
            t_next = lt if k == 1 else 2.0 * lt - t_prev
            acc += jnp.dot(t_next, w_ref[k * cin:(k + 1) * cin, :],
                           preferred_element_type=f32)
            t_prev, t_curr = t_curr, t_next

    if b_ref is not None:
        acc += b_ref[...]
    if activation == "silu":
        acc = acc * jax.nn.sigmoid(acc)
    elif activation == "sigmoid":
        acc = jax.nn.sigmoid(acc)
    return acc


def _chebnet_kernel(lap_ref, x_ref,
                    w1_ref, b1_ref, w2_ref, b2_ref, w3_ref, b3_ref, w4_ref,
                    o_ref, *, cfgs):
    n = lap_ref.shape[0]
    lap = lap_ref[...].astype(jnp.float32)

    # Hoist L2 = T_2(L_hat) = 2 L_hat^2 - I once; reused by layers 1-3.
    row = jax.lax.broadcasted_iota(jnp.int32, (n, n), 0)
    col = jax.lax.broadcasted_iota(jnp.int32, (n, n), 1)
    eye = (row == col).astype(jnp.float32)
    l2 = 2.0 * jnp.dot(lap, lap, preferred_element_type=jnp.float32) - eye

    x = x_ref[...].astype(jnp.float32)
    x = _cheb_layer(lap, l2, x, w1_ref, b1_ref, cfgs[0], "silu")
    x = _cheb_layer(lap, l2, x, w2_ref, b2_ref, cfgs[1], "silu")
    x = _cheb_layer(lap, l2, x, w3_ref, b3_ref, cfgs[2], "silu")
    x = _cheb_layer(lap, l2, x, w4_ref, None, cfgs[3], "sigmoid")
    o_ref[...] = x.astype(o_ref.dtype)


def _flatten_pad_weight(w):
    """[K, Cin, Cout] -> row-stacked [K_pad*Cin, Cout]; zero-pad one extra
    Chebyshev order when K is odd and >= 4 so the paired recursion can always
    project a full [2*Cin, Cout] slice (the padded rows contribute zero)."""
    K, cin, cout = w.shape
    w_flat = w.reshape(K * cin, cout)
    if K >= 4 and K % 2 == 1:
        w_flat = jnp.concatenate(
            [w_flat, jnp.zeros((cin, cout), w_flat.dtype)], axis=0)
    return w_flat


def chebnet_forward(params, lap, x):
    """Fused ChebNet forward. params = [(w1,b1),(w2,b2),(w3,b3),(w4,None)]."""
    (w1, b1), (w2, b2), (w3, b3), (w4, _) = params
    ws = (w1, w2, w3, w4)
    n = x.shape[0]
    cfgs = tuple((int(w.shape[0]), int(w.shape[1]), int(w.shape[2])) for w in ws)
    c_out = cfgs[-1][2]
    w_flats = tuple(_flatten_pad_weight(w) for w in ws)

    kernel = functools.partial(_chebnet_kernel, cfgs=cfgs)
    vmem = pl.BlockSpec(memory_space=pltpu.MemorySpace.VMEM)
    return pl.pallas_call(
        kernel,
        out_shape=jax.ShapeDtypeStruct((n, c_out), jnp.float32),
        in_specs=[vmem] * 9,
        out_specs=vmem,
    )(lap, x, w_flats[0], b1, w_flats[1], b2, w_flats[2], b3, w_flats[3])


# ---------------- parameter init (deterministic, glorot like PyG) ------------

def init_chebnet_params(key, in_channels, out_channels):
    cfg = [(in_channels, 14, 39, True),
           (14, 20, 43, True),
           (20, 27, 45, True),
           (27, out_channels, 1, False)]   # conv4: K=1, bias=False
    params = []
    for c_in, c_out, K, has_bias in cfg:
        key, wk, bk = jax.random.split(key, 3)
        limit = (6.0 / (c_in + c_out)) ** 0.5
        w = jax.random.uniform(wk, (K, c_in, c_out), jnp.float32, -limit, limit)
        b = (jax.random.uniform(bk, (1, c_out), jnp.float32, -0.1, 0.1)
             if has_bias else None)
        params.append((w, b))
    return params


# ---------------- pure-JAX reference (for a sanity check) -------------------

def cheb_conv_ref(lap, x, w, b):
    K = w.shape[0]
    t_prev, t = None, x
    out = t @ w[0]
    for k in range(1, K):
        lt = lap @ t
        t_next = lt if k == 1 else 2.0 * lt - t_prev
        out = out + t_next @ w[k]
        t_prev, t = t, t_next
    if b is not None:
        out = out + b
    return out


def chebnet_forward_ref(params, lap, x):
    activations = [jax.nn.silu, jax.nn.silu, jax.nn.silu, jax.nn.sigmoid]
    for (w, b), act in zip(params, activations):
        x = act(cheb_conv_ref(lap, x, w, b))
    return x


# ---------------- graph / Laplacian construction (glue, plain JAX) ----------

def build_scaled_laplacian(edge_index, edge_weight, num_nodes):
    """Dense L_hat = 2*L/lambda_max - I with lambda_max=2 and sym normalization,
    i.e. L_hat = -D^{-1/2} A D^{-1/2} (torch_geometric ChebConv default)."""
    src, dst = edge_index
    adj = jnp.zeros((num_nodes, num_nodes), jnp.float32)
    adj = adj.at[src, dst].add(edge_weight)
    deg = adj.sum(axis=1)
    dis = jnp.where(deg > 0, jax.lax.rsqrt(deg), 0.0)
    return -(dis[:, None] * adj * dis[None, :])


if __name__ == "__main__":
    key = jax.random.PRNGKey(0)
    N = 32            # number of graph nodes (data.x rows)
    in_channels = 4   # node feature dim
    out_channels = 2  # ChebNet output dim

    # deterministic small graph: undirected weighted ring + chords
    k_x, k_w1, k_w2, k_p = jax.random.split(key, 4)
    ring_src = jnp.arange(N, dtype=jnp.int32)
    ring_dst = (ring_src + 1) % N
    chord_src = jnp.arange(N, dtype=jnp.int32)
    chord_dst = (chord_src + 5) % N
    w_ring = jax.random.uniform(k_w1, (N,), jnp.float32, 0.5, 1.5)
    w_chord = jax.random.uniform(k_w2, (N,), jnp.float32, 0.5, 1.5)
    # symmetrize (both directions), like an undirected PyG graph
    src = jnp.concatenate([ring_src, ring_dst, chord_src, chord_dst])
    dst = jnp.concatenate([ring_dst, ring_src, chord_dst, chord_src])
    wgt = jnp.concatenate([w_ring, w_ring, w_chord, w_chord])
    edge_index = jnp.stack([src, dst])           # [2, 4N]
    edge_weight = wgt                            # [4N]

    x = jax.random.normal(k_x, (N, in_channels), jnp.float32)   # data.x
    lap = build_scaled_laplacian(edge_index, edge_weight, N)

    params = init_chebnet_params(k_p, in_channels, out_channels)

    fwd = jax.jit(chebnet_forward)
    y = jax.block_until_ready(fwd(params, lap, x))
    y_ref = jax.block_until_ready(chebnet_forward_ref(params, lap, x))

    assert y.shape == (N, out_channels), y.shape
    assert bool(jnp.all(jnp.isfinite(y)))
    assert bool(jnp.allclose(y, y_ref, rtol=1e-2, atol=1e-2)), \
        float(jnp.max(jnp.abs(y - y_ref)))

    print("KERNEL_OK")
</pallas_src>

<mosaic_0001>
module attributes {stable_mosaic.version = 11 : i64} {
  func.func @_chebnet_kernel(%arg0: memref<32x32xf32, #tpu.memory_space<vmem>>, %arg1: memref<32x4xf32, #tpu.memory_space<vmem>>, %arg2: memref<160x14xf32, #tpu.memory_space<vmem>>, %arg3: memref<1x14xf32, #tpu.memory_space<vmem>>, %arg4: memref<616x20xf32, #tpu.memory_space<vmem>>, %arg5: memref<1x20xf32, #tpu.memory_space<vmem>>, %arg6: memref<920x27xf32, #tpu.memory_space<vmem>>, %arg7: memref<1x27xf32, #tpu.memory_space<vmem>>, %arg8: memref<27x2xf32, #tpu.memory_space<vmem>>, %arg9: memref<32x2xf32, #tpu.memory_space<vmem>>) attributes {dimension_semantics = [], scalar_prefetch = 0 : i64, scratch_operands = 0 : i64, tpu.core_type = #tpu.core_type<tc>} {
    %c0 = arith.constant 0 : index
    %c0_0 = arith.constant 0 : index
    %0 = vector.load %arg0[%c0, %c0_0] : memref<32x32xf32, #tpu.memory_space<vmem>>, vector<32x32xf32>
    %1 = tpu.iota {dimensions = array<i32: 0>} : vector<32x32xi32>
    %2 = tpu.iota {dimensions = array<i32: 1>} : vector<32x32xi32>
    %3 = arith.cmpi eq, %1, %2 : vector<32x32xi32>
    %4 = arith.extui %3 : vector<32x32xi1> to vector<32x32xi32>
    %5 = arith.sitofp %4 : vector<32x32xi32> to vector<32x32xf32>
    %cst = arith.constant dense<0.000000e+00> : vector<32x32xf32>
    %6 = tpu.matmul %0, %0, %cst {dimension_numbers = #tpu.dot_dimension_numbers<[1], [0], [0], [1], [0, 0, 1, 1], [], []>} : vector<32x32xf32>, vector<32x32xf32>, vector<32x32xf32> -> vector<32x32xf32>
    %cst_1 = arith.constant 2.000000e+00 : f32
    %7 = vector.broadcast %cst_1 : f32 to vector<32x32xf32>
    %8 = arith.mulf %7, %6 : vector<32x32xf32>
    %9 = arith.subf %8, %5 : vector<32x32xf32>
    %c0_2 = arith.constant 0 : index
    %c0_3 = arith.constant 0 : index
    %10 = vector.load %arg1[%c0_2, %c0_3] : memref<32x4xf32, #tpu.memory_space<vmem>>, vector<32x4xf32>
    %cst_4 = arith.constant dense<0.000000e+00> : vector<32x4xf32>
    %11 = tpu.matmul %0, %10, %cst_4 {dimension_numbers = #tpu.dot_dimension_numbers<[1], [0], [0], [1], [0, 0, 1, 1], [], []>} : vector<32x32xf32>, vector<32x4xf32>, vector<32x4xf32> -> vector<32x4xf32>
    %cst_5 = arith.constant dense<0.000000e+00> : vector<32x4xf32>
    %12 = tpu.matmul %9, %10, %cst_5 {dimension_numbers = #tpu.dot_dimension_numbers<[1], [0], [0], [1], [0, 0, 1, 1], [], []>} : vector<32x32xf32>, vector<32x4xf32>, vector<32x4xf32> -> vector<32x4xf32>
    %cst_6 = arith.constant dense<0.000000e+00> : vector<32x4xf32>
    %13 = tpu.matmul %9, %11, %cst_6 {dimension_numbers = #tpu.dot_dimension_numbers<[1], [0], [0], [1], [0, 0, 1, 1], [], []>} : vector<32x32xf32>, vector<32x4xf32>, vector<32x4xf32> -> vector<32x4xf32>
    %cst_7 = arith.constant 2.000000e+00 : f32
    %14 = vector.broadcast %cst_7 : f32 to vector<32x4xf32>
    %15 = arith.mulf %14, %13 : vector<32x4xf32>
    %16 = arith.subf %15, %11 : vector<32x4xf32>
    %17 = tpu.concatenate %10, %11 in 1 : vector<32x4xf32>, vector<32x4xf32> -> vector<32x8xf32>
    %18 = tpu.concatenate %12, %16 in 1 : vector<32x4xf32>, vector<32x4xf32> -> vector<32x8xf32>
    %19 = tpu.concatenate %17, %18 in 1 : vector<32x8xf32>, vector<32x8xf32> -> vector<32x16xf32>
    %c0_8 = arith.constant 0 : index
    %c0_9 = arith.constant 0 : index
    %20 = vector.load %arg2[%c0_8, %c0_9] : memref<160x14xf32, #tpu.memory_space<vmem>>, vector<16x14xf32>
    %cst_10 = arith.constant dense<0.000000e+00> : vector<32x14xf32>
    %21 = tpu.matmul %19, %20, %cst_10 {dimension_numbers = #tpu.dot_dimension_numbers<[1], [0], [0], [1], [0, 0, 1, 1], [], []>} : vector<32x16xf32>, vector<16x14xf32>, vector<32x14xf32> -> vector<32x14xf32>
    %cst_11 = arith.constant dense<0.000000e+00> : vector<32x8xf32>
    %22 = tpu.matmul %9, %18, %cst_11 {dimension_numbers = #tpu.dot_dimension_numbers<[1], [0], [0], [1], [0, 0, 1, 1], [], []>} : vector<32x32xf32>, vector<32x8xf32>, vector<32x8xf32> -> vector<32x8xf32>
    %cst_12 = arith.constant 2.000000e+00 : f32
    %23 = vector.broadcast %cst_12 : f32 to vector<32x8xf32>
    %24 = arith.mulf %23, %22 : vector<32x8xf32>
    %25 = arith.subf %24, %17 : vector<32x8xf32>
    %c16 = arith.constant 16 : index
    %c0_13 = arith.constant 0 : index
    %26 = vector.load %arg2[%c16, %c0_13] : memref<160x14xf32, #tpu.memory_space<vmem>>, vector<8x14xf32>
    %cst_14 = arith.constant dense<0.000000e+00> : vector<32x14xf32>
    %27 = tpu.matmul %25, %26, %cst_14 {dimension_numbers = #tpu.dot_dimension_numbers<[1], [0], [0], [1], [0, 0, 1, 1], [], []>} : vector<32x8xf32>, vector<8x14xf32>, vector<32x14xf32> -> vector<32x14xf32>
    %28 = arith.addf %21, %27 : vector<32x14xf32>
    %cst_15 = arith.constant dense<0.000000e+00> : vector<32x8xf32>
    %29 = tpu.matmul %9, %25, %cst_15 {dimension_numbers = #tpu.dot_dimension_numbers<[1], [0], [0], [1], [0, 0, 1, 1], [], []>} : vector<32x32xf32>, vector<32x8xf32>, vector<32x8xf32> -> vector<32x8xf32>
    %cst_16 = arith.constant 2.000000e+00 : f32
    %30 = vector.broadcast %cst_16 : f32 to vector<32x8xf32>
    %31 = arith.mulf %30, %29 : vector<32x8xf32>
    %32 = arith.subf %31, %18 : vector<32x8xf32>
    %c24 = arith.constant 24 : index
    %c0_17 = arith.constant 0 : index
    %33 = vector.load %arg2[%c24, %c0_17] : memref<160x14xf32, #tpu.memory_space<vmem>>, vector<8x14xf32>
    %cst_18 = arith.constant dense<0.000000e+00> : vector<32x14xf32>
    %34 = tpu.matmul %32, %33, %cst_18 {dimension_numbers = #tpu.dot_dimension_numbers<[1], [0], [0], [1], [0, 0, 1, 1], [], []>} : vector<32x8xf32>, vector<8x14xf32>, vector<32x14xf32> -> vector<32x14xf32>
    %35 = arith.addf %28, %34 : vector<32x14xf32>
    %cst_19 = arith.constant dense<0.000000e+00> : vector<32x8xf32>
    %36 = tpu.matmul %9, %32, %cst_19 {dimension_numbers = #tpu.dot_dimension_numbers<[1], [0], [0], [1], [0, 0, 1, 1], [], []>} : vector<32x32xf32>, vector<32x8xf32>, vector<32x8xf32> -> vector<32x8xf32>
    %cst_20 = arith.constant 2.000000e+00 : f32
    %37 = vector.broadcast %cst_20 : f32 to vector<32x8xf32>
    %38 = arith.mulf %37, %36 : vector<32x8xf32>
    %39 = arith.subf %38, %25 : vector<32x8xf32>
    %c32 = arith.constant 32 : index
    %c0_21 = arith.constant 0 : index
    %40 = vector.load %arg2[%c32, %c0_21] : memref<160x14xf32, #tpu.memory_space<vmem>>, vector<8x14xf32>
    %cst_22 = arith.constant dense<0.000000e+00> : vector<32x14xf32>
    %41 = tpu.matmul %39, %40, %cst_22 {dimension_numbers = #tpu.dot_dimension_numbers<[1], [0], [0], [1], [0, 0, 1, 1], [], []>} : vector<32x8xf32>, vector<8x14xf32>, vector<32x14xf32> -> vector<32x14xf32>
    %42 = arith.addf %35, %41 : vector<32x14xf32>
    %cst_23 = arith.constant dense<0.000000e+00> : vector<32x8xf32>
    %43 = tpu.matmul %9, %39, %cst_23 {dimension_numbers = #tpu.dot_dimension_numbers<[1], [0], [0], [1], [0, 0, 1, 1], [], []>} : vector<32x32xf32>, vector<32x8xf32>, vector<32x8xf32> -> vector<32x8xf32>
    %cst_24 = arith.constant 2.000000e+00 : f32
    %44 = vector.broadcast %cst_24 : f32 to vector<32x8xf32>
    %45 = arith.mulf %44, %43 : vector<32x8xf32>
    %46 = arith.subf %45, %32 : vector<32x8xf32>
    %c40 = arith.constant 40 : index
    %c0_25 = arith.constant 0 : index
    %47 = vector.load %arg2[%c40, %c0_25] : memref<160x14xf32, #tpu.memory_space<vmem>>, vector<8x14xf32>
    %cst_26 = arith.constant dense<0.000000e+00> : vector<32x14xf32>
    %48 = tpu.matmul %46, %47, %cst_26 {dimension_numbers = #tpu.dot_dimension_numbers<[1], [0], [0], [1], [0, 0, 1, 1], [], []>} : vector<32x8xf32>, vector<8x14xf32>, vector<32x14xf32> -> vector<32x14xf32>
    %49 = arith.addf %42, %48 : vector<32x14xf32>
    %cst_27 = arith.constant dense<0.000000e+00> : vector<32x8xf32>
    %50 = tpu.matmul %9, %46, %cst_27 {dimension_numbers = #tpu.dot_dimension_numbers<[1], [0], [0], [1], [0, 0, 1, 1], [], []>} : vector<32x32xf32>, vector<32x8xf32>, vector<32x8xf32> -> vector<32x8xf32>
    %cst_28 = arith.constant 2.000000e+00 : f32
    %51 = vector.broadcast %cst_28 : f32 to vector<32x8xf32>
    %52 = arith.mulf %51, %50 : vector<32x8xf32>
    %53 = arith.subf %52, %39 : vector<32x8xf32>
    %c48 = arith.constant 48 : index
    %c0_29 = arith.constant 0 : index
    %54 = vector.load %arg2[%c48, %c0_29] : memref<160x14xf32, #tpu.memory_space<vmem>>, vector<8x14xf32>
    %cst_30 = arith.constant dense<0.000000e+00> : vector<32x14xf32>
    %55 = tpu.matmul %53, %54, %cst_30 {dimension_numbers = #tpu.dot_dimension_numbers<[1], [0], [0], [1], [0, 0, 1, 1], [], []>} : vector<32x8xf32>, vector<8x14xf32>, vector<32x14xf32> -> vector<32x14xf32>
    %56 = arith.addf %49, %55 : vector<32x14xf32>
    %cst_31 = arith.constant dense<0.000000e+00> : vector<32x8xf32>
    %57 = tpu.matmul %9, %53, %cst_31 {dimension_numbers = #tpu.dot_dimension_numbers<[1], [0], [0], [1], [0, 0, 1, 1], [], []>} : vector<32x32xf32>, vector<32x8xf32>, vector<32x8xf32> -> vector<32x8xf32>
    %cst_32 = arith.constant 2.000000e+00 : f32
    %58 = vector.broadcast %cst_32 : f32 to vector<32x8xf32>
    %59 = arith.mulf %58, %57 : vector<32x8xf32>
    %60 = arith.subf %59, %46 : vector<32x8xf32>
    %c56 = arith.constant 56 : index
    %c0_33 = arith.constant 0 : index
    %61 = vector.load %arg2[%c56, %c0_33] : memref<160x14xf32, #tpu.memory_space<vmem>>, vector<8x14xf32>
    %cst_34 = arith.constant dense<0.000000e+00> : vector<32x14xf32>
    %62 = tpu.matmul %60, %61, %cst_34 {dimension_numbers = #tpu.dot_dimension_numbers<[1], [0], [0], [1], [0, 0, 1, 1], [], []>} : vector<32x8xf32>, vector<8x14xf32>, vector<32x14xf32> -> vector<32x14xf32>
    %63 = arith.addf %56, %62 : vector<32x14xf32>
    %cst_35 = arith.constant dense<0.000000e+00> : vector<32x8xf32>
    %64 = tpu.matmul %9, %60, %cst_35 {dimension_numbers = #tpu.dot_dimension_numbers<[1], [0], [0], [1], [0, 0, 1, 1], [], []>} : vector<32x32xf32>, vector<32x8xf32>, vector<32x8xf32> -> vector<32x8xf32>
    %cst_36 = arith.constant 2.000000e+00 : f32
    %65 = vector.broadcast %cst_36 : f32 to vector<32x8xf32>
    %66 = arith.mulf %65, %64 : vector<32x8xf32>
    %67 = arith.subf %66, %53 : vector<32x8xf32>
    %c64 = arith.constant 64 : index
    %c0_37 = arith.constant 0 : index
    %68 = vector.load %arg2[%c64, %c0_37] : memref<160x14xf32, #tpu.memory_space<vmem>>, vector<8x14xf32>
    %cst_38 = arith.constant dense<0.000000e+00> : vector<32x14xf32>
    %69 = tpu.matmul %67, %68, %cst_38 {dimension_numbers = #tpu.dot_dimension_numbers<[1], [0], [0], [1], [0, 0, 1, 1], [], []>} : vector<32x8xf32>, vector<8x14xf32>, vector<32x14xf32> -> vector<32x14xf32>
    %70 = arith.addf %63, %69 : vector<32x14xf32>
    %cst_39 = arith.constant dense<0.000000e+00> : vector<32x8xf32>
    %71 = tpu.matmul %9, %67, %cst_39 {dimension_numbers = #tpu.dot_dimension_numbers<[1], [0], [0], [1], [0, 0, 1, 1], [], []>} : vector<32x32xf32>, vector<32x8xf32>, vector<32x8xf32> -> vector<32x8xf32>
    %cst_40 = arith.constant 2.000000e+00 : f32
    %72 = vector.broadcast %cst_40 : f32 to vector<32x8xf32>
    %73 = arith.mulf %72, %71 : vector<32x8xf32>
    %74 = arith.subf %73, %60 : vector<32x8xf32>
    %c72 = arith.constant 72 : index
    %c0_41 = arith.constant 0 : index
    %75 = vector.load %arg2[%c72, %c0_41] : memref<160x14xf32, #tpu.memory_space<vmem>>, vector<8x14xf32>
    %cst_42 = arith.constant dense<0.000000e+00> : vector<32x14xf32>
    %76 = tpu.matmul %74, %75, %cst_42 {dimension_numbers = #tpu.dot_dimension_numbers<[1], [0], [0], [1], [0, 0, 1, 1], [], []>} : vector<32x8xf32>, vector<8x14xf32>, vector<32x14xf32> -> vector<32x14xf32>
    %77 = arith.addf %70, %76 : vector<32x14xf32>
    %cst_43 = arith.constant dense<0.000000e+00> : vector<32x8xf32>
    %78 = tpu.matmul %9, %74, %cst_43 {dimension_numbers = #tpu.dot_dimension_numbers<[1], [0], [0], [1], [0, 0, 1, 1], [], []>} : vector<32x32xf32>, vector<32x8xf32>, vector<32x8xf32> -> vector<32x8xf32>
    %cst_44 = arith.constant 2.000000e+00 : f32
    %79 = vector.broadcast %cst_44 : f32 to vector<32x8xf32>
    %80 = arith.mulf %79, %78 : vector<32x8xf32>
    %81 = arith.subf %80, %67 : vector<32x8xf32>
    %c80 = arith.constant 80 : index
    %c0_45 = arith.constant 0 : index
    %82 = vector.load %arg2[%c80, %c0_45] : memref<160x14xf32, #tpu.memory_space<vmem>>, vector<8x14xf32>
    %cst_46 = arith.constant dense<0.000000e+00> : vector<32x14xf32>
    %83 = tpu.matmul %81, %82, %cst_46 {dimension_numbers = #tpu.dot_dimension_numbers<[1], [0], [0], [1], [0, 0, 1, 1], [], []>} : vector<32x8xf32>, vector<8x14xf32>, vector<32x14xf32> -> vector<32x14xf32>
    %84 = arith.addf %77, %83 : vector<32x14xf32>
    %cst_47 = arith.constant dense<0.000000e+00> : vector<32x8xf32>
    %85 = tpu.matmul %9, %81, %cst_47 {dimension_numbers = #tpu.dot_dimension_numbers<[1], [0], [0], [1], [0, 0, 1, 1], [], []>} : vector<32x32xf32>, vector<32x8xf32>, vector<32x8xf32> -> vector<32x8xf32>
    %cst_48 = arith.constant 2.000000e+00 : f32
    %86 = vector.broadcast %cst_48 : f32 to vector<32x8xf32>
    %87 = arith.mulf %86, %85 : vector<32x8xf32>
    %88 = arith.subf %87, %74 : vector<32x8xf32>
    %c88 = arith.constant 88 : index
    %c0_49 = arith.constant 0 : index
    %89 = vector.load %arg2[%c88, %c0_49] : memref<160x14xf32, #tpu.memory_space<vmem>>, vector<8x14xf32>
    %cst_50 = arith.constant dense<0.000000e+00> : vector<32x14xf32>
    %90 = tpu.matmul %88, %89, %cst_50 {dimension_numbers = #tpu.dot_dimension_numbers<[1], [0], [0], [1], [0, 0, 1, 1], [], []>} : vector<32x8xf32>, vector<8x14xf32>, vector<32x14xf32> -> vector<32x14xf32>
    %91 = arith.addf %84, %90 : vector<32x14xf32>
    %cst_51 = arith.constant dense<0.000000e+00> : vector<32x8xf32>
    %92 = tpu.matmul %9, %88, %cst_51 {dimension_numbers = #tpu.dot_dimension_numbers<[1], [0], [0], [1], [0, 0, 1, 1], [], []>} : vector<32x32xf32>, vector<32x8xf32>, vector<32x8xf32> -> vector<32x8xf32>
    %cst_52 = arith.constant 2.000000e+00 : f32
    %93 = vector.broadcast %cst_52 : f32 to vector<32x8xf32>
    %94 = arith.mulf %93, %92 : vector<32x8xf32>
    %95 = arith.subf %94, %81 : vector<32x8xf32>
    %c96 = arith.constant 96 : index
    %c0_53 = arith.constant 0 : index
    %96 = vector.load %arg2[%c96, %c0_53] : memref<160x14xf32, #tpu.memory_space<vmem>>, vector<8x14xf32>
    %cst_54 = arith.constant dense<0.000000e+00> : vector<32x14xf32>
    %97 = tpu.matmul %95, %96, %cst_54 {dimension_numbers = #tpu.dot_dimension_numbers<[1], [0], [0], [1], [0, 0, 1, 1], [], []>} : vector<32x8xf32>, vector<8x14xf32>, vector<32x14xf32> -> vector<32x14xf32>
    %98 = arith.addf %91, %97 : vector<32x14xf32>
    %cst_55 = arith.constant dense<0.000000e+00> : vector<32x8xf32>
    %99 = tpu.matmul %9, %95, %cst_55 {dimension_numbers = #tpu.dot_dimension_numbers<[1], [0], [0], [1], [0, 0, 1, 1], [], []>} : vector<32x32xf32>, vector<32x8xf32>, vector<32x8xf32> -> vector<32x8xf32>
    %cst_56 = arith.constant 2.000000e+00 : f32
    %100 = vector.broadcast %cst_56 : f32 to vector<32x8xf32>
    %101 = arith.mulf %100, %99 : vector<32x8xf32>
    %102 = arith.subf %101, %88 : vector<32x8xf32>
    %c104 = arith.constant 104 : index
    %c0_57 = arith.constant 0 : index
    %103 = vector.load %arg2[%c104, %c0_57] : memref<160x14xf32, #tpu.memory_space<vmem>>, vector<8x14xf32>
    %cst_58 = arith.constant dense<0.000000e+00> : vector<32x14xf32>
    %104 = tpu.matmul %102, %103, %cst_58 {dimension_numbers = #tpu.dot_dimension_numbers<[1], [0], [0], [1], [0, 0, 1, 1], [], []>} : vector<32x8xf32>, vector<8x14xf32>, vector<32x14xf32> -> vector<32x14xf32>
    %105 = arith.addf %98, %104 : vector<32x14xf32>
    %cst_59 = arith.constant dense<0.000000e+00> : vector<32x8xf32>
    %106 = tpu.matmul %9, %102, %cst_59 {dimension_numbers = #tpu.dot_dimension_numbers<[1], [0], [0], [1], [0, 0, 1, 1], [], []>} : vector<32x32xf32>, vector<32x8xf32>, vector<32x8xf32> -> vector<32x8xf32>
    %cst_60 = arith.constant 2.000000e+00 : f32
    %107 = vector.broadcast %cst_60 : f32 to vector<32x8xf32>
    %108 = arith.mulf %107, %106 : vector<32x8xf32>
    %109 = arith.subf %108, %95 : vector<32x8xf32>
    %c112 = arith.constant 112 : index
    %c0_61 = arith.constant 0 : index
    %110 = vector.load %arg2[%c112, %c0_61] : memref<160x14xf32, #tpu.memory_space<vmem>>, vector<8x14xf32>
    %cst_62 = arith.constant dense<0.000000e+00> : vector<32x14xf32>
    %111 = tpu.matmul %109, %110, %cst_62 {dimension_numbers = #tpu.dot_dimension_numbers<[1], [0], [0], [1], [0, 0, 1, 1], [], []>} : vector<32x8xf32>, vector<8x14xf32>, vector<32x14xf32> -> vector<32x14xf32>
    %112 = arith.addf %105, %111 : vector<32x14xf32>
    %cst_63 = arith.constant dense<0.000000e+00> : vector<32x8xf32>
    %113 = tpu.matmul %9, %109, %cst_63 {dimension_numbers = #tpu.dot_dimension_numbers<[1], [0], [0], [1], [0, 0, 1, 1], [], []>} : vector<32x32xf32>, vector<32x8xf32>, vector<32x8xf32> -> vector<32x8xf32>
    %cst_64 = arith.constant 2.000000e+00 : f32
    %114 = vector.broadcast %cst_64 : f32 to vector<32x8xf32>
    %115 = arith.mulf %114, %113 : vector<32x8xf32>
    %116 = arith.subf %115, %102 : vector<32x8xf32>
    %c120 = arith.constant 120 : index
    %c0_65 = arith.constant 0 : index
    %117 = vector.load %arg2[%c120, %c0_65] : memref<160x14xf32, #tpu.memory_space<vmem>>, vector<8x14xf32>
    %cst_66 = arith.constant dense<0.000000e+00> : vector<32x14xf32>
    %118 = tpu.matmul %116, %117, %cst_66 {dimension_numbers = #tpu.dot_dimension_numbers<[1], [0], [0], [1], [0, 0, 1, 1], [], []>} : vector<32x8xf32>, vector<8x14xf32>, vector<32x14xf32> -> vector<32x14xf32>
    %119 = arith.addf %112, %118 : vector<32x14xf32>
    %cst_67 = arith.constant dense<0.000000e+00> : vector<32x8xf32>
    %120 = tpu.matmul %9, %116, %cst_67 {dimension_numbers = #tpu.dot_dimension_numbers<[1], [0], [0], [1], [0, 0, 1, 1], [], []>} : vector<32x32xf32>, vector<32x8xf32>, vector<32x8xf32> -> vector<32x8xf32>
    %cst_68 = arith.constant 2.000000e+00 : f32
    %121 = vector.broadcast %cst_68 : f32 to vector<32x8xf32>
    %122 = arith.mulf %121, %120 : vector<32x8xf32>
    %123 = arith.subf %122, %109 : vector<32x8xf32>
    %c128 = arith.constant 128 : index
    %c0_69 = arith.constant 0 : index
    %124 = vector.load %arg2[%c128, %c0_69] : memref<160x14xf32, #tpu.memory_space<vmem>>, vector<8x14xf32>
    %cst_70 = arith.constant dense<0.000000e+00> : vector<32x14xf32>
    %125 = tpu.matmul %123, %124, %cst_70 {dimension_numbers = #tpu.dot_dimension_numbers<[1], [0], [0], [1], [0, 0, 1, 1], [], []>} : vector<32x8xf32>, vector<8x14xf32>, vector<32x14xf32> -> vector<32x14xf32>
    %126 = arith.addf %119, %125 : vector<32x14xf32>
    %cst_71 = arith.constant dense<0.000000e+00> : vector<32x8xf32>
    %127 = tpu.matmul %9, %123, %cst_71 {dimension_numbers = #tpu.dot_dimension_numbers<[1], [0], [0], [1], [0, 0, 1, 1], [], []>} : vector<32x32xf32>, vector<32x8xf32>, vector<32x8xf32> -> vector<32x8xf32>
    %cst_72 = arith.constant 2.000000e+00 : f32
    %128 = vector.broadcast %cst_72 : f32 to vector<32x8xf32>
    %129 = arith.mulf %128, %127 : vector<32x8xf32>
    %130 = arith.subf %129, %116 : vector<32x8xf32>
    %c136 = arith.constant 136 : index
    %c0_73 = arith.constant 0 : index
    %131 = vector.load %arg2[%c136, %c0_73] : memref<160x14xf32, #tpu.memory_space<vmem>>, vector<8x14xf32>
    %cst_74 = arith.constant dense<0.000000e+00> : vector<32x14xf32>
    %132 = tpu.matmul %130, %131, %cst_74 {dimension_numbers = #tpu.dot_dimension_numbers<[1], [0], [0], [1], [0, 0, 1, 1], [], []>} : vector<32x8xf32>, vector<8x14xf32>, vector<32x14xf32> -> vector<32x14xf32>
    %133 = arith.addf %126, %132 : vector<32x14xf32>
    %cst_75 = arith.constant dense<0.000000e+00> : vector<32x8xf32>
    %134 = tpu.matmul %9, %130, %cst_75 {dimension_numbers = #tpu.dot_dimension_numbers<[1], [0], [0], [1], [0, 0, 1, 1], [], []>} : vector<32x32xf32>, vector<32x8xf32>, vector<32x8xf32> -> vector<32x8xf32>
    %cst_76 = arith.constant 2.000000e+00 : f32
    %135 = vector.broadcast %cst_76 : f32 to vector<32x8xf32>
    %136 = arith.mulf %135, %134 : vector<32x8xf32>
    %137 = arith.subf %136, %123 : vector<32x8xf32>
    %c144 = arith.constant 144 : index
    %c0_77 = arith.constant 0 : index
    %138 = vector.load %arg2[%c144, %c0_77] : memref<160x14xf32, #tpu.memory_space<vmem>>, vector<8x14xf32>
    %cst_78 = arith.constant dense<0.000000e+00> : vector<32x14xf32>
    %139 = tpu.matmul %137, %138, %cst_78 {dimension_numbers = #tpu.dot_dimension_numbers<[1], [0], [0], [1], [0, 0, 1, 1], [], []>} : vector<32x8xf32>, vector<8x14xf32>, vector<32x14xf32> -> vector<32x14xf32>
    %140 = arith.addf %133, %139 : vector<32x14xf32>
    %cst_79 = arith.constant dense<0.000000e+00> : vector<32x8xf32>
    %141 = tpu.matmul %9, %137, %cst_79 {dimension_numbers = #tpu.dot_dimension_numbers<[1], [0], [0], [1], [0, 0, 1, 1], [], []>} : vector<32x32xf32>, vector<32x8xf32>, vector<32x8xf32> -> vector<32x8xf32>
    %cst_80 = arith.constant 2.000000e+00 : f32
    %142 = vector.broadcast %cst_80 : f32 to vector<32x8xf32>
    %143 = arith.mulf %142, %141 : vector<32x8xf32>
    %144 = arith.subf %143, %130 : vector<32x8xf32>
    %c152 = arith.constant 152 : index
    %c0_81 = arith.constant 0 : index
    %145 = vector.load %arg2[%c152, %c0_81] : memref<160x14xf32, #tpu.memory_space<vmem>>, vector<8x14xf32>
    %cst_82 = arith.constant dense<0.000000e+00> : vector<32x14xf32>
    %146 = tpu.matmul %144, %145, %cst_82 {dimension_numbers = #tpu.dot_dimension_numbers<[1], [0], [0], [1], [0, 0, 1, 1], [], []>} : vector<32x8xf32>, vector<8x14xf32>, vector<32x14xf32> -> vector<32x14xf32>
    %147 = arith.addf %140, %146 : vector<32x14xf32>
    %c0_83 = arith.constant 0 : index
    %c0_84 = arith.constant 0 : index
    %148 = vector.load %arg3[%c0_83, %c0_84] : memref<1x14xf32, #tpu.memory_space<vmem>>, vector<1x14xf32>
    %149 = vector.broadcast %148 : vector<1x14xf32> to vector<32x14xf32>
    %150 = arith.addf %147, %149 : vector<32x14xf32>
    %151 = arith.negf %150 : vector<32x14xf32>
    %152 = math.exp %151 : vector<32x14xf32>
    %cst_85 = arith.constant 1.000000e+00 : f32
    %153 = vector.broadcast %cst_85 : f32 to vector<32x14xf32>
    %154 = arith.addf %153, %152 : vector<32x14xf32>
    %155 = arith.divf %153, %154 : vector<32x14xf32>
    %156 = arith.mulf %150, %155 : vector<32x14xf32>
    %cst_86 = arith.constant dense<0.000000e+00> : vector<32x14xf32>
    %157 = tpu.matmul %0, %156, %cst_86 {dimension_numbers = #tpu.dot_dimension_numbers<[1], [0], [0], [1], [0, 0, 1, 1], [], []>} : vector<32x32xf32>, vector<32x14xf32>, vector<32x14xf32> -> vector<32x14xf32>
    %cst_87 = arith.constant dense<0.000000e+00> : vector<32x14xf32>
    %158 = tpu.matmul %9, %156, %cst_87 {dimension_numbers = #tpu.dot_dimension_numbers<[1], [0], [0], [1], [0, 0, 1, 1], [], []>} : vector<32x32xf32>, vector<32x14xf32>, vector<32x14xf32> -> vector<32x14xf32>
    %cst_88 = arith.constant dense<0.000000e+00> : vector<32x14xf32>
    %159 = tpu.matmul %9, %157, %cst_88 {dimension_numbers = #tpu.dot_dimension_numbers<[1], [0], [0], [1], [0, 0, 1, 1], [], []>} : vector<32x32xf32>, vector<32x14xf32>, vector<32x14xf32> -> vector<32x14xf32>
    %cst_89 = arith.constant 2.000000e+00 : f32
    %160 = vector.broadcast %cst_89 : f32 to vector<32x14xf32>
    %161 = arith.mulf %160, %159 : vector<32x14xf32>
    %162 = arith.subf %161, %157 : vector<32x14xf32>
    %163 = tpu.concatenate %156, %157 in 1 : vector<32x14xf32>, vector<32x14xf32> -> vector<32x28xf32>
    %164 = tpu.concatenate %158, %162 in 1 : vector<32x14xf32>, vector<32x14xf32> -> vector<32x28xf32>
    %165 = tpu.concatenate %163, %164 in 1 : vector<32x28xf32>, vector<32x28xf32> -> vector<32x56xf32>
    %c0_90 = arith.constant 0 : index
    %c0_91 = arith.constant 0 : index
    %166 = vector.load %arg4[%c0_90, %c0_91] : memref<616x20xf32, #tpu.memory_space<vmem>>, vector<56x20xf32>
    %cst_92 = arith.constant dense<0.000000e+00> : vector<32x20xf32>
    %167 = tpu.matmul %165, %166, %cst_92 {dimension_numbers = #tpu.dot_dimension_numbers<[1], [0], [0], [1], [0, 0, 1, 1], [], []>} : vector<32x56xf32>, vector<56x20xf32>, vector<32x20xf32> -> vector<32x20xf32>
    %cst_93 = arith.constant dense<0.000000e+00> : vector<32x28xf32>
    %168 = tpu.matmul %9, %164, %cst_93 {dimension_numbers = #tpu.dot_dimension_numbers<[1], [0], [0], [1], [0, 0, 1, 1], [], []>} : vector<32x32xf32>, vector<32x28xf32>, vector<32x28xf32> -> vector<32x28xf32>
    %cst_94 = arith.constant 2.000000e+00 : f32
    %169 = vector.broadcast %cst_94 : f32 to vector<32x28xf32>
    %170 = arith.mulf %169, %168 : vector<32x28xf32>
    %171 = arith.subf %170, %163 : vector<32x28xf32>
    %c56_95 = arith.constant 56 : index
    %c0_96 = arith.constant 0 : index
    %172 = vector.load %arg4[%c56_95, %c0_96] : memref<616x20xf32, #tpu.memory_space<vmem>>, vector<28x20xf32>
    %cst_97 = arith.constant dense<0.000000e+00> : vector<32x20xf32>
    %173 = tpu.matmul %171, %172, %cst_97 {dimension_numbers = #tpu.dot_dimension_numbers<[1], [0], [0], [1], [0, 0, 1, 1], [], []>} : vector<32x28xf32>, vector<28x20xf32>, vector<32x20xf32> -> vector<32x20xf32>
    %174 = arith.addf %167, %173 : vector<32x20xf32>
    %cst_98 = arith.constant dense<0.000000e+00> : vector<32x28xf32>
    %175 = tpu.matmul %9, %171, %cst_98 {dimension_numbers = #tpu.dot_dimension_numbers<[1], [0], [0], [1], [0, 0, 1, 1], [], []>} : vector<32x32xf32>, vector<32x28xf32>, vector<32x28xf32> -> vector<32x28xf32>
    %cst_99 = arith.constant 2.000000e+00 : f32
    %176 = vector.broadcast %cst_99 : f32 to vector<32x28xf32>
    %177 = arith.mulf %176, %175 : vector<32x28xf32>
    %178 = arith.subf %177, %164 : vector<32x28xf32>
    %c84 = arith.constant 84 : index
    %c0_100 = arith.constant 0 : index
    %179 = vector.load %arg4[%c84, %c0_100] : memref<616x20xf32, #tpu.memory_space<vmem>>, vector<28x20xf32>
    %cst_101 = arith.constant dense<0.000000e+00> : vector<32x20xf32>
    %180 = tpu.matmul %178, %179, %cst_101 {dimension_numbers = #tpu.dot_dimension_numbers<[1], [0], [0], [1], [0, 0, 1, 1], [], []>} : vector<32x28xf32>, vector<28x20xf32>, vector<32x20xf32> -> vector<32x20xf32>
    %181 = arith.addf %174, %180 : vector<32x20xf32>
    %cst_102 = arith.constant dense<0.000000e+00> : vector<32x28xf32>
    %182 = tpu.matmul %9, %178, %cst_102 {dimension_numbers = #tpu.dot_dimension_numbers<[1], [0], [0], [1], [0, 0, 1, 1], [], []>} : vector<32x32xf32>, vector<32x28xf32>, vector<32x28xf32> -> vector<32x28xf32>
    %cst_103 = arith.constant 2.000000e+00 : f32
    %183 = vector.broadcast %cst_103 : f32 to vector<32x28xf32>
    %184 = arith.mulf %183, %182 : vector<32x28xf32>
    %185 = arith.subf %184, %171 : vector<32x28xf32>
    %c112_104 = arith.constant 112 : index
    %c0_105 = arith.constant 0 : index
    %186 = vector.load %arg4[%c112_104, %c0_105] : memref<616x20xf32, #tpu.memory_space<vmem>>, vector<28x20xf32>
    %cst_106 = arith.constant dense<0.000000e+00> : vector<32x20xf32>
    %187 = tpu.matmul %185, %186, %cst_106 {dimension_numbers = #tpu.dot_dimension_numbers<[1], [0], [0], [1], [0, 0, 1, 1], [], []>} : vector<32x28xf32>, vector<28x20xf32>, vector<32x20xf32> -> vector<32x20xf32>
    %188 = arith.addf %181, %187 : vector<32x20xf32>
    %cst_107 = arith.constant dense<0.000000e+00> : vector<32x28xf32>
    %189 = tpu.matmul %9, %185, %cst_107 {dimension_numbers = #tpu.dot_dimension_numbers<[1], [0], [0], [1], [0, 0, 1, 1], [], []>} : vector<32x32xf32>, vector<32x28xf32>, vector<32x28xf32> -> vector<32x28xf32>
    %cst_108 = arith.constant 2.000000e+00 : f32
    %190 = vector.broadcast %cst_108 : f32 to vector<32x28xf32>
    %191 = arith.mulf %190, %189 : vector<32x28xf32>
    %192 = arith.subf %191, %178 : vector<32x28xf32>
    %c140 = arith.constant 140 : index
    %c0_109 = arith.constant 0 : index
    %193 = vector.load %arg4[%c140, %c0_109] : memref<616x20xf32, #tpu.memory_space<vmem>>, vector<28x20xf32>
    %cst_110 = arith.constant dense<0.000000e+00> : vector<32x20xf32>
    %194 = tpu.matmul %192, %193, %cst_110 {dimension_numbers = #tpu.dot_dimension_numbers<[1], [0], [0], [1], [0, 0, 1, 1], [], []>} : vector<32x28xf32>, vector<28x20xf32>, vector<32x20xf32> -> vector<32x20xf32>
    %195 = arith.addf %188, %194 : vector<32x20xf32>
    %cst_111 = arith.constant dense<0.000000e+00> : vector<32x28xf32>
    %196 = tpu.matmul %9, %192, %cst_111 {dimension_numbers = #tpu.dot_dimension_numbers<[1], [0], [0], [1], [0, 0, 1, 1], [], []>} : vector<32x32xf32>, vector<32x28xf32>, vector<32x28xf32> -> vector<32x28xf32>
    %cst_112 = arith.constant 2.000000e+00 : f32
    %197 = vector.broadcast %cst_112 : f32 to vector<32x28xf32>
    %198 = arith.mulf %197, %196 : vector<32x28xf32>
    %199 = arith.subf %198, %185 : vector<32x28xf32>
    %c168 = arith.constant 168 : index
    %c0_113 = arith.constant 0 : index
    %200 = vector.load %arg4[%c168, %c0_113] : memref<616x20xf32, #tpu.memory_space<vmem>>, vector<28x20xf32>
    %cst_114 = arith.constant dense<0.000000e+00> : vector<32x20xf32>
    %201 = tpu.matmul %199, %200, %cst_114 {dimension_numbers = #tpu.dot_dimension_numbers<[1], [0], [0], [1], [0, 0, 1, 1], [], []>} : vector<32x28xf32>, vector<28x20xf32>, vector<32x20xf32> -> vector<32x20xf32>
    %202 = arith.addf %195, %201 : vector<32x20xf32>
    %cst_115 = arith.constant dense<0.000000e+00> : vector<32x28xf32>
    %203 = tpu.matmul %9, %199, %cst_115 {dimension_numbers = #tpu.dot_dimension_numbers<[1], [0], [0], [1], [0, 0, 1, 1], [], []>} : vector<32x32xf32>, vector<32x28xf32>, vector<32x28xf32> -> vector<32x28xf32>
    %cst_116 = arith.constant 2.000000e+00 : f32
    %204 = vector.broadcast %cst_116 : f32 to vector<32x28xf32>
    %205 = arith.mulf %204, %203 : vector<32x28xf32>
    %206 = arith.subf %205, %192 : vector<32x28xf32>
    %c196 = arith.constant 196 : index
    %c0_117 = arith.constant 0 : index
    %207 = vector.load %arg4[%c196, %c0_117] : memref<616x20xf32, #tpu.memory_space<vmem>>, vector<28x20xf32>
    %cst_118 = arith.constant dense<0.000000e+00> : vector<32x20xf32>
    %208 = tpu.matmul %206, %207, %cst_118 {dimension_numbers = #tpu.dot_dimension_numbers<[1], [0], [0], [1], [0, 0, 1, 1], [], []>} : vector<32x28xf32>, vector<28x20xf32>, vector<32x20xf32> -> vector<32x20xf32>
    %209 = arith.addf %202, %208 : vector<32x20xf32>
    %cst_119 = arith.constant dense<0.000000e+00> : vector<32x28xf32>
    %210 = tpu.matmul %9, %206, %cst_119 {dimension_numbers = #tpu.dot_dimension_numbers<[1], [0], [0], [1], [0, 0, 1, 1], [], []>} : vector<32x32xf32>, vector<32x28xf32>, vector<32x28xf32> -> vector<32x28xf32>
    %cst_120 = arith.constant 2.000000e+00 : f32
    %211 = vector.broadcast %cst_120 : f32 to vector<32x28xf32>
    %212 = arith.mulf %211, %210 : vector<32x28xf32>
    %213 = arith.subf %212, %199 : vector<32x28xf32>
    %c224 = arith.constant 224 : index
    %c0_121 = arith.constant 0 : index
    %214 = vector.load %arg4[%c224, %c0_121] : memref<616x20xf32, #tpu.memory_space<vmem>>, vector<28x20xf32>
    %cst_122 = arith.constant dense<0.000000e+00> : vector<32x20xf32>
    %215 = tpu.matmul %213, %214, %cst_122 {dimension_numbers = #tpu.dot_dimension_numbers<[1], [0], [0], [1], [0, 0, 1, 1], [], []>} : vector<32x28xf32>, vector<28x20xf32>, vector<32x20xf32> -> vector<32x20xf32>
    %216 = arith.addf %209, %215 : vector<32x20xf32>
    %cst_123 = arith.constant dense<0.000000e+00> : vector<32x28xf32>
    %217 = tpu.matmul %9, %213, %cst_123 {dimension_numbers = #tpu.dot_dimension_numbers<[1], [0], [0], [1], [0, 0, 1, 1], [], []>} : vector<32x32xf32>, vector<32x28xf32>, vector<32x28xf32> -> vector<32x28xf32>
    %cst_124 = arith.constant 2.000000e+00 : f32
    %218 = vector.broadcast %cst_124 : f32 to vector<32x28xf32>
    %219 = arith.mulf %218, %217 : vector<32x28xf32>
    %220 = arith.subf %219, %206 : vector<32x28xf32>
    %c252 = arith.constant 252 : index
    %c0_125 = arith.constant 0 : index
    %221 = vector.load %arg4[%c252, %c0_125] : memref<616x20xf32, #tpu.memory_space<vmem>>, vector<28x20xf32>
    %cst_126 = arith.constant dense<0.000000e+00> : vector<32x20xf32>
    %222 = tpu.matmul %220, %221, %cst_126 {dimension_numbers = #tpu.dot_dimension_numbers<[1], [0], [0], [1], [0, 0, 1, 1], [], []>} : vector<32x28xf32>, vector<28x20xf32>, vector<32x20xf32> -> vector<32x20xf32>
    %223 = arith.addf %216, %222 : vector<32x20xf32>
    %cst_127 = arith.constant dense<0.000000e+00> : vector<32x28xf32>
    %224 = tpu.matmul %9, %220, %cst_127 {dimension_numbers = #tpu.dot_dimension_numbers<[1], [0], [0], [1], [0, 0, 1, 1], [], []>} : vector<32x32xf32>, vector<32x28xf32>, vector<32x28xf32> -> vector<32x28xf32>
    %cst_128 = arith.constant 2.000000e+00 : f32
    %225 = vector.broadcast %cst_128 : f32 to vector<32x28xf32>
    %226 = arith.mulf %225, %224 : vector<32x28xf32>
    %227 = arith.subf %226, %213 : vector<32x28xf32>
    %c280 = arith.constant 280 : index
    %c0_129 = arith.constant 0 : index
    %228 = vector.load %arg4[%c280, %c0_129] : memref<616x20xf32, #tpu.memory_space<vmem>>, vector<28x20xf32>
    %cst_130 = arith.constant dense<0.000000e+00> : vector<32x20xf32>
    %229 = tpu.matmul %227, %228, %cst_130 {dimension_numbers = #tpu.dot_dimension_numbers<[1], [0], [0], [1], [0, 0, 1, 1], [], []>} : vector<32x28xf32>, vector<28x20xf32>, vector<32x20xf32> -> vector<32x20xf32>
    %230 = arith.addf %223, %229 : vector<32x20xf32>
    %cst_131 = arith.constant dense<0.000000e+00> : vector<32x28xf32>
    %231 = tpu.matmul %9, %227, %cst_131 {dimension_numbers = #tpu.dot_dimension_numbers<[1], [0], [0], [1], [0, 0, 1, 1], [], []>} : vector<32x32xf32>, vector<32x28xf32>, vector<32x28xf32> -> vector<32x28xf32>
    %cst_132 = arith.constant 2.000000e+00 : f32
    %232 = vector.broadcast %cst_132 : f32 to vector<32x28xf32>
    %233 = arith.mulf %232, %231 : vector<32x28xf32>
    %234 = arith.subf %233, %220 : vector<32x28xf32>
    %c308 = arith.constant 308 : index
    %c0_133 = arith.constant 0 : index
    %235 = vector.load %arg4[%c308, %c0_133] : memref<616x20xf32, #tpu.memory_space<vmem>>, vector<28x20xf32>
    %cst_134 = arith.constant dense<0.000000e+00> : vector<32x20xf32>
    %236 = tpu.matmul %234, %235, %cst_134 {dimension_numbers = #tpu.dot_dimension_numbers<[1], [0], [0], [1], [0, 0, 1, 1], [], []>} : vector<32x28xf32>, vector<28x20xf32>, vector<32x20xf32> -> vector<32x20xf32>
    %237 = arith.addf %230, %236 : vector<32x20xf32>
    %cst_135 = arith.constant dense<0.000000e+00> : vector<32x28xf32>
    %238 = tpu.matmul %9, %234, %cst_135 {dimension_numbers = #tpu.dot_dimension_numbers<[1], [0], [0], [1], [0, 0, 1, 1], [], []>} : vector<32x32xf32>, vector<32x28xf32>, vector<32x28xf32> -> vector<32x28xf32>
    %cst_136 = arith.constant 2.000000e+00 : f32
    %239 = vector.broadcast %cst_136 : f32 to vector<32x28xf32>
    %240 = arith.mulf %239, %238 : vector<32x28xf32>
    %241 = arith.subf %240, %227 : vector<32x28xf32>
    %c336 = arith.constant 336 : index
    %c0_137 = arith.constant 0 : index
    %242 = vector.load %arg4[%c336, %c0_137] : memref<616x20xf32, #tpu.memory_space<vmem>>, vector<28x20xf32>
    %cst_138 = arith.constant dense<0.000000e+00> : vector<32x20xf32>
    %243 = tpu.matmul %241, %242, %cst_138 {dimension_numbers = #tpu.dot_dimension_numbers<[1], [0], [0], [1], [0, 0, 1, 1], [], []>} : vector<32x28xf32>, vector<28x20xf32>, vector<32x20xf32> -> vector<32x20xf32>
    %244 = arith.addf %237, %243 : vector<32x20xf32>
    %cst_139 = arith.constant dense<0.000000e+00> : vector<32x28xf32>
    %245 = tpu.matmul %9, %241, %cst_139 {dimension_numbers = #tpu.dot_dimension_numbers<[1], [0], [0], [1], [0, 0, 1, 1], [], []>} : vector<32x32xf32>, vector<32x28xf32>, vector<32x28xf32> -> vector<32x28xf32>
    %cst_140 = arith.constant 2.000000e+00 : f32
    %246 = vector.broadcast %cst_140 : f32 to vector<32x28xf32>
    %247 = arith.mulf %246, %245 : vector<32x28xf32>
    %248 = arith.subf %247, %234 : vector<32x28xf32>
    %c364 = arith.constant 364 : index
    %c0_141 = arith.constant 0 : index
    %249 = vector.load %arg4[%c364, %c0_141] : memref<616x20xf32, #tpu.memory_space<vmem>>, vector<28x20xf32>
    %cst_142 = arith.constant dense<0.000000e+00> : vector<32x20xf32>
    %250 = tpu.matmul %248, %249, %cst_142 {dimension_numbers = #tpu.dot_dimension_numbers<[1], [0], [0], [1], [0, 0, 1, 1], [], []>} : vector<32x28xf32>, vector<28x20xf32>, vector<32x20xf32> -> vector<32x20xf32>
    %251 = arith.addf %244, %250 : vector<32x20xf32>
    %cst_143 = arith.constant dense<0.000000e+00> : vector<32x28xf32>
    %252 = tpu.matmul %9, %248, %cst_143 {dimension_numbers = #tpu.dot_dimension_numbers<[1], [0], [0], [1], [0, 0, 1, 1], [], []>} : vector<32x32xf32>, vector<32x28xf32>, vector<32x28xf32> -> vector<32x28xf32>
    %cst_144 = arith.constant 2.000000e+00 : f32
    %253 = vector.broadcast %cst_144 : f32 to vector<32x28xf32>
    %254 = arith.mulf %253, %252 : vector<32x28xf32>
    %255 = arith.subf %254, %241 : vector<32x28xf32>
    %c392 = arith.constant 392 : index
    %c0_145 = arith.constant 0 : index
    %256 = vector.load %arg4[%c392, %c0_145] : memref<616x20xf32, #tpu.memory_space<vmem>>, vector<28x20xf32>
    %cst_146 = arith.constant dense<0.000000e+00> : vector<32x20xf32>
    %257 = tpu.matmul %255, %256, %cst_146 {dimension_numbers = #tpu.dot_dimension_numbers<[1], [0], [0], [1], [0, 0, 1, 1], [], []>} : vector<32x28xf32>, vector<28x20xf32>, vector<32x20xf32> -> vector<32x20xf32>
    %258 = arith.addf %251, %257 : vector<32x20xf32>
    %cst_147 = arith.constant dense<0.000000e+00> : vector<32x28xf32>
    %259 = tpu.matmul %9, %255, %cst_147 {dimension_numbers = #tpu.dot_dimension_numbers<[1], [0], [0], [1], [0, 0, 1, 1], [], []>} : vector<32x32xf32>, vector<32x28xf32>, vector<32x28xf32> -> vector<32x28xf32>
    %cst_148 = arith.constant 2.000000e+00 : f32
    %260 = vector.broadcast %cst_148 : f32 to vector<32x28xf32>
    %261 = arith.mulf %260, %259 : vector<32x28xf32>
    %262 = arith.subf %261, %248 : vector<32x28xf32>
    %c420 = arith.constant 420 : index
    %c0_149 = arith.constant 0 : index
    %263 = vector.load %arg4[%c420, %c0_149] : memref<616x20xf32, #tpu.memory_space<vmem>>, vector<28x20xf32>
    %cst_150 = arith.constant dense<0.000000e+00> : vector<32x20xf32>
    %264 = tpu.matmul %262, %263, %cst_150 {dimension_numbers = #tpu.dot_dimension_numbers<[1], [0], [0], [1], [0, 0, 1, 1], [], []>} : vector<32x28xf32>, vector<28x20xf32>, vector<32x20xf32> -> vector<32x20xf32>
    %265 = arith.addf %258, %264 : vector<32x20xf32>
    %cst_151 = arith.constant dense<0.000000e+00> : vector<32x28xf32>
    %266 = tpu.matmul %9, %262, %cst_151 {dimension_numbers = #tpu.dot_dimension_numbers<[1], [0], [0], [1], [0, 0, 1, 1], [], []>} : vector<32x32xf32>, vector<32x28xf32>, vector<32x28xf32> -> vector<32x28xf32>
    %cst_152 = arith.constant 2.000000e+00 : f32
    %267 = vector.broadcast %cst_152 : f32 to vector<32x28xf32>
    %268 = arith.mulf %267, %266 : vector<32x28xf32>
    %269 = arith.subf %268, %255 : vector<32x28xf32>
    %c448 = arith.constant 448 : index
    %c0_153 = arith.constant 0 : index
    %270 = vector.load %arg4[%c448, %c0_153] : memref<616x20xf32, #tpu.memory_space<vmem>>, vector<28x20xf32>
    %cst_154 = arith.constant dense<0.000000e+00> : vector<32x20xf32>
    %271 = tpu.matmul %269, %270, %cst_154 {dimension_numbers = #tpu.dot_dimension_numbers<[1], [0], [0], [1], [0, 0, 1, 1], [], []>} : vector<32x28xf32>, vector<28x20xf32>, vector<32x20xf32> -> vector<32x20xf32>
    %272 = arith.addf %265, %271 : vector<32x20xf32>
    %cst_155 = arith.constant dense<0.000000e+00> : vector<32x28xf32>
    %273 = tpu.matmul %9, %269, %cst_155 {dimension_numbers = #tpu.dot_dimension_numbers<[1], [0], [0], [1], [0, 0, 1, 1], [], []>} : vector<32x32xf32>, vector<32x28xf32>, vector<32x28xf32> -> vector<32x28xf32>
    %cst_156 = arith.constant 2.000000e+00 : f32
    %274 = vector.broadcast %cst_156 : f32 to vector<32x28xf32>
    %275 = arith.mulf %274, %273 : vector<32x28xf32>
    %276 = arith.subf %275, %262 : vector<32x28xf32>
    %c476 = arith.constant 476 : index
    %c0_157 = arith.constant 0 : index
    %277 = vector.load %arg4[%c476, %c0_157] : memref<616x20xf32, #tpu.memory_space<vmem>>, vector<28x20xf32>
    %cst_158 = arith.constant dense<0.000000e+00> : vector<32x20xf32>
    %278 = tpu.matmul %276, %277, %cst_158 {dimension_numbers = #tpu.dot_dimension_numbers<[1], [0], [0], [1], [0, 0, 1, 1], [], []>} : vector<32x28xf32>, vector<28x20xf32>, vector<32x20xf32> -> vector<32x20xf32>
    %279 = arith.addf %272, %278 : vector<32x20xf32>
    %cst_159 = arith.constant dense<0.000000e+00> : vector<32x28xf32>
    %280 = tpu.matmul %9, %276, %cst_159 {dimension_numbers = #tpu.dot_dimension_numbers<[1], [0], [0], [1], [0, 0, 1, 1], [], []>} : vector<32x32xf32>, vector<32x28xf32>, vector<32x28xf32> -> vector<32x28xf32>
    %cst_160 = arith.constant 2.000000e+00 : f32
    %281 = vector.broadcast %cst_160 : f32 to vector<32x28xf32>
    %282 = arith.mulf %281, %280 : vector<32x28xf32>
    %283 = arith.subf %282, %269 : vector<32x28xf32>
    %c504 = arith.constant 504 : index
    %c0_161 = arith.constant 0 : index
    %284 = vector.load %arg4[%c504, %c0_161] : memref<616x20xf32, #tpu.memory_space<vmem>>, vector<28x20xf32>
    %cst_162 = arith.constant dense<0.000000e+00> : vector<32x20xf32>
    %285 = tpu.matmul %283, %284, %cst_162 {dimension_numbers = #tpu.dot_dimension_numbers<[1], [0], [0], [1], [0, 0, 1, 1], [], []>} : vector<32x28xf32>, vector<28x20xf32>, vector<32x20xf32> -> vector<32x20xf32>
    %286 = arith.addf %279, %285 : vector<32x20xf32>
    %cst_163 = arith.constant dense<0.000000e+00> : vector<32x28xf32>
    %287 = tpu.matmul %9, %283, %cst_163 {dimension_numbers = #tpu.dot_dimension_numbers<[1], [0], [0], [1], [0, 0, 1, 1], [], []>} : vector<32x32xf32>, vector<32x28xf32>, vector<32x28xf32> -> vector<32x28xf32>
    %cst_164 = arith.constant 2.000000e+00 : f32
    %288 = vector.broadcast %cst_164 : f32 to vector<32x28xf32>
    %289 = arith.mulf %288, %287 : vector<32x28xf32>
    %290 = arith.subf %289, %276 : vector<32x28xf32>
    %c532 = arith.constant 532 : index
    %c0_165 = arith.constant 0 : index
    %291 = vector.load %arg4[%c532, %c0_165] : memref<616x20xf32, #tpu.memory_space<vmem>>, vector<28x20xf32>
    %cst_166 = arith.constant dense<0.000000e+00> : vector<32x20xf32>
    %292 = tpu.matmul %290, %291, %cst_166 {dimension_numbers = #tpu.dot_dimension_numbers<[1], [0], [0], [1], [0, 0, 1, 1], [], []>} : vector<32x28xf32>, vector<28x20xf32>, vector<32x20xf32> -> vector<32x20xf32>
    %293 = arith.addf %286, %292 : vector<32x20xf32>
    %cst_167 = arith.constant dense<0.000000e+00> : vector<32x28xf32>
    %294 = tpu.matmul %9, %290, %cst_167 {dimension_numbers = #tpu.dot_dimension_numbers<[1], [0], [0], [1], [0, 0, 1, 1], [], []>} : vector<32x32xf32>, vector<32x28xf32>, vector<32x28xf32> -> vector<32x28xf32>
    %cst_168 = arith.constant 2.000000e+00 : f32
    %295 = vector.broadcast %cst_168 : f32 to vector<32x28xf32>
    %296 = arith.mulf %295, %294 : vector<32x28xf32>
    %297 = arith.subf %296, %283 : vector<32x28xf32>
    %c560 = arith.constant 560 : index
    %c0_169 = arith.constant 0 : index
    %298 = vector.load %arg4[%c560, %c0_169] : memref<616x20xf32, #tpu.memory_space<vmem>>, vector<28x20xf32>
    %cst_170 = arith.constant dense<0.000000e+00> : vector<32x20xf32>
    %299 = tpu.matmul %297, %298, %cst_170 {dimension_numbers = #tpu.dot_dimension_numbers<[1], [0], [0], [1], [0, 0, 1, 1], [], []>} : vector<32x28xf32>, vector<28x20xf32>, vector<32x20xf32> -> vector<32x20xf32>
    %300 = arith.addf %293, %299 : vector<32x20xf32>
    %cst_171 = arith.constant dense<0.000000e+00> : vector<32x28xf32>
    %301 = tpu.matmul %9, %297, %cst_171 {dimension_numbers = #tpu.dot_dimension_numbers<[1], [0], [0], [1], [0, 0, 1, 1], [], []>} : vector<32x32xf32>, vector<32x28xf32>, vector<32x28xf32> -> vector<32x28xf32>
    %cst_172 = arith.constant 2.000000e+00 : f32
    %302 = vector.broadcast %cst_172 : f32 to vector<32x28xf32>
    %303 = arith.mulf %302, %301 : vector<32x28xf32>
    %304 = arith.subf %303, %290 : vector<32x28xf32>
    %c588 = arith.constant 588 : index
    %c0_173 = arith.constant 0 : index
    %305 = vector.load %arg4[%c588, %c0_173] : memref<616x20xf32, #tpu.memory_space<vmem>>, vector<28x20xf32>
    %cst_174 = arith.constant dense<0.000000e+00> : vector<32x20xf32>
    %306 = tpu.matmul %304, %305, %cst_174 {dimension_numbers = #tpu.dot_dimension_numbers<[1], [0], [0], [1], [0, 0, 1, 1], [], []>} : vector<32x28xf32>, vector<28x20xf32>, vector<32x20xf32> -> vector<32x20xf32>
    %307 = arith.addf %300, %306 : vector<32x20xf32>
    %c0_175 = arith.constant 0 : index
    %c0_176 = arith.constant 0 : index
    %308 = vector.load %arg5[%c0_175, %c0_176] : memref<1x20xf32, #tpu.memory_space<vmem>>, vector<1x20xf32>
    %309 = vector.broadcast %308 : vector<1x20xf32> to vector<32x20xf32>
    %310 = arith.addf %307, %309 : vector<32x20xf32>
    %311 = arith.negf %310 : vector<32x20xf32>
    %312 = math.exp %311 : vector<32x20xf32>
    %cst_177 = arith.constant 1.000000e+00 : f32
    %313 = vector.broadcast %cst_177 : f32 to vector<32x20xf32>
    %314 = arith.addf %313, %312 : vector<32x20xf32>
    %315 = arith.divf %313, %314 : vector<32x20xf32>
    %316 = arith.mulf %310, %315 : vector<32x20xf32>
    %cst_178 = arith.constant dense<0.000000e+00> : vector<32x20xf32>
    %317 = tpu.matmul %0, %316, %cst_178 {dimension_numbers = #tpu.dot_dimension_numbers<[1], [0], [0], [1], [0, 0, 1, 1], [], []>} : vector<32x32xf32>, vector<32x20xf32>, vector<32x20xf32> -> vector<32x20xf32>
    %cst_179 = arith.constant dense<0.000000e+00> : vector<32x20xf32>
    %318 = tpu.matmul %9, %316, %cst_179 {dimension_numbers = #tpu.dot_dimension_numbers<[1], [0], [0], [1], [0, 0, 1, 1], [], []>} : vector<32x32xf32>, vector<32x20xf32>, vector<32x20xf32> -> vector<32x20xf32>
    %cst_180 = arith.constant dense<0.000000e+00> : vector<32x20xf32>
    %319 = tpu.matmul %9, %317, %cst_180 {dimension_numbers = #tpu.dot_dimension_numbers<[1], [0], [0], [1], [0, 0, 1, 1], [], []>} : vector<32x32xf32>, vector<32x20xf32>, vector<32x20xf32> -> vector<32x20xf32>
    %cst_181 = arith.constant 2.000000e+00 : f32
    %320 = vector.broadcast %cst_181 : f32 to vector<32x20xf32>
    %321 = arith.mulf %320, %319 : vector<32x20xf32>
    %322 = arith.subf %321, %317 : vector<32x20xf32>
    %323 = tpu.concatenate %316, %317 in 1 : vector<32x20xf32>, vector<32x20xf32> -> vector<32x40xf32>
    %324 = tpu.concatenate %318, %322 in 1 : vector<32x20xf32>, vector<32x20xf32> -> vector<32x40xf32>
    %325 = tpu.concatenate %323, %324 in 1 : vector<32x40xf32>, vector<32x40xf32> -> vector<32x80xf32>
    %c0_182 = arith.constant 0 : index
    %c0_183 = arith.constant 0 : index
    %326 = vector.load %arg6[%c0_182, %c0_183] : memref<920x27xf32, #tpu.memory_space<vmem>>, vector<80x27xf32>
    %cst_184 = arith.constant dense<0.000000e+00> : vector<32x27xf32>
    %327 = tpu.matmul %325, %326, %cst_184 {dimension_numbers = #tpu.dot_dimension_numbers<[1], [0], [0], [1], [0, 0, 1, 1], [], []>} : vector<32x80xf32>, vector<80x27xf32>, vector<32x27xf32> -> vector<32x27xf32>
    %cst_185 = arith.constant dense<0.000000e+00> : vector<32x40xf32>
    %328 = tpu.matmul %9, %324, %cst_185 {dimension_numbers = #tpu.dot_dimension_numbers<[1], [0], [0], [1], [0, 0, 1, 1], [], []>} : vector<32x32xf32>, vector<32x40xf32>, vector<32x40xf32> -> vector<32x40xf32>
    %cst_186 = arith.constant 2.000000e+00 : f32
    %329 = vector.broadcast %cst_186 : f32 to vector<32x40xf32>
    %330 = arith.mulf %329, %328 : vector<32x40xf32>
    %331 = arith.subf %330, %323 : vector<32x40xf32>
    %c80_187 = arith.constant 80 : index
    %c0_188 = arith.constant 0 : index
    %332 = vector.load %arg6[%c80_187, %c0_188] : memref<920x27xf32, #tpu.memory_space<vmem>>, vector<40x27xf32>
    %cst_189 = arith.constant dense<0.000000e+00> : vector<32x27xf32>
    %333 = tpu.matmul %331, %332, %cst_189 {dimension_numbers = #tpu.dot_dimension_numbers<[1], [0], [0], [1], [0, 0, 1, 1], [], []>} : vector<32x40xf32>, vector<40x27xf32>, vector<32x27xf32> -> vector<32x27xf32>
    %334 = arith.addf %327, %333 : vector<32x27xf32>
    %cst_190 = arith.constant dense<0.000000e+00> : vector<32x40xf32>
    %335 = tpu.matmul %9, %331, %cst_190 {dimension_numbers = #tpu.dot_dimension_numbers<[1], [0], [0], [1], [0, 0, 1, 1], [], []>} : vector<32x32xf32>, vector<32x40xf32>, vector<32x40xf32> -> vector<32x40xf32>
    %cst_191 = arith.constant 2.000000e+00 : f32
    %336 = vector.broadcast %cst_191 : f32 to vector<32x40xf32>
    %337 = arith.mulf %336, %335 : vector<32x40xf32>
    %338 = arith.subf %337, %324 : vector<32x40xf32>
    %c120_192 = arith.constant 120 : index
    %c0_193 = arith.constant 0 : index
    %339 = vector.load %arg6[%c120_192, %c0_193] : memref<920x27xf32, #tpu.memory_space<vmem>>, vector<40x27xf32>
    %cst_194 = arith.constant dense<0.000000e+00> : vector<32x27xf32>
    %340 = tpu.matmul %338, %339, %cst_194 {dimension_numbers = #tpu.dot_dimension_numbers<[1], [0], [0], [1], [0, 0, 1, 1], [], []>} : vector<32x40xf32>, vector<40x27xf32>, vector<32x27xf32> -> vector<32x27xf32>
    %341 = arith.addf %334, %340 : vector<32x27xf32>
    %cst_195 = arith.constant dense<0.000000e+00> : vector<32x40xf32>
    %342 = tpu.matmul %9, %338, %cst_195 {dimension_numbers = #tpu.dot_dimension_numbers<[1], [0], [0], [1], [0, 0, 1, 1], [], []>} : vector<32x32xf32>, vector<32x40xf32>, vector<32x40xf32> -> vector<32x40xf32>
    %cst_196 = arith.constant 2.000000e+00 : f32
    %343 = vector.broadcast %cst_196 : f32 to vector<32x40xf32>
    %344 = arith.mulf %343, %342 : vector<32x40xf32>
    %345 = arith.subf %344, %331 : vector<32x40xf32>
    %c160 = arith.constant 160 : index
    %c0_197 = arith.constant 0 : index
    %346 = vector.load %arg6[%c160, %c0_197] : memref<920x27xf32, #tpu.memory_space<vmem>>, vector<40x27xf32>
    %cst_198 = arith.constant dense<0.000000e+00> : vector<32x27xf32>
    %347 = tpu.matmul %345, %346, %cst_198 {dimension_numbers = #tpu.dot_dimension_numbers<[1], [0], [0], [1], [0, 0, 1, 1], [], []>} : vector<32x40xf32>, vector<40x27xf32>, vector<32x27xf32> -> vector<32x27xf32>
    %348 = arith.addf %341, %347 : vector<32x27xf32>
    %cst_199 = arith.constant dense<0.000000e+00> : vector<32x40xf32>
    %349 = tpu.matmul %9, %345, %cst_199 {dimension_numbers = #tpu.dot_dimension_numbers<[1], [0], [0], [1], [0, 0, 1, 1], [], []>} : vector<32x32xf32>, vector<32x40xf32>, vector<32x40xf32> -> vector<32x40xf32>
    %cst_200 = arith.constant 2.000000e+00 : f32
    %350 = vector.broadcast %cst_200 : f32 to vector<32x40xf32>
    %351 = arith.mulf %350, %349 : vector<32x40xf32>
    %352 = arith.subf %351, %338 : vector<32x40xf32>
    %c200 = arith.constant 200 : index
    %c0_201 = arith.constant 0 : index
    %353 = vector.load %arg6[%c200, %c0_201] : memref<920x27xf32, #tpu.memory_space<vmem>>, vector<40x27xf32>
    %cst_202 = arith.constant dense<0.000000e+00> : vector<32x27xf32>
    %354 = tpu.matmul %352, %353, %cst_202 {dimension_numbers = #tpu.dot_dimension_numbers<[1], [0], [0], [1], [0, 0, 1, 1], [], []>} : vector<32x40xf32>, vector<40x27xf32>, vector<32x27xf32> -> vector<32x27xf32>
    %355 = arith.addf %348, %354 : vector<32x27xf32>
    %cst_203 = arith.constant dense<0.000000e+00> : vector<32x40xf32>
    %356 = tpu.matmul %9, %352, %cst_203 {dimension_numbers = #tpu.dot_dimension_numbers<[1], [0], [0], [1], [0, 0, 1, 1], [], []>} : vector<32x32xf32>, vector<32x40xf32>, vector<32x40xf32> -> vector<32x40xf32>
    %cst_204 = arith.constant 2.000000e+00 : f32
    %357 = vector.broadcast %cst_204 : f32 to vector<32x40xf32>
    %358 = arith.mulf %357, %356 : vector<32x40xf32>
    %359 = arith.subf %358, %345 : vector<32x40xf32>
    %c240 = arith.constant 240 : index
    %c0_205 = arith.constant 0 : index
    %360 = vector.load %arg6[%c240, %c0_205] : memref<920x27xf32, #tpu.memory_space<vmem>>, vector<40x27xf32>
    %cst_206 = arith.constant dense<0.000000e+00> : vector<32x27xf32>
    %361 = tpu.matmul %359, %360, %cst_206 {dimension_numbers = #tpu.dot_dimension_numbers<[1], [0], [0], [1], [0, 0, 1, 1], [], []>} : vector<32x40xf32>, vector<40x27xf32>, vector<32x27xf32> -> vector<32x27xf32>
    %362 = arith.addf %355, %361 : vector<32x27xf32>
    %cst_207 = arith.constant dense<0.000000e+00> : vector<32x40xf32>
    %363 = tpu.matmul %9, %359, %cst_207 {dimension_numbers = #tpu.dot_dimension_numbers<[1], [0], [0], [1], [0, 0, 1, 1], [], []>} : vector<32x32xf32>, vector<32x40xf32>, vector<32x40xf32> -> vector<32x40xf32>
    %cst_208 = arith.constant 2.000000e+00 : f32
    %364 = vector.broadcast %cst_208 : f32 to vector<32x40xf32>
    %365 = arith.mulf %364, %363 : vector<32x40xf32>
    %366 = arith.subf %365, %352 : vector<32x40xf32>
    %c280_209 = arith.constant 280 : index
    %c0_210 = arith.constant 0 : index
    %367 = vector.load %arg6[%c280_209, %c0_210] : memref<920x27xf32, #tpu.memory_space<vmem>>, vector<40x27xf32>
    %cst_211 = arith.constant dense<0.000000e+00> : vector<32x27xf32>
    %368 = tpu.matmul %366, %367, %cst_211 {dimension_numbers = #tpu.dot_dimension_numbers<[1], [0], [0], [1], [0, 0, 1, 1], [], []>} : vector<32x40xf32>, vector<40x27xf32>, vector<32x27xf32> -> vector<32x27xf32>
    %369 = arith.addf %362, %368 : vector<32x27xf32>
    %cst_212 = arith.constant dense<0.000000e+00> : vector<32x40xf32>
    %370 = tpu.matmul %9, %366, %cst_212 {dimension_numbers = #tpu.dot_dimension_numbers<[1], [0], [0], [1], [0, 0, 1, 1], [], []>} : vector<32x32xf32>, vector<32x40xf32>, vector<32x40xf32> -> vector<32x40xf32>
    %cst_213 = arith.constant 2.000000e+00 : f32
    %371 = vector.broadcast %cst_213 : f32 to vector<32x40xf32>
    %372 = arith.mulf %371, %370 : vector<32x40xf32>
    %373 = arith.subf %372, %359 : vector<32x40xf32>
    %c320 = arith.constant 320 : index
    %c0_214 = arith.constant 0 : index
    %374 = vector.load %arg6[%c320, %c0_214] : memref<920x27xf32, #tpu.memory_space<vmem>>, vector<40x27xf32>
    %cst_215 = arith.constant dense<0.000000e+00> : vector<32x27xf32>
    %375 = tpu.matmul %373, %374, %cst_215 {dimension_numbers = #tpu.dot_dimension_numbers<[1], [0], [0], [1], [0, 0, 1, 1], [], []>} : vector<32x40xf32>, vector<40x27xf32>, vector<32x27xf32> -> vector<32x27xf32>
    %376 = arith.addf %369, %375 : vector<32x27xf32>
    %cst_216 = arith.constant dense<0.000000e+00> : vector<32x40xf32>
    %377 = tpu.matmul %9, %373, %cst_216 {dimension_numbers = #tpu.dot_dimension_numbers<[1], [0], [0], [1], [0, 0, 1, 1], [], []>} : vector<32x32xf32>, vector<32x40xf32>, vector<32x40xf32> -> vector<32x40xf32>
    %cst_217 = arith.constant 2.000000e+00 : f32
    %378 = vector.broadcast %cst_217 : f32 to vector<32x40xf32>
    %379 = arith.mulf %378, %377 : vector<32x40xf32>
    %380 = arith.subf %379, %366 : vector<32x40xf32>
    %c360 = arith.constant 360 : index
    %c0_218 = arith.constant 0 : index
    %381 = vector.load %arg6[%c360, %c0_218] : memref<920x27xf32, #tpu.memory_space<vmem>>, vector<40x27xf32>
    %cst_219 = arith.constant dense<0.000000e+00> : vector<32x27xf32>
    %382 = tpu.matmul %380, %381, %cst_219 {dimension_numbers = #tpu.dot_dimension_numbers<[1], [0], [0], [1], [0, 0, 1, 1], [], []>} : vector<32x40xf32>, vector<40x27xf32>, vector<32x27xf32> -> vector<32x27xf32>
    %383 = arith.addf %376, %382 : vector<32x27xf32>
    %cst_220 = arith.constant dense<0.000000e+00> : vector<32x40xf32>
    %384 = tpu.matmul %9, %380, %cst_220 {dimension_numbers = #tpu.dot_dimension_numbers<[1], [0], [0], [1], [0, 0, 1, 1], [], []>} : vector<32x32xf32>, vector<32x40xf32>, vector<32x40xf32> -> vector<32x40xf32>
    %cst_221 = arith.constant 2.000000e+00 : f32
    %385 = vector.broadcast %cst_221 : f32 to vector<32x40xf32>
    %386 = arith.mulf %385, %384 : vector<32x40xf32>
    %387 = arith.subf %386, %373 : vector<32x40xf32>
    %c400 = arith.constant 400 : index
    %c0_222 = arith.constant 0 : index
    %388 = vector.load %arg6[%c400, %c0_222] : memref<920x27xf32, #tpu.memory_space<vmem>>, vector<40x27xf32>
    %cst_223 = arith.constant dense<0.000000e+00> : vector<32x27xf32>
    %389 = tpu.matmul %387, %388, %cst_223 {dimension_numbers = #tpu.dot_dimension_numbers<[1], [0], [0], [1], [0, 0, 1, 1], [], []>} : vector<32x40xf32>, vector<40x27xf32>, vector<32x27xf32> -> vector<32x27xf32>
    %390 = arith.addf %383, %389 : vector<32x27xf32>
    %cst_224 = arith.constant dense<0.000000e+00> : vector<32x40xf32>
    %391 = tpu.matmul %9, %387, %cst_224 {dimension_numbers = #tpu.dot_dimension_numbers<[1], [0], [0], [1], [0, 0, 1, 1], [], []>} : vector<32x32xf32>, vector<32x40xf32>, vector<32x40xf32> -> vector<32x40xf32>
    %cst_225 = arith.constant 2.000000e+00 : f32
    %392 = vector.broadcast %cst_225 : f32 to vector<32x40xf32>
    %393 = arith.mulf %392, %391 : vector<32x40xf32>
    %394 = arith.subf %393, %380 : vector<32x40xf32>
    %c440 = arith.constant 440 : index
    %c0_226 = arith.constant 0 : index
    %395 = vector.load %arg6[%c440, %c0_226] : memref<920x27xf32, #tpu.memory_space<vmem>>, vector<40x27xf32>
    %cst_227 = arith.constant dense<0.000000e+00> : vector<32x27xf32>
    %396 = tpu.matmul %394, %395, %cst_227 {dimension_numbers = #tpu.dot_dimension_numbers<[1], [0], [0], [1], [0, 0, 1, 1], [], []>} : vector<32x40xf32>, vector<40x27xf32>, vector<32x27xf32> -> vector<32x27xf32>
    %397 = arith.addf %390, %396 : vector<32x27xf32>
    %cst_228 = arith.constant dense<0.000000e+00> : vector<32x40xf32>
    %398 = tpu.matmul %9, %394, %cst_228 {dimension_numbers = #tpu.dot_dimension_numbers<[1], [0], [0], [1], [0, 0, 1, 1], [], []>} : vector<32x32xf32>, vector<32x40xf32>, vector<32x40xf32> -> vector<32x40xf32>
    %cst_229 = arith.constant 2.000000e+00 : f32
    %399 = vector.broadcast %cst_229 : f32 to vector<32x40xf32>
    %400 = arith.mulf %399, %398 : vector<32x40xf32>
    %401 = arith.subf %400, %387 : vector<32x40xf32>
    %c480 = arith.constant 480 : index
    %c0_230 = arith.constant 0 : index
    %402 = vector.load %arg6[%c480, %c0_230] : memref<920x27xf32, #tpu.memory_space<vmem>>, vector<40x27xf32>
    %cst_231 = arith.constant dense<0.000000e+00> : vector<32x27xf32>
    %403 = tpu.matmul %401, %402, %cst_231 {dimension_numbers = #tpu.dot_dimension_numbers<[1], [0], [0], [1], [0, 0, 1, 1], [], []>} : vector<32x40xf32>, vector<40x27xf32>, vector<32x27xf32> -> vector<32x27xf32>
    %404 = arith.addf %397, %403 : vector<32x27xf32>
    %cst_232 = arith.constant dense<0.000000e+00> : vector<32x40xf32>
    %405 = tpu.matmul %9, %401, %cst_232 {dimension_numbers = #tpu.dot_dimension_numbers<[1], [0], [0], [1], [0, 0, 1, 1], [], []>} : vector<32x32xf32>, vector<32x40xf32>, vector<32x40xf32> -> vector<32x40xf32>
    %cst_233 = arith.constant 2.000000e+00 : f32
    %406 = vector.broadcast %cst_233 : f32 to vector<32x40xf32>
    %407 = arith.mulf %406, %405 : vector<32x40xf32>
    %408 = arith.subf %407, %394 : vector<32x40xf32>
    %c520 = arith.constant 520 : index
    %c0_234 = arith.constant 0 : index
    %409 = vector.load %arg6[%c520, %c0_234] : memref<920x27xf32, #tpu.memory_space<vmem>>, vector<40x27xf32>
    %cst_235 = arith.constant dense<0.000000e+00> : vector<32x27xf32>
    %410 = tpu.matmul %408, %409, %cst_235 {dimension_numbers = #tpu.dot_dimension_numbers<[1], [0], [0], [1], [0, 0, 1, 1], [], []>} : vector<32x40xf32>, vector<40x27xf32>, vector<32x27xf32> -> vector<32x27xf32>
    %411 = arith.addf %404, %410 : vector<32x27xf32>
    %cst_236 = arith.constant dense<0.000000e+00> : vector<32x40xf32>
    %412 = tpu.matmul %9, %408, %cst_236 {dimension_numbers = #tpu.dot_dimension_numbers<[1], [0], [0], [1], [0, 0, 1, 1], [], []>} : vector<32x32xf32>, vector<32x40xf32>, vector<32x40xf32> -> vector<32x40xf32>
    %cst_237 = arith.constant 2.000000e+00 : f32
    %413 = vector.broadcast %cst_237 : f32 to vector<32x40xf32>
    %414 = arith.mulf %413, %412 : vector<32x40xf32>
    %415 = arith.subf %414, %401 : vector<32x40xf32>
    %c560_238 = arith.constant 560 : index
    %c0_239 = arith.constant 0 : index
    %416 = vector.load %arg6[%c560_238, %c0_239] : memref<920x27xf32, #tpu.memory_space<vmem>>, vector<40x27xf32>
    %cst_240 = arith.constant dense<0.000000e+00> : vector<32x27xf32>
    %417 = tpu.matmul %415, %416, %cst_240 {dimension_numbers = #tpu.dot_dimension_numbers<[1], [0], [0], [1], [0, 0, 1, 1], [], []>} : vector<32x40xf32>, vector<40x27xf32>, vector<32x27xf32> -> vector<32x27xf32>
    %418 = arith.addf %411, %417 : vector<32x27xf32>
    %cst_241 = arith.constant dense<0.000000e+00> : vector<32x40xf32>
    %419 = tpu.matmul %9, %415, %cst_241 {dimension_numbers = #tpu.dot_dimension_numbers<[1], [0], [0], [1], [0, 0, 1, 1], [], []>} : vector<32x32xf32>, vector<32x40xf32>, vector<32x40xf32> -> vector<32x40xf32>
    %cst_242 = arith.constant 2.000000e+00 : f32
    %420 = vector.broadcast %cst_242 : f32 to vector<32x40xf32>
    %421 = arith.mulf %420, %419 : vector<32x40xf32>
    %422 = arith.subf %421, %408 : vector<32x40xf32>
    %c600 = arith.constant 600 : index
    %c0_243 = arith.constant 0 : index
    %423 = vector.load %arg6[%c600, %c0_243] : memref<920x27xf32, #tpu.memory_space<vmem>>, vector<40x27xf32>
    %cst_244 = arith.constant dense<0.000000e+00> : vector<32x27xf32>
    %424 = tpu.matmul %422, %423, %cst_244 {dimension_numbers = #tpu.dot_dimension_numbers<[1], [0], [0], [1], [0, 0, 1, 1], [], []>} : vector<32x40xf32>, vector<40x27xf32>, vector<32x27xf32> -> vector<32x27xf32>
    %425 = arith.addf %418, %424 : vector<32x27xf32>
    %cst_245 = arith.constant dense<0.000000e+00> : vector<32x40xf32>
    %426 = tpu.matmul %9, %422, %cst_245 {dimension_numbers = #tpu.dot_dimension_numbers<[1], [0], [0], [1], [0, 0, 1, 1], [], []>} : vector<32x32xf32>, vector<32x40xf32>, vector<32x40xf32> -> vector<32x40xf32>
    %cst_246 = arith.constant 2.000000e+00 : f32
    %427 = vector.broadcast %cst_246 : f32 to vector<32x40xf32>
    %428 = arith.mulf %427, %426 : vector<32x40xf32>
    %429 = arith.subf %428, %415 : vector<32x40xf32>
    %c640 = arith.constant 640 : index
    %c0_247 = arith.constant 0 : index
    %430 = vector.load %arg6[%c640, %c0_247] : memref<920x27xf32, #tpu.memory_space<vmem>>, vector<40x27xf32>
    %cst_248 = arith.constant dense<0.000000e+00> : vector<32x27xf32>
    %431 = tpu.matmul %429, %430, %cst_248 {dimension_numbers = #tpu.dot_dimension_numbers<[1], [0], [0], [1], [0, 0, 1, 1], [], []>} : vector<32x40xf32>, vector<40x27xf32>, vector<32x27xf32> -> vector<32x27xf32>
    %432 = arith.addf %425, %431 : vector<32x27xf32>
    %cst_249 = arith.constant dense<0.000000e+00> : vector<32x40xf32>
    %433 = tpu.matmul %9, %429, %cst_249 {dimension_numbers = #tpu.dot_dimension_numbers<[1], [0], [0], [1], [0, 0, 1, 1], [], []>} : vector<32x32xf32>, vector<32x40xf32>, vector<32x40xf32> -> vector<32x40xf32>
    %cst_250 = arith.constant 2.000000e+00 : f32
    %434 = vector.broadcast %cst_250 : f32 to vector<32x40xf32>
    %435 = arith.mulf %434, %433 : vector<32x40xf32>
    %436 = arith.subf %435, %422 : vector<32x40xf32>
    %c680 = arith.constant 680 : index
    %c0_251 = arith.constant 0 : index
    %437 = vector.load %arg6[%c680, %c0_251] : memref<920x27xf32, #tpu.memory_space<vmem>>, vector<40x27xf32>
    %cst_252 = arith.constant dense<0.000000e+00> : vector<32x27xf32>
    %438 = tpu.matmul %436, %437, %cst_252 {dimension_numbers = #tpu.dot_dimension_numbers<[1], [0], [0], [1], [0, 0, 1, 1], [], []>} : vector<32x40xf32>, vector<40x27xf32>, vector<32x27xf32> -> vector<32x27xf32>
    %439 = arith.addf %432, %438 : vector<32x27xf32>
    %cst_253 = arith.constant dense<0.000000e+00> : vector<32x40xf32>
    %440 = tpu.matmul %9, %436, %cst_253 {dimension_numbers = #tpu.dot_dimension_numbers<[1], [0], [0], [1], [0, 0, 1, 1], [], []>} : vector<32x32xf32>, vector<32x40xf32>, vector<32x40xf32> -> vector<32x40xf32>
    %cst_254 = arith.constant 2.000000e+00 : f32
    %441 = vector.broadcast %cst_254 : f32 to vector<32x40xf32>
    %442 = arith.mulf %441, %440 : vector<32x40xf32>
    %443 = arith.subf %442, %429 : vector<32x40xf32>
    %c720 = arith.constant 720 : index
    %c0_255 = arith.constant 0 : index
    %444 = vector.load %arg6[%c720, %c0_255] : memref<920x27xf32, #tpu.memory_space<vmem>>, vector<40x27xf32>
    %cst_256 = arith.constant dense<0.000000e+00> : vector<32x27xf32>
    %445 = tpu.matmul %443, %444, %cst_256 {dimension_numbers = #tpu.dot_dimension_numbers<[1], [0], [0], [1], [0, 0, 1, 1], [], []>} : vector<32x40xf32>, vector<40x27xf32>, vector<32x27xf32> -> vector<32x27xf32>
    %446 = arith.addf %439, %445 : vector<32x27xf32>
    %cst_257 = arith.constant dense<0.000000e+00> : vector<32x40xf32>
    %447 = tpu.matmul %9, %443, %cst_257 {dimension_numbers = #tpu.dot_dimension_numbers<[1], [0], [0], [1], [0, 0, 1, 1], [], []>} : vector<32x32xf32>, vector<32x40xf32>, vector<32x40xf32> -> vector<32x40xf32>
    %cst_258 = arith.constant 2.000000e+00 : f32
    %448 = vector.broadcast %cst_258 : f32 to vector<32x40xf32>
    %449 = arith.mulf %448, %447 : vector<32x40xf32>
    %450 = arith.subf %449, %436 : vector<32x40xf32>
    %c760 = arith.constant 760 : index
    %c0_259 = arith.constant 0 : index
    %451 = vector.load %arg6[%c760, %c0_259] : memref<920x27xf32, #tpu.memory_space<vmem>>, vector<40x27xf32>
    %cst_260 = arith.constant dense<0.000000e+00> : vector<32x27xf32>
    %452 = tpu.matmul %450, %451, %cst_260 {dimension_numbers = #tpu.dot_dimension_numbers<[1], [0], [0], [1], [0, 0, 1, 1], [], []>} : vector<32x40xf32>, vector<40x27xf32>, vector<32x27xf32> -> vector<32x27xf32>
    %453 = arith.addf %446, %452 : vector<32x27xf32>
    %cst_261 = arith.constant dense<0.000000e+00> : vector<32x40xf32>
    %454 = tpu.matmul %9, %450, %cst_261 {dimension_numbers = #tpu.dot_dimension_numbers<[1], [0], [0], [1], [0, 0, 1, 1], [], []>} : vector<32x32xf32>, vector<32x40xf32>, vector<32x40xf32> -> vector<32x40xf32>
    %cst_262 = arith.constant 2.000000e+00 : f32
    %455 = vector.broadcast %cst_262 : f32 to vector<32x40xf32>
    %456 = arith.mulf %455, %454 : vector<32x40xf32>
    %457 = arith.subf %456, %443 : vector<32x40xf32>
    %c800 = arith.constant 800 : index
    %c0_263 = arith.constant 0 : index
    %458 = vector.load %arg6[%c800, %c0_263] : memref<920x27xf32, #tpu.memory_space<vmem>>, vector<40x27xf32>
    %cst_264 = arith.constant dense<0.000000e+00> : vector<32x27xf32>
    %459 = tpu.matmul %457, %458, %cst_264 {dimension_numbers = #tpu.dot_dimension_numbers<[1], [0], [0], [1], [0, 0, 1, 1], [], []>} : vector<32x40xf32>, vector<40x27xf32>, vector<32x27xf32> -> vector<32x27xf32>
    %460 = arith.addf %453, %459 : vector<32x27xf32>
    %cst_265 = arith.constant dense<0.000000e+00> : vector<32x40xf32>
    %461 = tpu.matmul %9, %457, %cst_265 {dimension_numbers = #tpu.dot_dimension_numbers<[1], [0], [0], [1], [0, 0, 1, 1], [], []>} : vector<32x32xf32>, vector<32x40xf32>, vector<32x40xf32> -> vector<32x40xf32>
    %cst_266 = arith.constant 2.000000e+00 : f32
    %462 = vector.broadcast %cst_266 : f32 to vector<32x40xf32>
    %463 = arith.mulf %462, %461 : vector<32x40xf32>
    %464 = arith.subf %463, %450 : vector<32x40xf32>
    %c840 = arith.constant 840 : index
    %c0_267 = arith.constant 0 : index
    %465 = vector.load %arg6[%c840, %c0_267] : memref<920x27xf32, #tpu.memory_space<vmem>>, vector<40x27xf32>
    %cst_268 = arith.constant dense<0.000000e+00> : vector<32x27xf32>
    %466 = tpu.matmul %464, %465, %cst_268 {dimension_numbers = #tpu.dot_dimension_numbers<[1], [0], [0], [1], [0, 0, 1, 1], [], []>} : vector<32x40xf32>, vector<40x27xf32>, vector<32x27xf32> -> vector<32x27xf32>
    %467 = arith.addf %460, %466 : vector<32x27xf32>
    %cst_269 = arith.constant dense<0.000000e+00> : vector<32x40xf32>
    %468 = tpu.matmul %9, %464, %cst_269 {dimension_numbers = #tpu.dot_dimension_numbers<[1], [0], [0], [1], [0, 0, 1, 1], [], []>} : vector<32x32xf32>, vector<32x40xf32>, vector<32x40xf32> -> vector<32x40xf32>
    %cst_270 = arith.constant 2.000000e+00 : f32
    %469 = vector.broadcast %cst_270 : f32 to vector<32x40xf32>
    %470 = arith.mulf %469, %468 : vector<32x40xf32>
    %471 = arith.subf %470, %457 : vector<32x40xf32>
    %c880 = arith.constant 880 : index
    %c0_271 = arith.constant 0 : index
    %472 = vector.load %arg6[%c880, %c0_271] : memref<920x27xf32, #tpu.memory_space<vmem>>, vector<40x27xf32>
    %cst_272 = arith.constant dense<0.000000e+00> : vector<32x27xf32>
    %473 = tpu.matmul %471, %472, %cst_272 {dimension_numbers = #tpu.dot_dimension_numbers<[1], [0], [0], [1], [0, 0, 1, 1], [], []>} : vector<32x40xf32>, vector<40x27xf32>, vector<32x27xf32> -> vector<32x27xf32>
    %474 = arith.addf %467, %473 : vector<32x27xf32>
    %c0_273 = arith.constant 0 : index
    %c0_274 = arith.constant 0 : index
    %475 = vector.load %arg7[%c0_273, %c0_274] : memref<1x27xf32, #tpu.memory_space<vmem>>, vector<1x27xf32>
    %476 = vector.broadcast %475 : vector<1x27xf32> to vector<32x27xf32>
    %477 = arith.addf %474, %476 : vector<32x27xf32>
    %478 = arith.negf %477 : vector<32x27xf32>
    %479 = math.exp %478 : vector<32x27xf32>
    %cst_275 = arith.constant 1.000000e+00 : f32
    %480 = vector.broadcast %cst_275 : f32 to vector<32x27xf32>
    %481 = arith.addf %480, %479 : vector<32x27xf32>
    %482 = arith.divf %480, %481 : vector<32x27xf32>
    %483 = arith.mulf %477, %482 : vector<32x27xf32>
    %c0_276 = arith.constant 0 : index
    %c0_277 = arith.constant 0 : index
    %484 = vector.load %arg8[%c0_276, %c0_277] : memref<27x2xf32, #tpu.memory_space<vmem>>, vector<27x2xf32>
    %cst_278 = arith.constant dense<0.000000e+00> : vector<32x2xf32>
    %485 = tpu.matmul %483, %484, %cst_278 {dimension_numbers = #tpu.dot_dimension_numbers<[1], [0], [0], [1], [0, 0, 1, 1], [], []>} : vector<32x27xf32>, vector<27x2xf32>, vector<32x2xf32> -> vector<32x2xf32>
    %486 = arith.negf %485 : vector<32x2xf32>
    %487 = math.exp %486 : vector<32x2xf32>
    %cst_279 = arith.constant 1.000000e+00 : f32
    %488 = vector.broadcast %cst_279 : f32 to vector<32x2xf32>
    %489 = arith.addf %488, %487 : vector<32x2xf32>
    %490 = arith.divf %488, %489 : vector<32x2xf32>
    %c0_280 = arith.constant 0 : index
    %c0_281 = arith.constant 0 : index
    %491 = vector.load %arg9[%c0_280, %c0_281] : memref<32x2xf32, #tpu.memory_space<vmem>>, vector<32x2xf32>
    tpu.vector_store %arg9[%c0_280, %c0_281], %490 {strides = array<i32>} : memref<32x2xf32, #tpu.memory_space<vmem>>, vector<32x2xf32>,
    return
  }
}

</mosaic_0001>

<bundles_post_ra>
// kernel: chebnet_forward.1
= control target key start
LH: loop header
LB: loop body
LE: loop exit
PB: predicated region body
PF: predicated region fallthrough
CT: control target
= control target key end

     0   :  { %vm55_vm0 = vcmask 261120   ;;  %v36_v12 = vlaneseq  ;;  %v18099_v18 = vmov 0.0   ;;  %vm456_vm5 = vcmask 31744   ;;  %s18101_s25 = smov 8   ;;  %s18102_s30 = smov 14   ;;  %s20713_s0 = inlined_call_operand.vmem [shape: f32[32,32], index: 0, kind: input, shape index: {}]   ;;  %s20714_s1 = inlined_call_operand.vmem [shape: f32[32,4], index: 1, kind: input, shape index: {}]   ;;  %s20715_s2 = inlined_call_operand.vmem [shape: f32[160,14], index: 2, kind: input, shape index: {}]   ;;  %s20716_s3 = inlined_call_operand.vmem [shape: f32[1,14], index: 3, kind: input, shape index: {}]   ;;  %s20717_s4 = inlined_call_operand.vmem [shape: f32[616,20], index: 4, kind: input, shape index: {}]   ;;  %s20718_s5 = inlined_call_operand.vmem [shape: f32[1,20], index: 5, kind: input, shape index: {}]   ;;  %s20719_s6 = inlined_call_operand.vmem [shape: f32[920,27], index: 6, kind: input, shape index: {}]   ;;  %s20720_s8 = inlined_call_operand.vmem [shape: f32[27,2], index: 8, kind: input, shape index: {}]   ;;  %s20721_s7 = inlined_call_operand.vmem [shape: f32[1,27], index: 7, kind: input, shape index: {}]   ;;  %s20722_s9 = inlined_call_operand.vmem [shape: f32[32,2], index: 9, kind: output, shape index: {}]  }
   0x1   :  { %v32_v0 = vld [vmem:[%s20713_s0] sm:$0xff]  ;;  %v33_v1 = vld [vmem:[%s20713_s0 + $0x8] sm:$0xff]  ;;  %v34_v5 = vld [vmem:[%s20713_s0 + $0x10] sm:$0xff]  ;;  %vm497_vm6 = vcmask 64512   ;;  %vm695_vm7 = vcmask 130048   ;;  %vm4426_vm8 = vcmask 113664  }
   0x2   :  { %v18166_v2 = vld [vmem:[%s20714_s1] sm:$0xff]  ;;  %v16817_v3 = vpack.c.bf16 %v33_v1, %v32_v0  ;;  %v18171_v4 = vld [vmem:[%s20714_s1 + $0x8] sm:$0xff]  ;;  %v35_v6 = vld [vmem:[%s20713_s0 + $0x18] sm:$0xff]  ;;  %15029 = vmatprep.mubr.msk.f32.mxu0 %vm55_vm0, %v32_v0  ;;  %15043 = vmatprep.mubr.msk.f32.mxu1 %vm55_vm0, %v32_v0  ;;  %v37_v13 = vshrl.u32 %v36_v12, 7  ;;  %v42_v15 = vand.u32 127, %v36_v12  ;;  %s18103_s14 = smov 28  }
   0x3   :  { %v16825_v7 = vpack.c.bf16 %v18171_v4, %v18166_v2  ;;  %v16821_v8 = vpack.c.bf16 %v35_v6, %v34_v5  ;;  %v18186_v9 = vld [vmem:[%s20714_s1 + $0x10] sm:$0xff]  ;;  %v18191_v10 = vld [vmem:[%s20714_s1 + $0x18] sm:$0xff]  ;;  %s18100_s1 = smov 4   ;;  %vm4588_vm9 = vcmask 1043456   ;;  %vm18104_vm10 = vmmov 1   ;;  %s18106_s24 = smov 40  }
   0x4   :  { %16818 = vmatprep.subr.bf16.mxu0 %v16817_v3  ;;  %v16829_v11 = vpack.c.bf16 %v18191_v10, %v18186_v9  ;;  %v38_v14 = vadd.s32 8, %v37_v13  ;;  %v40_v16 = vadd.s32 24, %v37_v13  ;;  %vm43_vm2 = vcmp.eq.s32.totalorder %v37_v13, %v42_v15  ;;  %vm18666_vm11 = vmpackc.low %vm4588_vm9, %vm18104_vm10 }
   0x5   :  { %16826 = vmatprep.subr.bf16.mxu1 %v16825_v7  ;;  %16820 = vmatpush3.bf16.msra.mxu0 %v16817_v3  ;;  %v39_v17 = vadd.s32 16, %v37_v13  ;;  %v13419_v23 = vsel %vm43_vm2, 1.0, %v18099_v18  ;;  %vm4467_vm12 = vcmask 228352   ;;  %vm4677_vm13 = vcmask 457728  }
   0x6   :  { %16828 = vmatpush3.bf16.msra.mxu1 %v16825_v7  ;;  %16822 = vmatprep.subr.bf16.mxu0 %v16821_v8  ;;  %vm44_vm1 = vcmp.eq.s32.totalorder %v38_v14, %v42_v15  ;;  %vm46_vm3 = vcmp.eq.s32.totalorder %v40_v16, %v42_v15  ;;  %vm8912_vm14 = vcmask 162816   ;;  %vm8953_vm15 = vcmask 326656  }
   0x7   :  { %16830 = vmatprep.subr.bf16.mxu1 %v16829_v11  ;;  %v13420_v19 = vsel %vm44_vm1, 1.0, %v18099_v18  ;;  %vm45_vm4 = vcmp.eq.s32.totalorder %v39_v17, %v42_v15  ;;  %v13422_v30 = vsel %vm46_vm3, 1.0, %v18099_v18  ;;  %vm9163_vm1 = vcmask 654336  }
   0x8   :  { %v13421_v34 = vsel %vm45_vm4, 1.0, %v18099_v18  ;;  %vm13284_vm3 = vcmask 220160   ;;  %vm13410_vm4 = vcmask 15360  }
   0x9   :  { %16824 = vmatpush3.bf16.msra.mxu0 %v16821_v8 }
   0xa   :  { %16832 = vmatpush3.bf16.msra.mxu1 %v16829_v11  ;;  %16834 = vmatprep.subr.bf16.mxu0 %v16825_v7 }
   0xc   :  { %15030 = vmatmul.mubr.msk.f32.vlgmr.msra.gmra.mrb[0].mxu0 %vm55_vm0, %v33_v1 }
   0xd   :  { %15044 = vmatmul.mubr.msk.f32.vlgmr.msra.gmra.mrb[0].mxu1 %vm55_vm0, %v33_v1  ;;  %15032 = vmatprep.mubr.msk.f32.mxu0 %vm55_vm0, %v34_v5 }
   0xe   :  { %15046 = vmatprep.mubr.msk.f32.mxu1 %vm55_vm0, %v34_v5  ;;  %16836 = vmatpush3.bf16.msra.mxu0 %v16825_v7  ;;  %v597_v5 = vld [vmem:[%s20715_s2 + $0x10] sm:$0xff]  ;;  %v503_v7 = vld [vmem:[%s20715_s2 + $0x8] sm:$0xff] }
   0xf   :  { %16838 = vmatprep.subr.bf16.mxu0 %v16829_v11 }
  0x10   :  { %15033 = vmatmul.mubr.msk.f32.gmra.mrb[2].mxu0 %vm55_vm0, %v35_v6 }
  0x11   :  { %15047 = vmatmul.mubr.msk.f32.gmra.mrb[2].mxu1 %vm55_vm0, %v35_v6  ;;  %v502_v6 = vld [vmem:[%s20715_s2] sm:$0xff] }
  0x12   :  { %16840 = vmatpush3.bf16.msra.mxu0 %v16829_v11  ;;  %v16857_v8 = vpack.c.bf16 %v503_v7, %v502_v6 }
  0xdf   :  { %v15031_v20 = vpop.f32.mrb[0].mxu0 }
  0xe0   :  { %v154_v21 = vmul.f32 2.0, %v15031_v20  ;;  %v15045_v22 = vpop.f32.mrb[0].mxu1  ;;  %v134_v24 = vpop.f32.mrb[1].mxu0 }
  0xe1   :  { %v153_v25 = vmul.f32 2.0, %v134_v24  ;;  %v231_v26 = vpop.f32.mrb[1].mxu1 }
  0xe2   :  { %v18201_v27 = vsub.f32 %v154_v21, %v13420_v19  ;;  %v16841_v28 = vpack.c.bf16 %v15045_v22, %v231_v26 }
  0xe3   :  { %v18203_v29 = vsub.f32 %v153_v25, %v13419_v23  ;;  %v15034_v31 = vpop.f32.mrb[2].mxu0 }
  0xe4   :  { %v156_v32 = vmul.f32 2.0, %v15034_v31  ;;  %v15048_v33 = vpop.f32.mrb[2].mxu1  ;;  %16842 = vmatprep.subr.bf16.mxu1 %v16841_v28  ;;  %v144_v35 = vpop.f32.mrb[3].mxu0 }
  0xe5   :  { %v155_v36 = vmul.f32 2.0, %v144_v35  ;;  %v241_v37 = vpop.f32.mrb[3].mxu1  ;;  %16844 = vmatpush3.bf16.msra.mxu1 %v16841_v28  ;;  %15057 = vmatprep.mubr.msk.f32.mxu0 %vm55_vm0, %v18203_v29 }
  0xe6   :  { %v18207_v38 = vsub.f32 %v156_v32, %v13422_v30  ;;  %v16845_v39 = vpack.c.bf16 %v15048_v33, %v241_v37  ;;  %15058 = vmatmul.mubr.msk.f32.vlgmr.msra.gmra.mrb[4].mxu0 %vm55_vm0, %v18201_v27  ;;  %15071 = vmatprep.mubr.msk.f32.mxu1 %vm55_vm0, %v18203_v29 }
  0xe7   :  { %v18213_v40 = vsub.f32 %v155_v36, %v13421_v34 }
  0xe8   :  { %16846 = vmatprep.subr.bf16.mxu1 %v16845_v39 }
  0xe9   :  { %16848 = vmatpush3.bf16.msra.mxu1 %v16845_v39  ;;  %15060 = vmatprep.mubr.msk.f32.mxu0 %vm55_vm0, %v18213_v40 }
  0xea   :  { %15061 = vmatmul.mubr.msk.f32.gmra.mrb[6].mxu0 %vm55_vm0, %v18207_v38  ;;  %15091 = vmatprep.subr.mxu1 %v597_v5 }
  0xeb   :  { %15085 = vmatprep.mubr.msk.f32.mxu0 %vm55_vm0, %v18203_v29 }
  0xec   :  { %15072 = vmatmul.mubr.msk.f32.vlgmr.msra.gmra.mrb[4].mxu1 %vm55_vm0, %v18201_v27 }
  0xed   :  { %15074 = vmatprep.mubr.msk.f32.mxu1 %vm55_vm0, %v18213_v40  ;;  %15092 = vmatpush3.msra.mxu1 %v597_v5 }
  0xee   :  { %16858 = vmatprep.subr.bf16.mxu1 %v16857_v8 }
  0xf0   :  { %15075 = vmatmul.mubr.msk.f32.gmra.mrb[6].mxu1 %vm55_vm0, %v18207_v38 }
 0x1b9   :  { %v15059_v41 = vpop.f32.mrb[4].mxu0 }
 0x1ba   :  { %v328_v42 = vpop.f32.mrb[5].mxu0 }
 0x1bd   :  { %v15062_v43 = vpop.f32.mrb[6].mxu0 }
 0x1be   :  { %v338_v44 = vpop.f32.mrb[7].mxu0 }
 0x1bf   :  { %v15073_v45 = vpop.f32.mrb[4].mxu1 }
 0x1c0   :  { %v433_v46 = vmul.f32 2.0, %v15073_v45  ;;  %v413_v47 = vpop.f32.mrb[5].mxu1 }
 0x1c1   :  { %v432_v48 = vmul.f32 2.0, %v413_v47 }
 0x1c2   :  { %v437_v49 = vsub.f32 %v433_v46, %v15045_v22 }
 0x1c3   :  { %v15076_v50 = vpop.f32.mrb[6].mxu1  ;;  %v436_v51 = vsub.f32 %v432_v48, %v231_v26 }
 0x1c4   :  { %v435_v52 = vmul.f32 2.0, %v15076_v50  ;;  %v423_v53 = vpop.f32.mrb[7].mxu1 }
 0x1c5   :  { %v434_v54 = vmul.f32 2.0, %v423_v53  ;;  %465 = vrot.lane.b32.xlu0 %v436_v51, %s18100_s1 }
 0x1c6   :  { %v439_v55 = vsub.f32 %v435_v52, %v15048_v33 }
 0x1c7   :  { %v438_v56 = vsub.f32 %v434_v54, %v241_v37 }
 0x1c9   :  { %467 = vrot.lane.b32.xlu0 %v437_v49, %s18100_s1  ;;  %469 = vrot.lane.b32.xlu1 %v438_v56, %s18100_s1  ;;  %v1081_v56 = vld [vmem:[%s20715_s2 + $0x20] sm:$0xff] }
 0x1cd   :  { %444 = vrot.lane.b32.xlu0 %v231_v26, %s18100_s1  ;;  %471 = vrot.lane.b32.xlu1 %v439_v55, %s18100_s1 }
 0x1d1   :  { %448 = vrot.lane.b32.xlu0 %v241_v37, %s18100_s1  ;;  %446 = vrot.lane.b32.xlu1 %v15045_v22, %s18100_s1 }
 0x1d5   :  { %450 = vrot.lane.b32.xlu1 %v15048_v33, %s18100_s1 }
 0x237   :  { %v466_v57 = vpop.permute.xlu0 %465 }
 0x238   :  { %v18228_v58 = vsel %vm456_vm5, %v328_v42, %v466_v57 }
 0x239   :  { %485 = vrot.lane.b32.xlu0 %v18228_v58, %s18101_s25 }
 0x23b   :  { %v468_v59 = vpop.permute.xlu0 %467  ;;  %v470_v60 = vpop.permute.xlu1 %469 }
 0x23c   :  { %v18232_v61 = vsel %vm456_vm5, %v15059_v41, %v468_v59  ;;  %v18235_v62 = vsel %vm456_vm5, %v338_v44, %v470_v60  ;;  %v886_v41 = vld [vmem:[%s20715_s2 + $0x18] sm:$0xff] }
 0x23d   :  { %487 = vrot.lane.b32.xlu1 %v18232_v61, %s18101_s25  ;;  %489 = vrot.lane.b32.xlu0 %v18235_v62, %s18101_s25  ;;  %v16849_v63 = vpack.c.bf16 %v18232_v61, %v18228_v58 }
 0x23f   :  { %16850 = vmatprep.subr.bf16.mxu0 %v16849_v63  ;;  %v472_v0 = vpop.permute.xlu1 %471  ;;  %v445_v11 = vpop.permute.xlu0 %444 }
 0x240   :  { %16852 = vmatpush3.bf16.msra.mxu0 %v16849_v63  ;;  %v18242_v1 = vsel %vm456_vm5, %v15062_v43, %v472_v0  ;;  %v457_v19 = vsel %vm456_vm5, %v18166_v2, %v445_v11  ;;  %v1276_v11 = vld [vmem:[%s20715_s2 + $0x28] sm:$0xff] }
 0x241   :  { %491 = vrot.lane.b32.xlu1 %v18242_v1, %s18101_s25  ;;  %v16853_v3 = vpack.c.bf16 %v18242_v1, %v18235_v62 }
 0x243   :  { %16854 = vmatprep.subr.bf16.mxu0 %v16853_v3  ;;  %v447_v12 = vpop.permute.xlu1 %446  ;;  %v449_v16 = vpop.permute.xlu0 %448 }
 0x244   :  { %16856 = vmatpush3.bf16.msra.mxu0 %v16853_v3  ;;  %v458_v17 = vsel %vm456_vm5, %v18171_v4, %v447_v12  ;;  %v459_v4 = vsel %vm456_vm5, %v18186_v9, %v449_v16 }
 0x247   :  { %15086 = vmatmul.mubr.msk.f32.vlgmr.msra.gmra.mrb[8].mxu0 %vm55_vm0, %v18201_v27  ;;  %v451_v20 = vpop.permute.xlu1 %450 }
 0x248   :  { %15088 = vmatprep.mubr.msk.f32.mxu0 %vm55_vm0, %v18213_v40  ;;  %v460_v26 = vsel %vm456_vm5, %v18191_v10, %v451_v20 }
 0x24b   :  { %15089 = vmatmul.mubr.msk.f32.gmra.mrb[10].mxu0 %vm55_vm0, %v18207_v38 }
 0x24c   :  { %15117 = vmatprep.mubr.msk.f32.mxu0 %vm55_vm0, %v18203_v29 }
 0x2ab   :  { %v486_v28 = vpop.permute.xlu0 %485 }
 0x2ac   :  { %v498_v9 = vsel %vm497_vm6, %v457_v19, %v486_v28 }
 0x2af   :  { %v488_v10 = vpop.permute.xlu1 %487  ;;  %v490_v34 = vpop.permute.xlu0 %489 }
 0x2b0   :  { %v499_v35 = vsel %vm497_vm6, %v458_v17, %v488_v10  ;;  %v500_v36 = vsel %vm497_vm6, %v459_v4, %v490_v34 }
 0x2b3   :  { %v492_v37 = vpop.permute.xlu1 %491 }
 0x2b4   :  { %v501_v39 = vsel %vm497_vm6, %v460_v26, %v492_v37 }
 0x31a   :  { %v15087_v13 = vpop.f32.mrb[8].mxu0 }
 0x31b   :  { %v590_v14 = vmul.f32 2.0, %v15087_v13  ;;  %v570_v15 = vpop.f32.mrb[9].mxu0 }
 0x31c   :  { %v589_v18 = vmul.f32 2.0, %v570_v15 }
 0x31d   :  { %v18268_v21 = vsub.f32 %v590_v14, %v458_v17 }
 0x31e   :  { %v18270_v22 = vsub.f32 %v589_v18, %v457_v19  ;;  %v15090_v23 = vpop.f32.mrb[10].mxu0 }
 0x31f   :  { %v592_v24 = vmul.f32 2.0, %v15090_v23  ;;  %v580_v25 = vpop.f32.mrb[11].mxu0 }
 0x320   :  { %v591_v30 = vmul.f32 2.0, %v580_v25  ;;  %15093 = vmatprep.mubr.msk.f32.mxu1 %vm497_vm6, %v18270_v22  ;;  %v16861_v2 = vpack.c.bf16 %v18268_v21, %v18270_v22 }
 0x321   :  { %v18280_v31 = vsub.f32 %v592_v24, %v460_v26  ;;  %15094 = vmatmul.mubr.msk.f32.vlgmr.msra.gmra.mrb[8].mxu1 %vm497_vm6, %v18268_v21  ;;  %v1471_v26 = vld [vmem:[%s20715_s2 + $0x30] sm:$0xff] }
 0x322   :  { %v18284_v32 = vsub.f32 %v591_v30, %v459_v4  ;;  %16862 = vmatprep.subr.bf16.mxu0 %v16861_v2  ;;  %16860 = vmatpush3.bf16.msra.mxu1 %v16857_v8 }
 0x323   :  { %16864 = vmatpush3.bf16.msra.mxu0 %v16861_v2  ;;  %15123 = vmatprep.subr.mxu1 %v886_v41 }
 0x324   :  { %15096 = vmatprep.mubr.msk.f32.mxu1 %vm497_vm6, %v18284_v32  ;;  %v16865_v33 = vpack.c.bf16 %v18280_v31, %v18284_v32 }
 0x325   :  { %15097 = vmatmul.mubr.msk.f32.gmra.mrb[10].mxu1 %vm497_vm6, %v18280_v31 }
 0x326   :  { %15103 = vmatprep.mubr.msk.f32.mxu1 %vm695_vm7, %v498_v9  ;;  %16866 = vmatprep.subr.bf16.mxu0 %v16865_v33 }
 0x327   :  { %16868 = vmatpush3.bf16.msra.mxu0 %v16865_v33 }
 0x329   :  { %15104 = vmatmul.mubr.msk.f32.vlgmr.msra.gmra.mrb[8].mxu1 %vm695_vm7, %v499_v35 }
 0x32a   :  { %15106 = vmatprep.mubr.msk.f32.mxu1 %vm695_vm7, %v500_v36  ;;  %15118 = vmatmul.mubr.msk.f32.vlgmr.msra.gmra.mrb[12].mxu0 %vm55_vm0, %v18201_v27 }
 0x32b   :  { %15120 = vmatprep.mubr.msk.f32.mxu0 %vm55_vm0, %v18213_v40  ;;  %15124 = vmatpush3.msra.mxu1 %v886_v41  ;;  %v1666_v41 = vld [vmem:[%s20715_s2 + $0x38] sm:$0xff] }
 0x32c   :  { %15145 = vmatprep.subr.mxu1 %v1081_v56 }
 0x32d   :  { %15107 = vmatmul.mubr.msk.f32.gmra.mrb[10].mxu1 %vm695_vm7, %v501_v39 }
 0x32e   :  { %15121 = vmatmul.mubr.msk.f32.gmra.mrb[14].mxu0 %vm55_vm0, %v18207_v38 }
 0x32f   :  { %15139 = vmatprep.mubr.msk.f32.mxu0 %vm55_vm0, %v18203_v29 }
 0x3fd   :  { %v15119_v42 = vpop.f32.mrb[12].mxu0 }
 0x3fe   :  { %v879_v43 = vmul.f32 2.0, %v15119_v42  ;;  %v859_v44 = vpop.f32.mrb[13].mxu0 }
 0x3ff   :  { %v878_v45 = vmul.f32 2.0, %v859_v44 }
 0x400   :  { %v883_v46 = vsub.f32 %v879_v43, %v18232_v61 }
 0x401   :  { %v882_v47 = vsub.f32 %v878_v45, %v18228_v58  ;;  %v15122_v48 = vpop.f32.mrb[14].mxu0 }
 0x402   :  { %v881_v49 = vmul.f32 2.0, %v15122_v48  ;;  %v869_v50 = vpop.f32.mrb[15].mxu0 }
 0x403   :  { %v880_v51 = vmul.f32 2.0, %v869_v50  ;;  %15125 = vmatprep.mubr.msk.f32.mxu1 %vm497_vm6, %v882_v47  ;;  %v16869_v52 = vpack.c.bf16 %v883_v46, %v882_v47 }
 0x404   :  { %v885_v53 = vsub.f32 %v881_v49, %v18242_v1  ;;  %15126 = vmatmul.mubr.msk.f32.vlgmr.msra.gmra.mrb[8].mxu1 %vm497_vm6, %v883_v46 }
 0x405   :  { %v884_v54 = vsub.f32 %v880_v51, %v18235_v62  ;;  %16870 = vmatprep.subr.bf16.mxu0 %v16869_v52  ;;  %15146 = vmatpush3.msra.mxu1 %v1081_v56  ;;  %v1861_v56 = vld [vmem:[%s20715_s2 + $0x40] sm:$0xff] }
 0x406   :  { %16872 = vmatpush3.bf16.msra.mxu0 %v16869_v52  ;;  %15167 = vmatprep.subr.mxu1 %v1276_v11 }
 0x407   :  { %15128 = vmatprep.mubr.msk.f32.mxu1 %vm497_vm6, %v884_v54  ;;  %v16873_v55 = vpack.c.bf16 %v885_v53, %v884_v54 }
 0x408   :  { %15129 = vmatmul.mubr.msk.f32.gmra.mrb[10].mxu1 %vm497_vm6, %v885_v53 }
 0x409   :  { %16874 = vmatprep.subr.bf16.mxu0 %v16873_v55 }
 0x40a   :  { %16876 = vmatpush3.bf16.msra.mxu0 %v16873_v55 }
 0x40d   :  { %15140 = vmatmul.mubr.msk.f32.vlgmr.msra.gmra.mrb[16].mxu0 %vm55_vm0, %v18201_v27 }
 0x40e   :  { %15142 = vmatprep.mubr.msk.f32.mxu0 %vm55_vm0, %v18213_v40 }
 0x411   :  { %15143 = vmatmul.mubr.msk.f32.gmra.mrb[18].mxu0 %vm55_vm0, %v18207_v38 }
 0x412   :  { %15161 = vmatprep.mubr.msk.f32.mxu0 %vm55_vm0, %v18203_v29 }
 0x4e0   :  { %v15141_v57 = vpop.f32.mrb[16].mxu0 }
 0x4e1   :  { %v1074_v58 = vmul.f32 2.0, %v15141_v57  ;;  %v1054_v59 = vpop.f32.mrb[17].mxu0 }
 0x4e2   :  { %v1073_v60 = vmul.f32 2.0, %v1054_v59 }
 0x4e3   :  { %v1078_v61 = vsub.f32 %v1074_v58, %v18268_v21 }
 0x4e4   :  { %v1077_v62 = vsub.f32 %v1073_v60, %v18270_v22  ;;  %v15144_v63 = vpop.f32.mrb[18].mxu0 }
 0x4e5   :  { %v1076_v0 = vmul.f32 2.0, %v15144_v63  ;;  %v1064_v1 = vpop.f32.mrb[19].mxu0 }
 0x4e6   :  { %v1075_v3 = vmul.f32 2.0, %v1064_v1  ;;  %15147 = vmatprep.mubr.msk.f32.mxu1 %vm497_vm6, %v1077_v62  ;;  %v16877_v5 = vpack.c.bf16 %v1078_v61, %v1077_v62 }
 0x4e7   :  { %v1080_v6 = vsub.f32 %v1076_v0, %v18280_v31  ;;  %15148 = vmatmul.mubr.msk.f32.vlgmr.msra.gmra.mrb[8].mxu1 %vm497_vm6, %v1078_v61 }
 0x4e8   :  { %v1079_v7 = vsub.f32 %v1075_v3, %v18284_v32  ;;  %16878 = vmatprep.subr.bf16.mxu0 %v16877_v5  ;;  %15168 = vmatpush3.msra.mxu1 %v1276_v11  ;;  %v2056_v11 = vld [vmem:[%s20715_s2 + $0x48] sm:$0xff] }
 0x4e9   :  { %16880 = vmatpush3.bf16.msra.mxu0 %v16877_v5  ;;  %15189 = vmatprep.subr.mxu1 %v1471_v26 }
 0x4ea   :  { %15150 = vmatprep.mubr.msk.f32.mxu1 %vm497_vm6, %v1079_v7  ;;  %v16881_v8 = vpack.c.bf16 %v1080_v6, %v1079_v7 }
 0x4eb   :  { %15151 = vmatmul.mubr.msk.f32.gmra.mrb[10].mxu1 %vm497_vm6, %v1080_v6 }
 0x4ec   :  { %16882 = vmatprep.subr.bf16.mxu0 %v16881_v8 }
 0x4ed   :  { %16884 = vmatpush3.bf16.msra.mxu0 %v16881_v8 }
 0x4f0   :  { %15162 = vmatmul.mubr.msk.f32.vlgmr.msra.gmra.mrb[20].mxu0 %vm55_vm0, %v18201_v27 }
 0x4f1   :  { %15164 = vmatprep.mubr.msk.f32.mxu0 %vm55_vm0, %v18213_v40 }
 0x4f4   :  { %15165 = vmatmul.mubr.msk.f32.gmra.mrb[22].mxu0 %vm55_vm0, %v18207_v38 }
 0x4f5   :  { %15183 = vmatprep.mubr.msk.f32.mxu0 %vm55_vm0, %v18203_v29 }
 0x5c3   :  { %v15163_v12 = vpop.f32.mrb[20].mxu0 }
 0x5c4   :  { %v1269_v13 = vmul.f32 2.0, %v15163_v12  ;;  %v1249_v14 = vpop.f32.mrb[21].mxu0 }
 0x5c5   :  { %v1268_v15 = vmul.f32 2.0, %v1249_v14 }
 0x5c6   :  { %v1273_v16 = vsub.f32 %v1269_v13, %v883_v46 }
 0x5c7   :  { %v1272_v17 = vsub.f32 %v1268_v15, %v882_v47  ;;  %v15166_v18 = vpop.f32.mrb[22].mxu0 }
 0x5c8   :  { %v1271_v19 = vmul.f32 2.0, %v15166_v18  ;;  %v1259_v20 = vpop.f32.mrb[23].mxu0 }
 0x5c9   :  { %v1270_v21 = vmul.f32 2.0, %v1259_v20  ;;  %15169 = vmatprep.mubr.msk.f32.mxu1 %vm497_vm6, %v1272_v17  ;;  %v16885_v22 = vpack.c.bf16 %v1273_v16, %v1272_v17 }
 0x5ca   :  { %v1275_v23 = vsub.f32 %v1271_v19, %v885_v53  ;;  %15170 = vmatmul.mubr.msk.f32.vlgmr.msra.gmra.mrb[8].mxu1 %vm497_vm6, %v1273_v16 }
 0x5cb   :  { %v1274_v24 = vsub.f32 %v1270_v21, %v884_v54  ;;  %16886 = vmatprep.subr.bf16.mxu0 %v16885_v22  ;;  %15190 = vmatpush3.msra.mxu1 %v1471_v26  ;;  %v2251_v26 = vld [vmem:[%s20715_s2 + $0x50] sm:$0xff] }
 0x5cc   :  { %16888 = vmatpush3.bf16.msra.mxu0 %v16885_v22  ;;  %15211 = vmatprep.subr.mxu1 %v1666_v41 }
 0x5cd   :  { %15172 = vmatprep.mubr.msk.f32.mxu1 %vm497_vm6, %v1274_v24  ;;  %v16889_v25 = vpack.c.bf16 %v1275_v23, %v1274_v24 }
 0x5ce   :  { %15173 = vmatmul.mubr.msk.f32.gmra.mrb[10].mxu1 %vm497_vm6, %v1275_v23 }
 0x5cf   :  { %16890 = vmatprep.subr.bf16.mxu0 %v16889_v25 }
 0x5d0   :  { %16892 = vmatpush3.bf16.msra.mxu0 %v16889_v25 }
 0x5d3   :  { %15184 = vmatmul.mubr.msk.f32.vlgmr.msra.gmra.mrb[24].mxu0 %vm55_vm0, %v18201_v27 }
 0x5d4   :  { %15186 = vmatprep.mubr.msk.f32.mxu0 %vm55_vm0, %v18213_v40 }
 0x5d7   :  { %15187 = vmatmul.mubr.msk.f32.gmra.mrb[26].mxu0 %vm55_vm0, %v18207_v38 }
 0x5d8   :  { %15205 = vmatprep.mubr.msk.f32.mxu0 %vm55_vm0, %v18203_v29 }
 0x6a6   :  { %v15185_v28 = vpop.f32.mrb[24].mxu0 }
 0x6a7   :  { %v1464_v30 = vmul.f32 2.0, %v15185_v28  ;;  %v1444_v2 = vpop.f32.mrb[25].mxu0 }
 0x6a8   :  { %v1463_v4 = vmul.f32 2.0, %v1444_v2 }
 0x6a9   :  { %v1468_v31 = vsub.f32 %v1464_v30, %v1078_v61 }
 0x6aa   :  { %v1467_v32 = vsub.f32 %v1463_v4, %v1077_v62  ;;  %v15188_v10 = vpop.f32.mrb[26].mxu0 }
 0x6ab   :  { %v1466_v33 = vmul.f32 2.0, %v15188_v10  ;;  %v1454_v9 = vpop.f32.mrb[27].mxu0 }
 0x6ac   :  { %v1465_v34 = vmul.f32 2.0, %v1454_v9  ;;  %15191 = vmatprep.mubr.msk.f32.mxu1 %vm497_vm6, %v1467_v32  ;;  %v16893_v35 = vpack.c.bf16 %v1468_v31, %v1467_v32 }
 0x6ad   :  { %v1470_v36 = vsub.f32 %v1466_v33, %v1080_v6  ;;  %15192 = vmatmul.mubr.msk.f32.vlgmr.msra.gmra.mrb[8].mxu1 %vm497_vm6, %v1468_v31 }
 0x6ae   :  { %v1469_v37 = vsub.f32 %v1465_v34, %v1079_v7  ;;  %16894 = vmatprep.subr.bf16.mxu0 %v16893_v35  ;;  %15212 = vmatpush3.msra.mxu1 %v1666_v41  ;;  %v2446_v41 = vld [vmem:[%s20715_s2 + $0x58] sm:$0xff] }
 0x6af   :  { %16896 = vmatpush3.bf16.msra.mxu0 %v16893_v35  ;;  %15233 = vmatprep.subr.mxu1 %v1861_v56 }
 0x6b0   :  { %15194 = vmatprep.mubr.msk.f32.mxu1 %vm497_vm6, %v1469_v37  ;;  %v16897_v39 = vpack.c.bf16 %v1470_v36, %v1469_v37 }
 0x6b1   :  { %15195 = vmatmul.mubr.msk.f32.gmra.mrb[10].mxu1 %vm497_vm6, %v1470_v36 }
 0x6b2   :  { %16898 = vmatprep.subr.bf16.mxu0 %v16897_v39 }
 0x6b3   :  { %16900 = vmatpush3.bf16.msra.mxu0 %v16897_v39 }
 0x6b6   :  { %15206 = vmatmul.mubr.msk.f32.vlgmr.msra.gmra.mrb[28].mxu0 %vm55_vm0, %v18201_v27 }
 0x6b7   :  { %15208 = vmatprep.mubr.msk.f32.mxu0 %vm55_vm0, %v18213_v40 }
 0x6ba   :  { %15209 = vmatmul.mubr.msk.f32.gmra.mrb[30].mxu0 %vm55_vm0, %v18207_v38 }
 0x6bb   :  { %15227 = vmatprep.mubr.msk.f32.mxu0 %vm55_vm0, %v18203_v29 }
 0x789   :  { %v15207_v42 = vpop.f32.mrb[28].mxu0 }
 0x78a   :  { %v1659_v43 = vmul.f32 2.0, %v15207_v42  ;;  %v1639_v44 = vpop.f32.mrb[29].mxu0 }
 0x78b   :  { %v1658_v45 = vmul.f32 2.0, %v1639_v44 }
 0x78c   :  { %v1663_v46 = vsub.f32 %v1659_v43, %v1273_v16 }
 0x78d   :  { %v1662_v47 = vsub.f32 %v1658_v45, %v1272_v17  ;;  %v15210_v48 = vpop.f32.mrb[30].mxu0 }
 0x78e   :  { %v1661_v49 = vmul.f32 2.0, %v15210_v48  ;;  %v1649_v50 = vpop.f32.mrb[31].mxu0 }
 0x78f   :  { %v1660_v51 = vmul.f32 2.0, %v1649_v50  ;;  %15213 = vmatprep.mubr.msk.f32.mxu1 %vm497_vm6, %v1662_v47  ;;  %v16901_v52 = vpack.c.bf16 %v1663_v46, %v1662_v47 }
 0x790   :  { %v1665_v53 = vsub.f32 %v1661_v49, %v1275_v23  ;;  %15214 = vmatmul.mubr.msk.f32.vlgmr.msra.gmra.mrb[8].mxu1 %vm497_vm6, %v1663_v46 }
 0x791   :  { %v1664_v54 = vsub.f32 %v1660_v51, %v1274_v24  ;;  %16902 = vmatprep.subr.bf16.mxu0 %v16901_v52  ;;  %15234 = vmatpush3.msra.mxu1 %v1861_v56  ;;  %v2641_v56 = vld [vmem:[%s20715_s2 + $0x60] sm:$0xff] }
 0x792   :  { %16904 = vmatpush3.bf16.msra.mxu0 %v16901_v52  ;;  %15255 = vmatprep.subr.mxu1 %v2056_v11 }
 0x793   :  { %15216 = vmatprep.mubr.msk.f32.mxu1 %vm497_vm6, %v1664_v54  ;;  %v16905_v55 = vpack.c.bf16 %v1665_v53, %v1664_v54 }
 0x794   :  { %15217 = vmatmul.mubr.msk.f32.gmra.mrb[10].mxu1 %vm497_vm6, %v1665_v53 }
 0x795   :  { %16906 = vmatprep.subr.bf16.mxu0 %v16905_v55 }
 0x796   :  { %16908 = vmatpush3.bf16.msra.mxu0 %v16905_v55 }
 0x799   :  { %15228 = vmatmul.mubr.msk.f32.vlgmr.msra.gmra.mrb[32].mxu0 %vm55_vm0, %v18201_v27 }
 0x79a   :  { %15230 = vmatprep.mubr.msk.f32.mxu0 %vm55_vm0, %v18213_v40 }
 0x79d   :  { %15231 = vmatmul.mubr.msk.f32.gmra.mrb[34].mxu0 %vm55_vm0, %v18207_v38 }
 0x79e   :  { %15249 = vmatprep.mubr.msk.f32.mxu0 %vm55_vm0, %v18203_v29 }
 0x86c   :  { %v15229_v57 = vpop.f32.mrb[32].mxu0 }
 0x86d   :  { %v1854_v58 = vmul.f32 2.0, %v15229_v57  ;;  %v1834_v59 = vpop.f32.mrb[33].mxu0 }
 0x86e   :  { %v1853_v60 = vmul.f32 2.0, %v1834_v59 }
 0x86f   :  { %v1858_v61 = vsub.f32 %v1854_v58, %v1468_v31 }
 0x870   :  { %v1857_v62 = vsub.f32 %v1853_v60, %v1467_v32  ;;  %v15232_v63 = vpop.f32.mrb[34].mxu0 }
 0x871   :  { %v1856_v0 = vmul.f32 2.0, %v15232_v63  ;;  %v1844_v1 = vpop.f32.mrb[35].mxu0 }
 0x872   :  { %v1855_v3 = vmul.f32 2.0, %v1844_v1  ;;  %15235 = vmatprep.mubr.msk.f32.mxu1 %vm497_vm6, %v1857_v62  ;;  %v16909_v5 = vpack.c.bf16 %v1858_v61, %v1857_v62 }
 0x873   :  { %v1860_v6 = vsub.f32 %v1856_v0, %v1470_v36  ;;  %15236 = vmatmul.mubr.msk.f32.vlgmr.msra.gmra.mrb[8].mxu1 %vm497_vm6, %v1858_v61 }
 0x874   :  { %v1859_v7 = vsub.f32 %v1855_v3, %v1469_v37  ;;  %16910 = vmatprep.subr.bf16.mxu0 %v16909_v5  ;;  %15256 = vmatpush3.msra.mxu1 %v2056_v11  ;;  %v2836_v11 = vld [vmem:[%s20715_s2 + $0x68] sm:$0xff] }
 0x875   :  { %16912 = vmatpush3.bf16.msra.mxu0 %v16909_v5  ;;  %15277 = vmatprep.subr.mxu1 %v2251_v26 }
 0x876   :  { %15238 = vmatprep.mubr.msk.f32.mxu1 %vm497_vm6, %v1859_v7  ;;  %v16913_v8 = vpack.c.bf16 %v1860_v6, %v1859_v7 }
 0x877   :  { %15239 = vmatmul.mubr.msk.f32.gmra.mrb[10].mxu1 %vm497_vm6, %v1860_v6 }
 0x878   :  { %16914 = vmatprep.subr.bf16.mxu0 %v16913_v8 }
 0x879   :  { %16916 = vmatpush3.bf16.msra.mxu0 %v16913_v8 }
 0x87c   :  { %15250 = vmatmul.mubr.msk.f32.vlgmr.msra.gmra.mrb[36].mxu0 %vm55_vm0, %v18201_v27 }
 0x87d   :  { %15252 = vmatprep.mubr.msk.f32.mxu0 %vm55_vm0, %v18213_v40 }
 0x880   :  { %15253 = vmatmul.mubr.msk.f32.gmra.mrb[38].mxu0 %vm55_vm0, %v18207_v38 }
 0x881   :  { %15271 = vmatprep.mubr.msk.f32.mxu0 %vm55_vm0, %v18203_v29 }
 0x94f   :  { %v15251_v12 = vpop.f32.mrb[36].mxu0 }
 0x950   :  { %v2049_v13 = vmul.f32 2.0, %v15251_v12  ;;  %v2029_v14 = vpop.f32.mrb[37].mxu0 }
 0x951   :  { %v2048_v15 = vmul.f32 2.0, %v2029_v14 }
 0x952   :  { %v2053_v16 = vsub.f32 %v2049_v13, %v1663_v46 }
 0x953   :  { %v2052_v17 = vsub.f32 %v2048_v15, %v1662_v47  ;;  %v15254_v18 = vpop.f32.mrb[38].mxu0 }
 0x954   :  { %v2051_v19 = vmul.f32 2.0, %v15254_v18  ;;  %v2039_v20 = vpop.f32.mrb[39].mxu0 }
 0x955   :  { %v2050_v21 = vmul.f32 2.0, %v2039_v20  ;;  %15257 = vmatprep.mubr.msk.f32.mxu1 %vm497_vm6, %v2052_v17  ;;  %v16917_v22 = vpack.c.bf16 %v2053_v16, %v2052_v17 }
 0x956   :  { %v2055_v23 = vsub.f32 %v2051_v19, %v1665_v53  ;;  %15258 = vmatmul.mubr.msk.f32.vlgmr.msra.gmra.mrb[8].mxu1 %vm497_vm6, %v2053_v16 }
 0x957   :  { %v2054_v24 = vsub.f32 %v2050_v21, %v1664_v54  ;;  %16918 = vmatprep.subr.bf16.mxu0 %v16917_v22  ;;  %15278 = vmatpush3.msra.mxu1 %v2251_v26  ;;  %v3031_v26 = vld [vmem:[%s20715_s2 + $0x70] sm:$0xff] }
 0x958   :  { %16920 = vmatpush3.bf16.msra.mxu0 %v16917_v22  ;;  %15299 = vmatprep.subr.mxu1 %v2446_v41 }
 0x959   :  { %15260 = vmatprep.mubr.msk.f32.mxu1 %vm497_vm6, %v2054_v24  ;;  %v16921_v25 = vpack.c.bf16 %v2055_v23, %v2054_v24 }
 0x95a   :  { %15261 = vmatmul.mubr.msk.f32.gmra.mrb[10].mxu1 %vm497_vm6, %v2055_v23 }
 0x95b   :  { %16922 = vmatprep.subr.bf16.mxu0 %v16921_v25 }
 0x95c   :  { %16924 = vmatpush3.bf16.msra.mxu0 %v16921_v25 }
 0x95f   :  { %15272 = vmatmul.mubr.msk.f32.vlgmr.msra.gmra.mrb[40].mxu0 %vm55_vm0, %v18201_v27 }
 0x960   :  { %15274 = vmatprep.mubr.msk.f32.mxu0 %vm55_vm0, %v18213_v40 }
 0x963   :  { %15275 = vmatmul.mubr.msk.f32.gmra.mrb[42].mxu0 %vm55_vm0, %v18207_v38 }
 0x964   :  { %15293 = vmatprep.mubr.msk.f32.mxu0 %vm55_vm0, %v18203_v29 }
 0xa32   :  { %v15273_v28 = vpop.f32.mrb[40].mxu0 }
 0xa33   :  { %v2244_v30 = vmul.f32 2.0, %v15273_v28  ;;  %v2224_v2 = vpop.f32.mrb[41].mxu0 }
 0xa34   :  { %v2243_v4 = vmul.f32 2.0, %v2224_v2 }
 0xa35   :  { %v2248_v31 = vsub.f32 %v2244_v30, %v1858_v61 }
 0xa36   :  { %v2247_v32 = vsub.f32 %v2243_v4, %v1857_v62  ;;  %v15276_v10 = vpop.f32.mrb[42].mxu0 }
 0xa37   :  { %v2246_v33 = vmul.f32 2.0, %v15276_v10  ;;  %v2234_v9 = vpop.f32.mrb[43].mxu0 }
 0xa38   :  { %v2245_v34 = vmul.f32 2.0, %v2234_v9  ;;  %15279 = vmatprep.mubr.msk.f32.mxu1 %vm497_vm6, %v2247_v32  ;;  %v16925_v35 = vpack.c.bf16 %v2248_v31, %v2247_v32 }
 0xa39   :  { %v2250_v36 = vsub.f32 %v2246_v33, %v1860_v6  ;;  %15280 = vmatmul.mubr.msk.f32.vlgmr.msra.gmra.mrb[8].mxu1 %vm497_vm6, %v2248_v31 }
 0xa3a   :  { %v2249_v37 = vsub.f32 %v2245_v34, %v1859_v7  ;;  %16926 = vmatprep.subr.bf16.mxu0 %v16925_v35  ;;  %15300 = vmatpush3.msra.mxu1 %v2446_v41  ;;  %v3226_v41 = vld [vmem:[%s20715_s2 + $0x78] sm:$0xff] }
 0xa3b   :  { %16928 = vmatpush3.bf16.msra.mxu0 %v16925_v35  ;;  %15321 = vmatprep.subr.mxu1 %v2641_v56 }
 0xa3c   :  { %15282 = vmatprep.mubr.msk.f32.mxu1 %vm497_vm6, %v2249_v37  ;;  %v16929_v39 = vpack.c.bf16 %v2250_v36, %v2249_v37 }
 0xa3d   :  { %15283 = vmatmul.mubr.msk.f32.gmra.mrb[10].mxu1 %vm497_vm6, %v2250_v36 }
 0xa3e   :  { %16930 = vmatprep.subr.bf16.mxu0 %v16929_v39 }
 0xa3f   :  { %16932 = vmatpush3.bf16.msra.mxu0 %v16929_v39 }
 0xa42   :  { %15294 = vmatmul.mubr.msk.f32.vlgmr.msra.gmra.mrb[44].mxu0 %vm55_vm0, %v18201_v27 }
 0xa43   :  { %15296 = vmatprep.mubr.msk.f32.mxu0 %vm55_vm0, %v18213_v40 }
 0xa46   :  { %15297 = vmatmul.mubr.msk.f32.gmra.mrb[46].mxu0 %vm55_vm0, %v18207_v38 }
 0xa47   :  { %15315 = vmatprep.mubr.msk.f32.mxu0 %vm55_vm0, %v18203_v29 }
 0xb15   :  { %v15295_v42 = vpop.f32.mrb[44].mxu0 }
 0xb16   :  { %v2439_v43 = vmul.f32 2.0, %v15295_v42  ;;  %v2419_v44 = vpop.f32.mrb[45].mxu0 }
 0xb17   :  { %v2438_v45 = vmul.f32 2.0, %v2419_v44 }
 0xb18   :  { %v2443_v46 = vsub.f32 %v2439_v43, %v2053_v16 }
 0xb19   :  { %v2442_v47 = vsub.f32 %v2438_v45, %v2052_v17  ;;  %v15298_v48 = vpop.f32.mrb[46].mxu0 }
 0xb1a   :  { %v2441_v49 = vmul.f32 2.0, %v15298_v48  ;;  %v2429_v50 = vpop.f32.mrb[47].mxu0 }
 0xb1b   :  { %v2440_v51 = vmul.f32 2.0, %v2429_v50  ;;  %15301 = vmatprep.mubr.msk.f32.mxu1 %vm497_vm6, %v2442_v47  ;;  %v16933_v52 = vpack.c.bf16 %v2443_v46, %v2442_v47 }
 0xb1c   :  { %v2445_v53 = vsub.f32 %v2441_v49, %v2055_v23  ;;  %15302 = vmatmul.mubr.msk.f32.vlgmr.msra.gmra.mrb[8].mxu1 %vm497_vm6, %v2443_v46 }
 0xb1d   :  { %v2444_v54 = vsub.f32 %v2440_v51, %v2054_v24  ;;  %16934 = vmatprep.subr.bf16.mxu0 %v16933_v52  ;;  %15322 = vmatpush3.msra.mxu1 %v2641_v56  ;;  %v3421_v56 = vld [vmem:[%s20715_s2 + $0x80] sm:$0xff] }
 0xb1e   :  { %16936 = vmatpush3.bf16.msra.mxu0 %v16933_v52  ;;  %15343 = vmatprep.subr.mxu1 %v2836_v11 }
 0xb1f   :  { %15304 = vmatprep.mubr.msk.f32.mxu1 %vm497_vm6, %v2444_v54  ;;  %v16937_v55 = vpack.c.bf16 %v2445_v53, %v2444_v54 }
 0xb20   :  { %15305 = vmatmul.mubr.msk.f32.gmra.mrb[10].mxu1 %vm497_vm6, %v2445_v53 }
 0xb21   :  { %16938 = vmatprep.subr.bf16.mxu0 %v16937_v55 }
 0xb22   :  { %16940 = vmatpush3.bf16.msra.mxu0 %v16937_v55 }
 0xb25   :  { %15316 = vmatmul.mubr.msk.f32.vlgmr.msra.gmra.mrb[48].mxu0 %vm55_vm0, %v18201_v27 }
 0xb26   :  { %15318 = vmatprep.mubr.msk.f32.mxu0 %vm55_vm0, %v18213_v40 }
 0xb29   :  { %15319 = vmatmul.mubr.msk.f32.gmra.mrb[50].mxu0 %vm55_vm0, %v18207_v38 }
 0xb2a   :  { %15337 = vmatprep.mubr.msk.f32.mxu0 %vm55_vm0, %v18203_v29 }
 0xbf8   :  { %v15317_v57 = vpop.f32.mrb[48].mxu0 }
 0xbf9   :  { %v2634_v58 = vmul.f32 2.0, %v15317_v57  ;;  %v2614_v59 = vpop.f32.mrb[49].mxu0 }
 0xbfa   :  { %v2633_v60 = vmul.f32 2.0, %v2614_v59 }
 0xbfb   :  { %v2638_v61 = vsub.f32 %v2634_v58, %v2248_v31 }
 0xbfc   :  { %v2637_v62 = vsub.f32 %v2633_v60, %v2247_v32  ;;  %v15320_v63 = vpop.f32.mrb[50].mxu0 }
 0xbfd   :  { %v2636_v0 = vmul.f32 2.0, %v15320_v63  ;;  %v2624_v1 = vpop.f32.mrb[51].mxu0 }
 0xbfe   :  { %v2635_v3 = vmul.f32 2.0, %v2624_v1  ;;  %15323 = vmatprep.mubr.msk.f32.mxu1 %vm497_vm6, %v2637_v62  ;;  %v16941_v5 = vpack.c.bf16 %v2638_v61, %v2637_v62 }
 0xbff   :  { %v2640_v6 = vsub.f32 %v2636_v0, %v2250_v36  ;;  %15324 = vmatmul.mubr.msk.f32.vlgmr.msra.gmra.mrb[8].mxu1 %vm497_vm6, %v2638_v61 }
 0xc00   :  { %v2639_v7 = vsub.f32 %v2635_v3, %v2249_v37  ;;  %16942 = vmatprep.subr.bf16.mxu0 %v16941_v5  ;;  %15344 = vmatpush3.msra.mxu1 %v2836_v11  ;;  %v3616_v11 = vld [vmem:[%s20715_s2 + $0x88] sm:$0xff] }
 0xc01   :  { %16944 = vmatpush3.bf16.msra.mxu0 %v16941_v5  ;;  %15365 = vmatprep.subr.mxu1 %v3031_v26 }
 0xc02   :  { %15326 = vmatprep.mubr.msk.f32.mxu1 %vm497_vm6, %v2639_v7  ;;  %v16945_v8 = vpack.c.bf16 %v2640_v6, %v2639_v7 }
 0xc03   :  { %15327 = vmatmul.mubr.msk.f32.gmra.mrb[10].mxu1 %vm497_vm6, %v2640_v6 }
 0xc04   :  { %16946 = vmatprep.subr.bf16.mxu0 %v16945_v8 }
 0xc05   :  { %16948 = vmatpush3.bf16.msra.mxu0 %v16945_v8 }
 0xc08   :  { %15338 = vmatmul.mubr.msk.f32.vlgmr.msra.gmra.mrb[52].mxu0 %vm55_vm0, %v18201_v27 }
 0xc09   :  { %15340 = vmatprep.mubr.msk.f32.mxu0 %vm55_vm0, %v18213_v40 }
 0xc0c   :  { %15341 = vmatmul.mubr.msk.f32.gmra.mrb[54].mxu0 %vm55_vm0, %v18207_v38 }
 0xc0d   :  { %15359 = vmatprep.mubr.msk.f32.mxu0 %vm55_vm0, %v18203_v29 }
 0xcdb   :  { %v15339_v12 = vpop.f32.mrb[52].mxu0 }
 0xcdc   :  { %v2829_v13 = vmul.f32 2.0, %v15339_v12  ;;  %v2809_v14 = vpop.f32.mrb[53].mxu0 }
 0xcdd   :  { %v2828_v15 = vmul.f32 2.0, %v2809_v14 }
 0xcde   :  { %v2833_v16 = vsub.f32 %v2829_v13, %v2443_v46 }
 0xcdf   :  { %v2832_v17 = vsub.f32 %v2828_v15, %v2442_v47  ;;  %v15342_v18 = vpop.f32.mrb[54].mxu0 }
 0xce0   :  { %v2831_v19 = vmul.f32 2.0, %v15342_v18  ;;  %v2819_v20 = vpop.f32.mrb[55].mxu0 }
 0xce1   :  { %v2830_v21 = vmul.f32 2.0, %v2819_v20  ;;  %15345 = vmatprep.mubr.msk.f32.mxu1 %vm497_vm6, %v2832_v17  ;;  %v16949_v22 = vpack.c.bf16 %v2833_v16, %v2832_v17 }
 0xce2   :  { %v2835_v23 = vsub.f32 %v2831_v19, %v2445_v53  ;;  %15346 = vmatmul.mubr.msk.f32.vlgmr.msra.gmra.mrb[8].mxu1 %vm497_vm6, %v2833_v16 }
 0xce3   :  { %v2834_v24 = vsub.f32 %v2830_v21, %v2444_v54  ;;  %16950 = vmatprep.subr.bf16.mxu0 %v16949_v22  ;;  %15366 = vmatpush3.msra.mxu1 %v3031_v26  ;;  %v3811_v26 = vld [vmem:[%s20715_s2 + $0x90] sm:$0xff] }
 0xce4   :  { %16952 = vmatpush3.bf16.msra.mxu0 %v16949_v22  ;;  %15387 = vmatprep.subr.mxu1 %v3226_v41 }
 0xce5   :  { %15348 = vmatprep.mubr.msk.f32.mxu1 %vm497_vm6, %v2834_v24  ;;  %v16953_v25 = vpack.c.bf16 %v2835_v23, %v2834_v24 }
 0xce6   :  { %15349 = vmatmul.mubr.msk.f32.gmra.mrb[10].mxu1 %vm497_vm6, %v2835_v23 }
 0xce7   :  { %16954 = vmatprep.subr.bf16.mxu0 %v16953_v25 }
 0xce8   :  { %16956 = vmatpush3.bf16.msra.mxu0 %v16953_v25 }
 0xceb   :  { %15360 = vmatmul.mubr.msk.f32.vlgmr.msra.gmra.mrb[56].mxu0 %vm55_vm0, %v18201_v27 }
 0xcec   :  { %15362 = vmatprep.mubr.msk.f32.mxu0 %vm55_vm0, %v18213_v40 }
 0xcef   :  { %15363 = vmatmul.mubr.msk.f32.gmra.mrb[58].mxu0 %vm55_vm0, %v18207_v38 }
 0xcf0   :  { %15381 = vmatprep.mubr.msk.f32.mxu0 %vm55_vm0, %v18203_v29 }
 0xdbe   :  { %v15361_v28 = vpop.f32.mrb[56].mxu0 }
 0xdbf   :  { %v3024_v30 = vmul.f32 2.0, %v15361_v28  ;;  %v3004_v2 = vpop.f32.mrb[57].mxu0  ;;  %v4006_v28 = vld [vmem:[%s20715_s2 + $0x98] sm:$0xff] }
 0xdc0   :  { %v3023_v4 = vmul.f32 2.0, %v3004_v2 }
 0xdc1   :  { %v3028_v31 = vsub.f32 %v3024_v30, %v2638_v61 }
 0xdc2   :  { %v3027_v32 = vsub.f32 %v3023_v4, %v2637_v62  ;;  %v15364_v10 = vpop.f32.mrb[58].mxu0 }
 0xdc3   :  { %v3026_v33 = vmul.f32 2.0, %v15364_v10  ;;  %v3014_v9 = vpop.f32.mrb[59].mxu0 }
 0xdc4   :  { %v3025_v34 = vmul.f32 2.0, %v3014_v9  ;;  %15367 = vmatprep.mubr.msk.f32.mxu1 %vm497_vm6, %v3027_v32  ;;  %v16957_v35 = vpack.c.bf16 %v3028_v31, %v3027_v32 }
 0xdc5   :  { %v3030_v36 = vsub.f32 %v3026_v33, %v2640_v6  ;;  %15368 = vmatmul.mubr.msk.f32.vlgmr.msra.gmra.mrb[8].mxu1 %vm497_vm6, %v3028_v31 }
 0xdc6   :  { %v3029_v37 = vsub.f32 %v3025_v34, %v2639_v7  ;;  %16958 = vmatprep.subr.bf16.mxu0 %v16957_v35  ;;  %15388 = vmatpush3.msra.mxu1 %v3226_v41 }
 0xdc7   :  { %16960 = vmatpush3.bf16.msra.mxu0 %v16957_v35  ;;  %15409 = vmatprep.subr.mxu1 %v3421_v56 }
 0xdc8   :  { %15370 = vmatprep.mubr.msk.f32.mxu1 %vm497_vm6, %v3029_v37  ;;  %v16961_v39 = vpack.c.bf16 %v3030_v36, %v3029_v37 }
 0xdc9   :  { %15371 = vmatmul.mubr.msk.f32.gmra.mrb[10].mxu1 %vm497_vm6, %v3030_v36 }
 0xdca   :  { %16962 = vmatprep.subr.bf16.mxu0 %v16961_v39 }
 0xdcb   :  { %16964 = vmatpush3.bf16.msra.mxu0 %v16961_v39 }
 0xdce   :  { %15382 = vmatmul.mubr.msk.f32.vlgmr.msra.gmra.mrb[60].mxu0 %vm55_vm0, %v18201_v27 }
 0xdcf   :  { %15384 = vmatprep.mubr.msk.f32.mxu0 %vm55_vm0, %v18213_v40 }
 0xdd2   :  { %15385 = vmatmul.mubr.msk.f32.gmra.mrb[62].mxu0 %vm55_vm0, %v18207_v38 }
 0xdd3   :  { %15403 = vmatprep.mubr.msk.f32.mxu0 %vm55_vm0, %v18203_v29 }
 0xea1   :  { %v15383_v42 = vpop.f32.mrb[60].mxu0 }
 0xea2   :  { %v3219_v43 = vmul.f32 2.0, %v15383_v42  ;;  %v3199_v44 = vpop.f32.mrb[61].mxu0  ;;  %v18091_v42 = vld [vmem:[%s20713_s0] sm:$0xff] }
 0xea3   :  { %v3218_v45 = vmul.f32 2.0, %v3199_v44 }
 0xea4   :  { %v3223_v46 = vsub.f32 %v3219_v43, %v2833_v16 }
 0xea5   :  { %v3222_v47 = vsub.f32 %v3218_v45, %v2832_v17  ;;  %v15386_v48 = vpop.f32.mrb[62].mxu0 }
 0xea6   :  { %v3221_v49 = vmul.f32 2.0, %v15386_v48  ;;  %v3209_v50 = vpop.f32.mrb[63].mxu0 }
 0xea7   :  { %v3220_v51 = vmul.f32 2.0, %v3209_v50  ;;  %15389 = vmatprep.mubr.msk.f32.mxu1 %vm497_vm6, %v3222_v47  ;;  %v16965_v52 = vpack.c.bf16 %v3223_v46, %v3222_v47 }
 0xea8   :  { %v3225_v53 = vsub.f32 %v3221_v49, %v2835_v23  ;;  %15390 = vmatmul.mubr.msk.f32.vlgmr.msra.gmra.mrb[8].mxu1 %vm497_vm6, %v3223_v46 }
 0xea9   :  { %v3224_v54 = vsub.f32 %v3220_v51, %v2834_v24  ;;  %16966 = vmatprep.subr.bf16.mxu0 %v16965_v52  ;;  %15410 = vmatpush3.msra.mxu1 %v3421_v56 }
 0xeaa   :  { %16968 = vmatpush3.bf16.msra.mxu0 %v16965_v52  ;;  %15431 = vmatprep.subr.mxu1 %v3616_v11 }
 0xeab   :  { %15392 = vmatprep.mubr.msk.f32.mxu1 %vm497_vm6, %v3224_v54  ;;  %v16969_v55 = vpack.c.bf16 %v3225_v53, %v3224_v54 }
 0xeac   :  { %15393 = vmatmul.mubr.msk.f32.gmra.mrb[10].mxu1 %vm497_vm6, %v3225_v53 }
 0xead   :  { %16970 = vmatprep.subr.bf16.mxu0 %v16969_v55 }
 0xeae   :  { %16972 = vmatpush3.bf16.msra.mxu0 %v16969_v55  ;;  %v13587_v55 = vld [vmem:[%s20716_s3] ss:$0 sm:$0xff] }
 0xeb1   :  { %15404 = vmatmul.mubr.msk.f32.vlgmr.msra.gmra.mrb[64].mxu0 %vm55_vm0, %v18201_v27 }
 0xeb2   :  { %15406 = vmatprep.mubr.msk.f32.mxu0 %vm55_vm0, %v18213_v40 }
 0xeb5   :  { %15407 = vmatmul.mubr.msk.f32.gmra.mrb[66].mxu0 %vm55_vm0, %v18207_v38 }
 0xeb6   :  { %15425 = vmatprep.mubr.msk.f32.mxu0 %vm55_vm0, %v18203_v29 }
 0xf84   :  { %v15405_v57 = vpop.f32.mrb[64].mxu0 }
 0xf85   :  { %v3414_v58 = vmul.f32 2.0, %v15405_v57  ;;  %v3394_v59 = vpop.f32.mrb[65].mxu0 }
 0xf86   :  { %v3413_v60 = vmul.f32 2.0, %v3394_v59 }
 0xf87   :  { %v3418_v61 = vsub.f32 %v3414_v58, %v3028_v31 }
 0xf88   :  { %v3417_v62 = vsub.f32 %v3413_v60, %v3027_v32  ;;  %v15408_v63 = vpop.f32.mrb[66].mxu0 }
 0xf89   :  { %v3416_v0 = vmul.f32 2.0, %v15408_v63  ;;  %v3404_v1 = vpop.f32.mrb[67].mxu0 }
 0xf8a   :  { %v3415_v3 = vmul.f32 2.0, %v3404_v1  ;;  %15411 = vmatprep.mubr.msk.f32.mxu1 %vm497_vm6, %v3417_v62  ;;  %v16973_v5 = vpack.c.bf16 %v3418_v61, %v3417_v62 }
 0xf8b   :  { %v3420_v6 = vsub.f32 %v3416_v0, %v3030_v36  ;;  %15412 = vmatmul.mubr.msk.f32.vlgmr.msra.gmra.mrb[8].mxu1 %vm497_vm6, %v3418_v61 }
 0xf8c   :  { %v3419_v7 = vsub.f32 %v3415_v3, %v3029_v37  ;;  %16974 = vmatprep.subr.bf16.mxu0 %v16973_v5  ;;  %15432 = vmatpush3.msra.mxu1 %v3616_v11 }
 0xf8d   :  { %16976 = vmatpush3.bf16.msra.mxu0 %v16973_v5  ;;  %15453 = vmatprep.subr.mxu1 %v3811_v26 }
 0xf8e   :  { %15414 = vmatprep.mubr.msk.f32.mxu1 %vm497_vm6, %v3419_v7  ;;  %v16977_v8 = vpack.c.bf16 %v3420_v6, %v3419_v7 }
 0xf8f   :  { %15415 = vmatmul.mubr.msk.f32.gmra.mrb[10].mxu1 %vm497_vm6, %v3420_v6 }
 0xf90   :  { %16978 = vmatprep.subr.bf16.mxu0 %v16977_v8 }
 0xf91   :  { %16980 = vmatpush3.bf16.msra.mxu0 %v16977_v8 }
 0xf94   :  { %15426 = vmatmul.mubr.msk.f32.vlgmr.msra.gmra.mrb[68].mxu0 %vm55_vm0, %v18201_v27 }
 0xf95   :  { %15428 = vmatprep.mubr.msk.f32.mxu0 %vm55_vm0, %v18213_v40 }
 0xf98   :  { %15429 = vmatmul.mubr.msk.f32.gmra.mrb[70].mxu0 %vm55_vm0, %v18207_v38 }
 0xf99   :  { %15447 = vmatprep.mubr.msk.f32.mxu0 %vm55_vm0, %v18203_v29 }
0x1067   :  { %v15427_v12 = vpop.f32.mrb[68].mxu0 }
0x1068   :  { %v3609_v13 = vmul.f32 2.0, %v15427_v12  ;;  %v3589_v14 = vpop.f32.mrb[69].mxu0 }
0x1069   :  { %v3608_v15 = vmul.f32 2.0, %v3589_v14 }
0x106a   :  { %v18529_v16 = vsub.f32 %v3609_v13, %v3223_v46 }
0x106b   :  { %v18531_v17 = vsub.f32 %v3608_v15, %v3222_v47  ;;  %v15430_v18 = vpop.f32.mrb[70].mxu0 }
0x106c   :  { %v3611_v19 = vmul.f32 2.0, %v15430_v18  ;;  %v3599_v20 = vpop.f32.mrb[71].mxu0 }
0x106d   :  { %v3610_v21 = vmul.f32 2.0, %v3599_v20  ;;  %15433 = vmatprep.mubr.msk.f32.mxu1 %vm497_vm6, %v18531_v17  ;;  %v16981_v22 = vpack.c.bf16 %v18529_v16, %v18531_v17 }
0x106e   :  { %v18537_v23 = vsub.f32 %v3611_v19, %v3225_v53  ;;  %15434 = vmatmul.mubr.msk.f32.vlgmr.msra.gmra.mrb[8].mxu1 %vm497_vm6, %v18529_v16 }
0x106f   :  { %v3614_v24 = vsub.f32 %v3610_v21, %v3224_v54  ;;  %16982 = vmatprep.subr.bf16.mxu0 %v16981_v22  ;;  %15454 = vmatpush3.msra.mxu1 %v3811_v26  ;;  %v18092_v26 = vld [vmem:[%s20713_s0 + $0x8] sm:$0xff] }
0x1070   :  { %16984 = vmatpush3.bf16.msra.mxu0 %v16981_v22  ;;  %15475 = vmatprep.subr.mxu1 %v4006_v28 }
0x1071   :  { %15436 = vmatprep.mubr.msk.f32.mxu1 %vm497_vm6, %v3614_v24  ;;  %v16985_v25 = vpack.c.bf16 %v18537_v23, %v3614_v24 }
0x1072   :  { %15437 = vmatmul.mubr.msk.f32.gmra.mrb[10].mxu1 %vm497_vm6, %v18537_v23 }
0x1073   :  { %16986 = vmatprep.subr.bf16.mxu0 %v16985_v25 }
0x1074   :  { %16988 = vmatpush3.bf16.msra.mxu0 %v16985_v25 }
0x1077   :  { %15448 = vmatmul.mubr.msk.f32.vlgmr.msra.gmra.mrb[72].mxu0 %vm55_vm0, %v18201_v27 }
0x1078   :  { %15450 = vmatprep.mubr.msk.f32.mxu0 %vm55_vm0, %v18213_v40 }
0x107b   :  { %15451 = vmatmul.mubr.msk.f32.gmra.mrb[74].mxu0 %vm55_vm0, %v18207_v38 }
0x107c   :  { %15469 = vmatprep.mubr.msk.f32.mxu0 %vm55_vm0, %v18203_v29 }
0x114a   :  { %v15449_v30 = vpop.f32.mrb[72].mxu0 }
0x114b   :  { %v3804_v2 = vmul.f32 2.0, %v15449_v30  ;;  %v3784_v4 = vpop.f32.mrb[73].mxu0  ;;  %v18094_v30 = vld [vmem:[%s20713_s0 + $0x18] sm:$0xff] }
0x114c   :  { %v3803_v31 = vmul.f32 2.0, %v3784_v4 }
0x114d   :  { %v3808_v32 = vsub.f32 %v3804_v2, %v3418_v61 }
0x114e   :  { %v3807_v10 = vsub.f32 %v3803_v31, %v3417_v62  ;;  %v15452_v33 = vpop.f32.mrb[74].mxu0 }
0x114f   :  { %v3806_v9 = vmul.f32 2.0, %v15452_v33  ;;  %v3794_v34 = vpop.f32.mrb[75].mxu0 }
0x1150   :  { %v3805_v35 = vmul.f32 2.0, %v3794_v34  ;;  %15455 = vmatprep.mubr.msk.f32.mxu1 %vm497_vm6, %v3807_v10  ;;  %v16989_v36 = vpack.c.bf16 %v3808_v32, %v3807_v10 }
0x1151   :  { %v3810_v37 = vsub.f32 %v3806_v9, %v3420_v6  ;;  %15456 = vmatmul.mubr.msk.f32.vlgmr.msra.gmra.mrb[8].mxu1 %vm497_vm6, %v3808_v32 }
0x1152   :  { %v3809_v39 = vsub.f32 %v3805_v35, %v3419_v7  ;;  %16990 = vmatprep.subr.bf16.mxu0 %v16989_v36  ;;  %15476 = vmatpush3.msra.mxu1 %v4006_v28  ;;  %v18093_v28 = vld [vmem:[%s20713_s0 + $0x10] sm:$0xff] }
0x1153   :  { %16992 = vmatpush3.bf16.msra.mxu0 %v16989_v36 }
0x1154   :  { %15458 = vmatprep.mubr.msk.f32.mxu1 %vm497_vm6, %v3809_v39  ;;  %v16993_v41 = vpack.c.bf16 %v3810_v37, %v3809_v39 }
0x1155   :  { %15459 = vmatmul.mubr.msk.f32.gmra.mrb[10].mxu1 %vm497_vm6, %v3810_v37 }
0x1156   :  { %16994 = vmatprep.subr.bf16.mxu0 %v16993_v41 }
0x1157   :  { %16996 = vmatpush3.bf16.msra.mxu0 %v16993_v41 }
0x115a   :  { %15470 = vmatmul.mubr.msk.f32.vlgmr.msra.gmra.mrb[76].mxu0 %vm55_vm0, %v18201_v27 }
0x115b   :  { %15472 = vmatprep.mubr.msk.f32.mxu0 %vm55_vm0, %v18213_v40 }
0x115e   :  { %15473 = vmatmul.mubr.msk.f32.gmra.mrb[78].mxu0 %vm55_vm0, %v18207_v38 }
0x115f   :  { %15491 = vmatprep.mubr.msk.f32.mxu0 %vm55_vm0, %v18091_v42 }
0x122d   :  { %v15471_v43 = vpop.f32.mrb[76].mxu0 }
0x122e   :  { %v3999_v44 = vmul.f32 2.0, %v15471_v43  ;;  %v3979_v45 = vpop.f32.mrb[77].mxu0 }
0x122f   :  { %v3998_v46 = vmul.f32 2.0, %v3979_v45 }
0x1230   :  { %v4003_v49 = vsub.f32 %v3999_v44, %v18529_v16 }
0x1231   :  { %v4002_v47 = vsub.f32 %v3998_v46, %v18531_v17  ;;  %v15474_v48 = vpop.f32.mrb[78].mxu0 }
0x1232   :  { %v4001_v50 = vmul.f32 2.0, %v15474_v48  ;;  %v3989_v51 = vpop.f32.mrb[79].mxu0 }
0x1233   :  { %v4000_v52 = vmul.f32 2.0, %v3989_v51  ;;  %15477 = vmatprep.mubr.msk.f32.mxu1 %vm497_vm6, %v4002_v47  ;;  %v4572_v51 = vld [vmem:[%s20717_s4 + $0x38] sm:$0xff] }
0x1234   :  { %15478 = vmatmul.mubr.msk.f32.vlgmr.msra.gmra.mrb[8].mxu1 %vm497_vm6, %v4003_v49  ;;  %v4005_v54 = vsub.f32 %v4001_v50, %v18537_v23 }
0x1235   :  { %v4004_v53 = vsub.f32 %v4000_v52, %v3614_v24  ;;  %v4573_v52 = vld [vmem:[%s20717_s4 + $0x40] sm:$0xff] }
0x1237   :  { %15480 = vmatprep.mubr.msk.f32.mxu1 %vm497_vm6, %v4004_v53  ;;  %v17029_v53 = vpack.c.bf16 %v4573_v52, %v4572_v51  ;;  %v4870_v51 = vld [vmem:[%s20717_s4 + $0x64] sm:$0xff]  ;;  %v4871_v52 = vld [vmem:[%s20717_s4 + $0x6c] sm:$0xf] }
0x1238   :  { %15481 = vmatmul.mubr.msk.f32.gmra.mrb[10].mxu1 %vm497_vm6, %v4005_v54 }
0x1239   :  { %15519 = vmatprep.mubr.msk.f32.mxu1 %vm55_vm0, %v18203_v29 }
0x1307   :  { %v15479_v56 = vpop.f32.mrb[8].mxu1 }
0x1308   :  { %v4116_v57 = vadd.f32 %v15479_v56, %v13587_v55  ;;  %v4085_v58 = vpop.f32.mrb[9].mxu1 }
0x1309   :  { %v4115_v59 = vadd.f32 %v13587_v55, %v4085_v58 }
0x130a   :  { %v13589_v60 = vmul.f32 -1.442695, %v4116_v57 }
0x130b   :  { %v13588_v61 = vmul.f32 -1.442695, %v4115_v59  ;;  %v15482_v62 = vpop.f32.mrb[10].mxu1 }
0x130c   :  { %18027 = vpow2.f32 %v13589_v60  ;;  %v4118_v63 = vadd.f32 %v15482_v62, %v13587_v55  ;;  %v4095_v0 = vpop.f32.mrb[11].mxu1 }
0x130d   :  { %18029 = vpow2.f32 %v13588_v61  ;;  %v4117_v1 = vadd.f32 %v13587_v55, %v4095_v0  ;;  %v4574_v0 = vld [vmem:[%s20717_s4 + $0x48] sm:$0xff] }
0x130e   :  { %v13591_v3 = vmul.f32 -1.442695, %v4118_v63 }
0x130f   :  { %v13590_v5 = vmul.f32 -1.442695, %v4117_v1 }
0x1310   :  { %18031 = vpow2.f32 %v13591_v3 }
0x1311   :  { %18033 = vpow2.f32 %v13590_v5 }
0x1316   :  { %v18028_v6 = vpop.eup %18027 }
0x1317   :  { %v18030_v7 = vpop.eup %18029  ;;  %v4132_v8 = vadd.f32 1.0, %v18028_v6  ;;  %v4472_v6 = vld [vmem:[%s20717_s4] sm:$0xff] }
0x1318   :  { %v4131_v11 = vadd.f32 1.0, %v18030_v7  ;;  %v4473_v7 = vld [vmem:[%s20717_s4 + $0x8] sm:$0xff] }
0x1319   :  { %18035 = vrcp.f32 %v4132_v8  ;;  %v17039_v8 = vpack.c.bf16 %v4473_v7, %v4472_v6 }
0x131a   :  { %v18032_v12 = vpop.eup %18031  ;;  %18037 = vrcp.f32 %v4131_v11 }
0x131b   :  { %v18034_v13 = vpop.eup %18033  ;;  %v4134_v14 = vadd.f32 1.0, %v18032_v12 }
0x131c   :  { %v4133_v15 = vadd.f32 1.0, %v18034_v13 }
0x131d   :  { %18039 = vrcp.f32 %v4134_v14 }
0x131e   :  { %18041 = vrcp.f32 %v4133_v15 }
0x1323   :  { %v18036_v16 = vpop.eup %18035 }
0x1324   :  { %v18038_v17 = vpop.eup %18037  ;;  %v18585_v18 = vmul.f32 %v18036_v16, %v4116_v57 }
0x1325   :  { %v18587_v19 = vmul.f32 %v18038_v17, %v4115_v59 }
0x1327   :  { %v18040_v20 = vpop.eup %18039  ;;  %v16997_v21 = vpack.c.bf16 %v18585_v18, %v18587_v19 }
0x1328   :  { %v18042_v22 = vpop.eup %18041  ;;  %v18591_v23 = vmul.f32 %v18040_v20, %v4118_v63  ;;  %v4474_v20 = vld [vmem:[%s20717_s4 + $0x10] sm:$0xff] }
0x1329   :  { %v18593_v24 = vmul.f32 %v18042_v22, %v4117_v1  ;;  %16998 = vmatprep.subr.bf16.mxu0 %v16997_v21  ;;  %v4575_v1 = vld [vmem:[%s20717_s4 + $0x50] sm:$0xf] }
0x132a   :  { %17000 = vmatpush3.bf16.msra.mxu0 %v16997_v21  ;;  %v17033_v3 = vpack.c.bf16 %v4575_v1, %v4574_v0 }
0x132b   :  { %v17001_v25 = vpack.c.bf16 %v18591_v23, %v18593_v24 }
0x132d   :  { %17002 = vmatprep.subr.bf16.mxu0 %v17001_v25 }
0x132e   :  { %17004 = vmatpush3.bf16.msra.mxu0 %v17001_v25 }
0x132f   :  { %17006 = vmatprep.subr.bf16.mxu0 %v16997_v21 }
0x1331   :  { %15492 = vmatmul.mubr.msk.f32.vlgmr.msra.gmra.mrb[80].mxu0 %vm55_vm0, %v18092_v26 }
0x1332   :  { %17008 = vmatpush3.bf16.msra.mxu0 %v16997_v21  ;;  %15494 = vmatprep.mubr.msk.f32.mxu0 %vm55_vm0, %v18093_v28  ;;  %v4475_v21 = vld [vmem:[%s20717_s4 + $0x18] sm:$0xff] }
0x1333   :  { %17010 = vmatprep.subr.bf16.mxu0 %v17001_v25 }
0x1335   :  { %15495 = vmatmul.mubr.msk.f32.gmra.mrb[82].mxu0 %vm55_vm0, %v18094_v30 }
0x1336   :  { %17012 = vmatpush3.bf16.msra.mxu0 %v17001_v25  ;;  %15505 = vmatprep.mubr.msk.f32.mxu0 %vm55_vm0, %v18203_v29 }
0x1339   :  { %15506 = vmatmul.mubr.msk.f32.vlgmr.msra.gmra.mrb[84].mxu0 %vm55_vm0, %v18201_v27 }
0x133a   :  { %15508 = vmatprep.mubr.msk.f32.mxu0 %vm55_vm0, %v18213_v40 }
0x133d   :  { %15509 = vmatmul.mubr.msk.f32.gmra.mrb[86].mxu0 %vm55_vm0, %v18207_v38 }
0x133e   :  { %15533 = vmatprep.mubr.msk.f32.mxu0 %vm55_vm0, %v18203_v29 }
0x1404   :  { %v15493_v2 = vpop.f32.mrb[80].mxu0 }
0x1405   :  { %v4213_v4 = vpop.f32.mrb[81].mxu0 }
0x1406   :  { %v17013_v31 = vpack.c.bf16 %v15493_v2, %v4213_v4 }
0x1408   :  { %v15496_v32 = vpop.f32.mrb[82].mxu0  ;;  %17014 = vmatprep.subr.bf16.mxu1 %v17013_v31 }
0x1409   :  { %v4223_v10 = vpop.f32.mrb[83].mxu0  ;;  %17016 = vmatpush3.bf16.msra.mxu1 %v17013_v31  ;;  %v17043_v31 = vpack.c.bf16 %v4475_v21, %v4474_v20 }
0x140a   :  { %v17017_v33 = vpack.c.bf16 %v15496_v32, %v4223_v10 }
0x140c   :  { %v15507_v9 = vpop.f32.mrb[84].mxu0  ;;  %17018 = vmatprep.subr.bf16.mxu1 %v17017_v33 }
0x140d   :  { %v4298_v34 = vpop.f32.mrb[85].mxu0  ;;  %17020 = vmatpush3.bf16.msra.mxu1 %v17017_v33  ;;  %v4476_v33 = vld [vmem:[%s20717_s4 + $0x20] sm:$0xff] }
0x140e   :  { %17030 = vmatprep.subr.bf16.mxu1 %v17029_v53 }
0x1410   :  { %v15510_v35 = vpop.f32.mrb[86].mxu0  ;;  %15520 = vmatmul.mubr.msk.f32.vlgmr.msra.gmra.mrb[12].mxu1 %vm55_vm0, %v18201_v27 }
0x1411   :  { %v4308_v36 = vpop.f32.mrb[87].mxu0  ;;  %15522 = vmatprep.mubr.msk.f32.mxu1 %vm55_vm0, %v18213_v40  ;;  %17032 = vmatpush3.bf16.msra.mxu1 %v17029_v53  ;;  %v17063_v53 = vpack.c.bf16 %v4871_v52, %v4870_v51  ;;  %v5473_v52 = vld [vmem:[%s20717_s4 + $0xb8] sm:$0xff] }
0x1412   :  { %17035 = vmatprep.subr.msk.bf16.mxu1 %vm18666_vm11, %v17033_v3 }
0x1414   :  { %15523 = vmatmul.mubr.msk.f32.gmra.mrb[14].mxu1 %vm55_vm0, %v18207_v38 }
0x1415   :  { %17038 = vmatpush3.bf16.msk.msra.mxu1 %vm18666_vm11, %v17033_v3 }
0x1416   :  { %17040 = vmatprep.subr.bf16.mxu1 %v17039_v8 }
0x14e3   :  { %v15521_v37 = vpop.f32.mrb[12].mxu1 }
0x14e4   :  { %v4403_v39 = vmul.f32 2.0, %v15521_v37  ;;  %v4383_v41 = vpop.f32.mrb[13].mxu1 }
0x14e5   :  { %v4402_v42 = vmul.f32 2.0, %v4383_v41  ;;  %v4478_v41 = vld [vmem:[%s20717_s4 + $0x30] sm:$0xff] }
0x14e6   :  { %v4407_v43 = vsub.f32 %v4403_v39, %v15493_v2 }
0x14e7   :  { %v4406_v44 = vsub.f32 %v4402_v42, %v4213_v4  ;;  %v15524_v45 = vpop.f32.mrb[14].mxu1 }
0x14e8   :  { %v4405_v46 = vmul.f32 2.0, %v15524_v45  ;;  %4437 = vrot.lane.b32.xlu1 %v4407_v43, %s18102_s30  ;;  %v4393_v47 = vpop.f32.mrb[15].mxu1  ;;  %v4868_v43 = vld [vmem:[%s20717_s4 + $0x54] sm:$0xff] }
0x14e9   :  { %v4404_v48 = vmul.f32 2.0, %v4393_v47  ;;  %4435 = vrot.lane.b32.xlu0 %v4406_v44, %s18102_s30  ;;  %v4869_v44 = vld [vmem:[%s20717_s4 + $0x5c] sm:$0xff] }
0x14ea   :  { %v4409_v49 = vsub.f32 %v4405_v46, %v15496_v32  ;;  %v17059_v46 = vpack.c.bf16 %v4869_v44, %v4868_v43 }
0x14eb   :  { %v4408_v50 = vsub.f32 %v4404_v48, %v4223_v10 }
0x14ec   :  { %4441 = vrot.lane.b32.xlu1 %v4409_v49, %s18102_s30 }
0x14ed   :  { %4439 = vrot.lane.b32.xlu0 %v4408_v50, %s18102_s30 }
0x14f0   :  { %4416 = vrot.lane.b32.xlu1 %v15493_v2, %s18102_s30 }
0x14f1   :  { %4414 = vrot.lane.b32.xlu0 %v4213_v4, %s18102_s30 }
0x14f4   :  { %4420 = vrot.lane.b32.xlu1 %v15496_v32, %s18102_s30 }
0x14f5   :  { %4418 = vrot.lane.b32.xlu0 %v4223_v10, %s18102_s30 }
0x155a   :  { %v4438_v54 = vpop.permute.xlu1 %4437 }
0x155b   :  { %v4436_v55 = vpop.permute.xlu0 %4435  ;;  %v18632_v56 = vsel %vm4426_vm8, %v15507_v9, %v4438_v54  ;;  %v4477_v9 = vld [vmem:[%s20717_s4 + $0x28] sm:$0xff]  ;;  %v5069_v54 = vld [vmem:[%s20717_s4 + $0x70] sm:$0xff] }
0x155c   :  { %4457 = vrot.lane.b32.xlu1 %v18632_v56, %s18103_s14  ;;  %v18636_v57 = vsel %vm4426_vm8, %v4298_v34, %v4436_v55  ;;  %v17047_v37 = vpack.c.bf16 %v4477_v9, %v4476_v33  ;;  %v5070_v55 = vld [vmem:[%s20717_s4 + $0x78] sm:$0xff]  ;;  %v5273_v9 = vld [vmem:[%s20717_s4 + $0xa4] sm:$0xf] }
0x155d   :  { %4455 = vrot.lane.b32.xlu0 %v18636_v57, %s18103_s14  ;;  %v17021_v58 = vpack.c.bf16 %v18632_v56, %v18636_v57  ;;  %v5272_v33 = vld [vmem:[%s20717_s4 + $0x9c] sm:$0xff] }
0x155e   :  { %v4442_v59 = vpop.permute.xlu1 %4441 }
0x155f   :  { %v4440_v60 = vpop.permute.xlu0 %4439  ;;  %17022 = vmatprep.subr.bf16.mxu0 %v17021_v58  ;;  %v18642_v61 = vsel %vm4426_vm8, %v15510_v35, %v4442_v59 }
0x1560   :  { %17024 = vmatpush3.bf16.msra.mxu0 %v17021_v58  ;;  %4461 = vrot.lane.b32.xlu1 %v18642_v61, %s18103_s14  ;;  %v18646_v62 = vsel %vm4426_vm8, %v4308_v36, %v4440_v60  ;;  %v17077_v58 = vpack.c.bf16 %v5070_v55, %v5069_v54  ;;  %v5672_v55 = vld [vmem:[%s20717_s4 + $0xc4] sm:$0xff] }
0x1561   :  { %4459 = vrot.lane.b32.xlu0 %v18646_v62, %s18103_s14  ;;  %v17025_v63 = vpack.c.bf16 %v18642_v61, %v18646_v62 }
0x1562   :  { %v4417_v11 = vpop.permute.xlu1 %4416 }
0x1563   :  { %17026 = vmatprep.subr.bf16.mxu0 %v17025_v63  ;;  %v4415_v12 = vpop.permute.xlu0 %4414  ;;  %v4428_v16 = vsel %vm4426_vm8, %v18585_v18, %v4417_v11 }
0x1564   :  { %17028 = vmatpush3.bf16.msra.mxu0 %v17025_v63  ;;  %v4427_v22 = vsel %vm4426_vm8, %v18587_v19, %v4415_v12 }
0x1566   :  { %v4421_v25 = vpop.permute.xlu1 %4420 }
0x1567   :  { %15534 = vmatmul.mubr.msk.f32.vlgmr.msra.gmra.mrb[88].mxu0 %vm55_vm0, %v18201_v27  ;;  %v4419_v28 = vpop.permute.xlu0 %4418  ;;  %v4430_v32 = vsel %vm4426_vm8, %v18591_v23, %v4421_v25 }
0x1568   :  { %15536 = vmatprep.mubr.msk.f32.mxu0 %vm55_vm0, %v18213_v40  ;;  %v4429_v34 = vsel %vm4426_vm8, %v18593_v24, %v4419_v28 }
0x156b   :  { %15537 = vmatmul.mubr.msk.f32.gmra.mrb[90].mxu0 %vm55_vm0, %v18207_v38 }
0x156c   :  { %15581 = vmatprep.mubr.msk.f32.mxu0 %vm55_vm0, %v18203_v29 }
0x15ce   :  { %v4458_v42 = vpop.permute.xlu1 %4457 }
0x15cf   :  { %v4456_v23 = vpop.permute.xlu0 %4455  ;;  %v4469_v47 = vsel %vm4467_vm12, %v4428_v16, %v4458_v42 }
0x15d0   :  { %v4468_v39 = vsel %vm4467_vm12, %v4427_v22, %v4456_v23  ;;  %v5472_v23 = vld [vmem:[%s20717_s4 + $0xb0] sm:$0xff] }
0x15d2   :  { %v4462_v48 = vpop.permute.xlu1 %4461 }
0x15d3   :  { %v4460_v45 = vpop.permute.xlu0 %4459  ;;  %v4471_v50 = vsel %vm4467_vm12, %v4430_v32, %v4462_v48 }
0x15d4   :  { %v4470_v49 = vsel %vm4467_vm12, %v4429_v34, %v4460_v45 }
0x163a   :  { %v15535_v13 = vpop.f32.mrb[88].mxu0 }
0x163b   :  { %v4565_v14 = vmul.f32 2.0, %v15535_v13  ;;  %v4545_v15 = vpop.f32.mrb[89].mxu0 }
0x163c   :  { %v4564_v17 = vmul.f32 2.0, %v4545_v15  ;;  %v5270_v15 = vld [vmem:[%s20717_s4 + $0x8c] sm:$0xff] }
0x163d   :  { %v18690_v26 = vsub.f32 %v4565_v14, %v4428_v16  ;;  %v5271_v16 = vld [vmem:[%s20717_s4 + $0x94] sm:$0xff] }
0x163e   :  { %v18692_v30 = vsub.f32 %v4564_v17, %v4427_v22  ;;  %v15538_v2 = vpop.f32.mrb[90].mxu0  ;;  %v17095_v17 = vpack.c.bf16 %v5271_v16, %v5270_v15  ;;  %v5873_v16 = vld [vmem:[%s20717_s4 + $0xe0] sm:$0xff] }
0x163f   :  { %v4567_v18 = vmul.f32 2.0, %v15538_v2  ;;  %v4555_v4 = vpop.f32.mrb[91].mxu0 }
0x1640   :  { %v4566_v10 = vmul.f32 2.0, %v4555_v4  ;;  %15547 = vmatprep.mubr.msk.f32.mxu1 %vm4467_vm12, %v18692_v30  ;;  %v17051_v19 = vpack.c.bf16 %v18690_v26, %v18692_v30 }
0x1641   :  { %v18708_v35 = vsub.f32 %v4567_v18, %v4430_v32  ;;  %15548 = vmatmul.mubr.msk.f32.vlgmr.msra.gmra.mrb[16].mxu1 %vm4467_vm12, %v18690_v26 }
0x1642   :  { %v18712_v36 = vsub.f32 %v4566_v10, %v4429_v34  ;;  %17042 = vmatpush3.bf16.msra.mxu1 %v17039_v8  ;;  %17052 = vmatprep.subr.bf16.mxu0 %v17051_v19  ;;  %v17099_v34 = vpack.c.bf16 %v5273_v9, %v5272_v33  ;;  %v5875_v9 = vld [vmem:[%s20717_s4 + $0xf0] sm:$0xff] }
0x1643   :  { %17054 = vmatpush3.bf16.msra.mxu0 %v17051_v19  ;;  %17044 = vmatprep.subr.bf16.mxu1 %v17043_v31 }
0x1644   :  { %15550 = vmatprep.mubr.msk.f32.mxu1 %vm4467_vm12, %v18712_v36  ;;  %v17055_v24 = vpack.c.bf16 %v18708_v35, %v18712_v36 }
0x1645   :  { %15551 = vmatmul.mubr.msk.f32.gmra.mrb[18].mxu1 %vm4467_vm12, %v18708_v35 }
0x1646   :  { %17046 = vmatpush3.bf16.msra.mxu1 %v17043_v31  ;;  %15567 = vmatprep.mubr.msk.f32.mxu1 %vm4677_vm13, %v4468_v39 }
0x1647   :  { %17056 = vmatprep.subr.bf16.mxu0 %v17055_v24  ;;  %17048 = vmatprep.subr.bf16.mxu1 %v17047_v37 }
0x1648   :  { %17058 = vmatpush3.bf16.msra.mxu0 %v17055_v24 }
0x164a   :  { %17050 = vmatpush3.bf16.msra.mxu1 %v17047_v37 }
0x164b   :  { %15582 = vmatmul.mubr.msk.f32.vlgmr.msra.gmra.mrb[92].mxu0 %vm55_vm0, %v18201_v27  ;;  %15565 = vmatprep.subr.mxu1 %v4478_v41 }
0x164c   :  { %15584 = vmatprep.mubr.msk.f32.mxu0 %vm55_vm0, %v18213_v40 }
0x164e   :  { %15566 = vmatpush3.msra.mxu1 %v4478_v41 }
0x164f   :  { %15568 = vmatmul.mubr.msk.f32.vlgmr.msra.gmra.mrb[16].mxu1 %vm4677_vm13, %v4469_v47  ;;  %15585 = vmatmul.mubr.msk.f32.gmra.mrb[94].mxu0 %vm55_vm0, %v18207_v38 }
0x1650   :  { %15570 = vmatprep.mubr.msk.f32.mxu1 %vm4677_vm13, %v4470_v49  ;;  %15609 = vmatprep.mubr.msk.f32.mxu0 %vm55_vm0, %v18203_v29 }
0x1651   :  { %17060 = vmatprep.subr.bf16.mxu1 %v17059_v46 }
0x1652   :  { %17062 = vmatpush3.bf16.msra.mxu1 %v17059_v46 }
0x1653   :  { %15571 = vmatmul.mubr.msk.f32.gmra.mrb[18].mxu1 %vm4677_vm13, %v4471_v50  ;;  %17065 = vmatprep.subr.msk.bf16.mxu1 %vm18666_vm11, %v17063_v53 }
0x1656   :  { %17068 = vmatpush3.bf16.msk.msra.mxu1 %vm18666_vm11, %v17063_v53  ;;  %v5474_v53 = vld [vmem:[%s20717_s4 + $0xc0] sm:$0xf] }
0x1657   :  { %17078 = vmatprep.subr.bf16.mxu1 %v17077_v58  ;;  %v17117_v54 = vpack.c.bf16 %v5474_v53, %v5473_v52  ;;  %v6076_v53 = vld [vmem:[%s20717_s4 + $0x10c] sm:$0xff] }
0x171e   :  { %v15583_v59 = vpop.f32.mrb[92].mxu0 }
0x171f   :  { %v4861_v60 = vmul.f32 2.0, %v15583_v59  ;;  %v4841_v63 = vpop.f32.mrb[93].mxu0 }
0x1720   :  { %v4860_v0 = vmul.f32 2.0, %v4841_v63 }
0x1721   :  { %v18762_v1 = vsub.f32 %v4861_v60, %v18632_v56 }
0x1722   :  { %v18765_v3 = vsub.f32 %v4860_v0, %v18636_v57  ;;  %v15586_v6 = vpop.f32.mrb[94].mxu0 }
0x1723   :  { %v4863_v7 = vmul.f32 2.0, %v15586_v6  ;;  %v4851_v8 = vpop.f32.mrb[95].mxu0 }
0x1724   :  { %v4862_v11 = vmul.f32 2.0, %v4851_v8  ;;  %15595 = vmatprep.mubr.msk.f32.mxu1 %vm4467_vm12, %v18765_v3  ;;  %v17069_v12 = vpack.c.bf16 %v18762_v1, %v18765_v3 }
0x1725   :  { %v18772_v13 = vsub.f32 %v4863_v7, %v18642_v61  ;;  %15596 = vmatmul.mubr.msk.f32.vlgmr.msra.gmra.mrb[16].mxu1 %vm4467_vm12, %v18762_v1  ;;  %v5071_v61 = vld [vmem:[%s20717_s4 + $0x80] sm:$0xff] }
0x1726   :  { %v18777_v56 = vsub.f32 %v4862_v11, %v18646_v62  ;;  %17070 = vmatprep.subr.bf16.mxu0 %v17069_v12  ;;  %17080 = vmatpush3.bf16.msra.mxu1 %v17077_v58  ;;  %v5072_v62 = vld [vmem:[%s20717_s4 + $0x88] sm:$0xf]  ;;  %v5673_v58 = vld [vmem:[%s20717_s4 + $0xcc] sm:$0xff] }
0x1727   :  { %17072 = vmatpush3.bf16.msra.mxu0 %v17069_v12  ;;  %v17081_v14 = vpack.c.bf16 %v5072_v62, %v5071_v61  ;;  %v17131_v59 = vpack.c.bf16 %v5673_v58, %v5672_v55  ;;  %v5674_v62 = vld [vmem:[%s20717_s4 + $0xd4] sm:$0xff] }
0x1728   :  { %15598 = vmatprep.mubr.msk.f32.mxu1 %vm4467_vm12, %v18777_v56  ;;  %v17073_v57 = vpack.c.bf16 %v18772_v13, %v18777_v56  ;;  %v6275_v58 = vld [vmem:[%s20717_s4 + $0x118] sm:$0xff] }
0x1729   :  { %15599 = vmatmul.mubr.msk.f32.gmra.mrb[18].mxu1 %vm4467_vm12, %v18772_v13  ;;  %17083 = vmatprep.subr.msk.bf16.mxu1 %vm18666_vm11, %v17081_v14 }
0x172a   :  { %17074 = vmatprep.subr.bf16.mxu0 %v17073_v57  ;;  %17086 = vmatpush3.bf16.msk.msra.mxu1 %vm18666_vm11, %v17081_v14  ;;  %v5675_v14 = vld [vmem:[%s20717_s4 + $0xdc] sm:$0xf] }
0x172b   :  { %17076 = vmatpush3.bf16.msra.mxu0 %v17073_v57  ;;  %17096 = vmatprep.subr.bf16.mxu1 %v17095_v17  ;;  %v17135_v15 = vpack.c.bf16 %v5675_v14, %v5674_v62  ;;  %v6277_v14 = vld [vmem:[%s20717_s4 + $0x128] sm:$0xff] }
0x172e   :  { %15610 = vmatmul.mubr.msk.f32.vlgmr.msra.gmra.mrb[96].mxu0 %vm55_vm0, %v18201_v27 }
0x172f   :  { %15612 = vmatprep.mubr.msk.f32.mxu0 %vm55_vm0, %v18213_v40 }
0x1732   :  { %15613 = vmatmul.mubr.msk.f32.gmra.mrb[98].mxu0 %vm55_vm0, %v18207_v38 }
0x1733   :  { %15637 = vmatprep.mubr.msk.f32.mxu0 %vm55_vm0, %v18203_v29 }
0x1801   :  { %v15611_v20 = vpop.f32.mrb[96].mxu0 }
0x1802   :  { %v5062_v21 = vmul.f32 2.0, %v15611_v20  ;;  %v5042_v22 = vpop.f32.mrb[97].mxu0 }
0x1803   :  { %v5061_v25 = vmul.f32 2.0, %v5042_v22 }
0x1804   :  { %v18810_v28 = vsub.f32 %v5062_v21, %v18690_v26 }
0x1805   :  { %v18813_v2 = vsub.f32 %v5061_v25, %v18692_v30  ;;  %v15614_v18 = vpop.f32.mrb[98].mxu0 }
0x1806   :  { %v5064_v4 = vmul.f32 2.0, %v15614_v18  ;;  %v5052_v31 = vpop.f32.mrb[99].mxu0 }
0x1807   :  { %v5063_v32 = vmul.f32 2.0, %v5052_v31  ;;  %15623 = vmatprep.mubr.msk.f32.mxu1 %vm4467_vm12, %v18813_v2  ;;  %v17087_v10 = vpack.c.bf16 %v18810_v28, %v18813_v2 }
0x1808   :  { %v18820_v19 = vsub.f32 %v5064_v4, %v18708_v35  ;;  %15624 = vmatmul.mubr.msk.f32.vlgmr.msra.gmra.mrb[16].mxu1 %vm4467_vm12, %v18810_v28  ;;  %v5471_v35 = vld [vmem:[%s20717_s4 + $0xa8] sm:$0xff] }
0x1809   :  { %v18825_v26 = vsub.f32 %v5063_v32, %v18712_v36  ;;  %17088 = vmatprep.subr.bf16.mxu0 %v17087_v10  ;;  %17098 = vmatpush3.bf16.msra.mxu1 %v17095_v17  ;;  %v17113_v36 = vpack.c.bf16 %v5472_v23, %v5471_v35  ;;  %v5874_v17 = vld [vmem:[%s20717_s4 + $0xe8] sm:$0xff]  ;;  %v6074_v23 = vld [vmem:[%s20717_s4 + $0xfc] sm:$0xff] }
0x180a   :  { %17090 = vmatpush3.bf16.msra.mxu0 %v17087_v10  ;;  %17101 = vmatprep.subr.msk.bf16.mxu1 %vm18666_vm11, %v17099_v34  ;;  %v17149_v20 = vpack.c.bf16 %v5874_v17, %v5873_v16  ;;  %v6476_v17 = vld [vmem:[%s20717_s4 + $0x134] sm:$0xff] }
0x180b   :  { %15626 = vmatprep.mubr.msk.f32.mxu1 %vm4467_vm12, %v18825_v26  ;;  %v17091_v30 = vpack.c.bf16 %v18820_v19, %v18825_v26 }
0x180c   :  { %15627 = vmatmul.mubr.msk.f32.gmra.mrb[18].mxu1 %vm4467_vm12, %v18820_v19 }
0x180d   :  { %17092 = vmatprep.subr.bf16.mxu0 %v17091_v30  ;;  %17104 = vmatpush3.bf16.msk.msra.mxu1 %vm18666_vm11, %v17099_v34  ;;  %v5876_v34 = vld [vmem:[%s20717_s4 + $0xf8] sm:$0xf] }
0x180e   :  { %17094 = vmatpush3.bf16.msra.mxu0 %v17091_v30  ;;  %17114 = vmatprep.subr.bf16.mxu1 %v17113_v36  ;;  %v17153_v35 = vpack.c.bf16 %v5876_v34, %v5875_v9  ;;  %v6478_v34 = vld [vmem:[%s20717_s4 + $0x144] sm:$0xff] }
0x1811   :  { %15638 = vmatmul.mubr.msk.f32.vlgmr.msra.gmra.mrb[100].mxu0 %vm55_vm0, %v18201_v27 }
0x1812   :  { %15640 = vmatprep.mubr.msk.f32.mxu0 %vm55_vm0, %v18213_v40 }
0x1815   :  { %15641 = vmatmul.mubr.msk.f32.gmra.mrb[102].mxu0 %vm55_vm0, %v18207_v38 }
0x1816   :  { %15665 = vmatprep.mubr.msk.f32.mxu0 %vm55_vm0, %v18203_v29 }
0x18e4   :  { %v15639_v37 = vpop.f32.mrb[100].mxu0 }
0x18e5   :  { %v5263_v24 = vmul.f32 2.0, %v15639_v37  ;;  %v5243_v39 = vpop.f32.mrb[101].mxu0 }
0x18e6   :  { %v5262_v41 = vmul.f32 2.0, %v5243_v39 }
0x18e7   :  { %v18858_v42 = vsub.f32 %v5263_v24, %v18762_v1 }
0x18e8   :  { %v18861_v43 = vsub.f32 %v5262_v41, %v18765_v3  ;;  %v15642_v44 = vpop.f32.mrb[102].mxu0 }
0x18e9   :  { %v5265_v45 = vmul.f32 2.0, %v15642_v44  ;;  %v5253_v46 = vpop.f32.mrb[103].mxu0 }
0x18ea   :  { %v5264_v47 = vmul.f32 2.0, %v5253_v46  ;;  %15651 = vmatprep.mubr.msk.f32.mxu1 %vm4467_vm12, %v18861_v43  ;;  %v17105_v48 = vpack.c.bf16 %v18858_v42, %v18861_v43 }
0x18eb   :  { %v18868_v49 = vsub.f32 %v5265_v45, %v18772_v13  ;;  %15652 = vmatmul.mubr.msk.f32.vlgmr.msra.gmra.mrb[16].mxu1 %vm4467_vm12, %v18858_v42 }
0x18ec   :  { %v18873_v50 = vsub.f32 %v5264_v47, %v18777_v56  ;;  %17106 = vmatprep.subr.bf16.mxu0 %v17105_v48  ;;  %17116 = vmatpush3.bf16.msra.mxu1 %v17113_v36  ;;  %v6075_v36 = vld [vmem:[%s20717_s4 + $0x104] sm:$0xff] }
0x18ed   :  { %17108 = vmatpush3.bf16.msra.mxu0 %v17105_v48  ;;  %17119 = vmatprep.subr.msk.bf16.mxu1 %vm18666_vm11, %v17117_v54  ;;  %v17167_v37 = vpack.c.bf16 %v6075_v36, %v6074_v23  ;;  %v6677_v36 = vld [vmem:[%s20717_s4 + $0x150] sm:$0xff] }
0x18ee   :  { %15654 = vmatprep.mubr.msk.f32.mxu1 %vm4467_vm12, %v18873_v50  ;;  %v17109_v51 = vpack.c.bf16 %v18868_v49, %v18873_v50 }
0x18ef   :  { %15655 = vmatmul.mubr.msk.f32.gmra.mrb[18].mxu1 %vm4467_vm12, %v18868_v49 }
0x18f0   :  { %17110 = vmatprep.subr.bf16.mxu0 %v17109_v51  ;;  %17122 = vmatpush3.bf16.msk.msra.mxu1 %vm18666_vm11, %v17117_v54  ;;  %v6077_v54 = vld [vmem:[%s20717_s4 + $0x114] sm:$0xf] }
0x18f1   :  { %17112 = vmatpush3.bf16.msra.mxu0 %v17109_v51  ;;  %17132 = vmatprep.subr.bf16.mxu1 %v17131_v59  ;;  %v17171_v55 = vpack.c.bf16 %v6077_v54, %v6076_v53  ;;  %v6679_v54 = vld [vmem:[%s20717_s4 + $0x160] sm:$0xff] }
0x18f4   :  { %15666 = vmatmul.mubr.msk.f32.vlgmr.msra.gmra.mrb[104].mxu0 %vm55_vm0, %v18201_v27 }
0x18f5   :  { %15668 = vmatprep.mubr.msk.f32.mxu0 %vm55_vm0, %v18213_v40 }
0x18f8   :  { %15669 = vmatmul.mubr.msk.f32.gmra.mrb[106].mxu0 %vm55_vm0, %v18207_v38 }
0x18f9   :  { %15693 = vmatprep.mubr.msk.f32.mxu0 %vm55_vm0, %v18203_v29 }
0x19c7   :  { %v15667_v60 = vpop.f32.mrb[104].mxu0 }
0x19c8   :  { %v5464_v63 = vmul.f32 2.0, %v15667_v60  ;;  %v5444_v0 = vpop.f32.mrb[105].mxu0 }
0x19c9   :  { %v5463_v1 = vmul.f32 2.0, %v5444_v0 }
0x19ca   :  { %v18906_v3 = vsub.f32 %v5464_v63, %v18810_v28 }
0x19cb   :  { %v18909_v6 = vsub.f32 %v5463_v1, %v18813_v2  ;;  %v15670_v7 = vpop.f32.mrb[106].mxu0 }
0x19cc   :  { %v5466_v8 = vmul.f32 2.0, %v15670_v7  ;;  %v5454_v11 = vpop.f32.mrb[107].mxu0 }
0x19cd   :  { %v5465_v12 = vmul.f32 2.0, %v5454_v11  ;;  %15679 = vmatprep.mubr.msk.f32.mxu1 %vm4467_vm12, %v18909_v6  ;;  %v17123_v13 = vpack.c.bf16 %v18906_v3, %v18909_v6 }
0x19ce   :  { %v18916_v56 = vsub.f32 %v5466_v8, %v18820_v19  ;;  %15680 = vmatmul.mubr.msk.f32.vlgmr.msra.gmra.mrb[16].mxu1 %vm4467_vm12, %v18906_v3 }
0x19cf   :  { %v18921_v57 = vsub.f32 %v5465_v12, %v18825_v26  ;;  %17124 = vmatprep.subr.bf16.mxu0 %v17123_v13  ;;  %17134 = vmatpush3.bf16.msra.mxu1 %v17131_v59  ;;  %v6276_v59 = vld [vmem:[%s20717_s4 + $0x120] sm:$0xff] }
0x19d0   :  { %17126 = vmatpush3.bf16.msra.mxu0 %v17123_v13  ;;  %17137 = vmatprep.subr.msk.bf16.mxu1 %vm18666_vm11, %v17135_v15  ;;  %v17185_v60 = vpack.c.bf16 %v6276_v59, %v6275_v58  ;;  %v6878_v59 = vld [vmem:[%s20717_s4 + $0x16c] sm:$0xff] }
0x19d1   :  { %15682 = vmatprep.mubr.msk.f32.mxu1 %vm4467_vm12, %v18921_v57  ;;  %v17127_v61 = vpack.c.bf16 %v18916_v56, %v18921_v57 }
0x19d2   :  { %15683 = vmatmul.mubr.msk.f32.gmra.mrb[18].mxu1 %vm4467_vm12, %v18916_v56 }
0x19d3   :  { %17128 = vmatprep.subr.bf16.mxu0 %v17127_v61  ;;  %17140 = vmatpush3.bf16.msk.msra.mxu1 %vm18666_vm11, %v17135_v15  ;;  %v6278_v15 = vld [vmem:[%s20717_s4 + $0x130] sm:$0xf] }
0x19d4   :  { %17130 = vmatpush3.bf16.msra.mxu0 %v17127_v61  ;;  %17150 = vmatprep.subr.bf16.mxu1 %v17149_v20  ;;  %v17189_v16 = vpack.c.bf16 %v6278_v15, %v6277_v14  ;;  %v6880_v15 = vld [vmem:[%s20717_s4 + $0x17c] sm:$0xff] }
0x19d7   :  { %15694 = vmatmul.mubr.msk.f32.vlgmr.msra.gmra.mrb[108].mxu0 %vm55_vm0, %v18201_v27 }
0x19d8   :  { %15696 = vmatprep.mubr.msk.f32.mxu0 %vm55_vm0, %v18213_v40 }
0x19db   :  { %15697 = vmatmul.mubr.msk.f32.gmra.mrb[110].mxu0 %vm55_vm0, %v18207_v38 }
0x19dc   :  { %15721 = vmatprep.mubr.msk.f32.mxu0 %vm55_vm0, %v18203_v29 }
0x1aaa   :  { %v15695_v21 = vpop.f32.mrb[108].mxu0 }
0x1aab   :  { %v5665_v22 = vmul.f32 2.0, %v15695_v21  ;;  %v5645_v25 = vpop.f32.mrb[109].mxu0 }
0x1aac   :  { %v5664_v28 = vmul.f32 2.0, %v5645_v25 }
0x1aad   :  { %v18954_v2 = vsub.f32 %v5665_v22, %v18858_v42 }
0x1aae   :  { %v18957_v18 = vsub.f32 %v5664_v28, %v18861_v43  ;;  %v15698_v4 = vpop.f32.mrb[110].mxu0 }
0x1aaf   :  { %v5667_v31 = vmul.f32 2.0, %v15698_v4  ;;  %v5655_v32 = vpop.f32.mrb[111].mxu0 }
0x1ab0   :  { %v5666_v10 = vmul.f32 2.0, %v5655_v32  ;;  %15707 = vmatprep.mubr.msk.f32.mxu1 %vm4467_vm12, %v18957_v18  ;;  %v17141_v19 = vpack.c.bf16 %v18954_v2, %v18957_v18 }
0x1ab1   :  { %v18964_v26 = vsub.f32 %v5667_v31, %v18868_v49  ;;  %15708 = vmatmul.mubr.msk.f32.vlgmr.msra.gmra.mrb[16].mxu1 %vm4467_vm12, %v18954_v2 }
0x1ab2   :  { %v18969_v30 = vsub.f32 %v5666_v10, %v18873_v50  ;;  %17142 = vmatprep.subr.bf16.mxu0 %v17141_v19  ;;  %17152 = vmatpush3.bf16.msra.mxu1 %v17149_v20  ;;  %v6477_v20 = vld [vmem:[%s20717_s4 + $0x13c] sm:$0xff] }
0x1ab3   :  { %17144 = vmatpush3.bf16.msra.mxu0 %v17141_v19  ;;  %17155 = vmatprep.subr.msk.bf16.mxu1 %vm18666_vm11, %v17153_v35  ;;  %v17203_v21 = vpack.c.bf16 %v6477_v20, %v6476_v17  ;;  %v7079_v20 = vld [vmem:[%s20717_s4 + $0x188] sm:$0xff] }
0x1ab4   :  { %15710 = vmatprep.mubr.msk.f32.mxu1 %vm4467_vm12, %v18969_v30  ;;  %v17145_v33 = vpack.c.bf16 %v18964_v26, %v18969_v30 }
0x1ab5   :  { %15711 = vmatmul.mubr.msk.f32.gmra.mrb[18].mxu1 %vm4467_vm12, %v18964_v26 }
0x1ab6   :  { %17146 = vmatprep.subr.bf16.mxu0 %v17145_v33  ;;  %17158 = vmatpush3.bf16.msk.msra.mxu1 %vm18666_vm11, %v17153_v35  ;;  %v6479_v35 = vld [vmem:[%s20717_s4 + $0x14c] sm:$0xf] }
0x1ab7   :  { %17148 = vmatpush3.bf16.msra.mxu0 %v17145_v33  ;;  %17168 = vmatprep.subr.bf16.mxu1 %v17167_v37  ;;  %v17207_v23 = vpack.c.bf16 %v6479_v35, %v6478_v34  ;;  %v7081_v35 = vld [vmem:[%s20717_s4 + $0x198] sm:$0xff] }
0x1aba   :  { %15722 = vmatmul.mubr.msk.f32.vlgmr.msra.gmra.mrb[112].mxu0 %vm55_vm0, %v18201_v27 }
0x1abb   :  { %15724 = vmatprep.mubr.msk.f32.mxu0 %vm55_vm0, %v18213_v40 }
0x1abe   :  { %15725 = vmatmul.mubr.msk.f32.gmra.mrb[114].mxu0 %vm55_vm0, %v18207_v38 }
0x1abf   :  { %15749 = vmatprep.mubr.msk.f32.mxu0 %vm55_vm0, %v18203_v29 }
0x1b8d   :  { %v15723_v24 = vpop.f32.mrb[112].mxu0 }
0x1b8e   :  { %v5866_v39 = vmul.f32 2.0, %v15723_v24  ;;  %v5846_v41 = vpop.f32.mrb[113].mxu0 }
0x1b8f   :  { %v5865_v42 = vmul.f32 2.0, %v5846_v41 }
0x1b90   :  { %v19002_v43 = vsub.f32 %v5866_v39, %v18906_v3 }
0x1b91   :  { %v19005_v44 = vsub.f32 %v5865_v42, %v18909_v6  ;;  %v15726_v45 = vpop.f32.mrb[114].mxu0 }
0x1b92   :  { %v5868_v46 = vmul.f32 2.0, %v15726_v45  ;;  %v5856_v47 = vpop.f32.mrb[115].mxu0 }
0x1b93   :  { %v5867_v48 = vmul.f32 2.0, %v5856_v47  ;;  %15735 = vmatprep.mubr.msk.f32.mxu1 %vm4467_vm12, %v19005_v44  ;;  %v17159_v49 = vpack.c.bf16 %v19002_v43, %v19005_v44 }
0x1b94   :  { %v19012_v50 = vsub.f32 %v5868_v46, %v18916_v56  ;;  %15736 = vmatmul.mubr.msk.f32.vlgmr.msra.gmra.mrb[16].mxu1 %vm4467_vm12, %v19002_v43 }
0x1b95   :  { %v19017_v51 = vsub.f32 %v5867_v48, %v18921_v57  ;;  %17160 = vmatprep.subr.bf16.mxu0 %v17159_v49  ;;  %17170 = vmatpush3.bf16.msra.mxu1 %v17167_v37  ;;  %v6678_v37 = vld [vmem:[%s20717_s4 + $0x158] sm:$0xff] }
0x1b96   :  { %17162 = vmatpush3.bf16.msra.mxu0 %v17159_v49  ;;  %17173 = vmatprep.subr.msk.bf16.mxu1 %vm18666_vm11, %v17171_v55  ;;  %v17221_v24 = vpack.c.bf16 %v6678_v37, %v6677_v36  ;;  %v7280_v37 = vld [vmem:[%s20717_s4 + $0x1a4] sm:$0xff] }
0x1b97   :  { %15738 = vmatprep.mubr.msk.f32.mxu1 %vm4467_vm12, %v19017_v51  ;;  %v17163_v52 = vpack.c.bf16 %v19012_v50, %v19017_v51 }
0x1b98   :  { %15739 = vmatmul.mubr.msk.f32.gmra.mrb[18].mxu1 %vm4467_vm12, %v19012_v50 }
0x1b99   :  { %17164 = vmatprep.subr.bf16.mxu0 %v17163_v52  ;;  %17176 = vmatpush3.bf16.msk.msra.mxu1 %vm18666_vm11, %v17171_v55  ;;  %v6680_v55 = vld [vmem:[%s20717_s4 + $0x168] sm:$0xf] }
0x1b9a   :  { %17166 = vmatpush3.bf16.msra.mxu0 %v17163_v52  ;;  %17186 = vmatprep.subr.bf16.mxu1 %v17185_v60  ;;  %v17225_v58 = vpack.c.bf16 %v6680_v55, %v6679_v54  ;;  %v7282_v55 = vld [vmem:[%s20717_s4 + $0x1b4] sm:$0xff] }
0x1b9d   :  { %15750 = vmatmul.mubr.msk.f32.vlgmr.msra.gmra.mrb[116].mxu0 %vm55_vm0, %v18201_v27 }
0x1b9e   :  { %15752 = vmatprep.mubr.msk.f32.mxu0 %vm55_vm0, %v18213_v40 }
0x1ba1   :  { %15753 = vmatmul.mubr.msk.f32.gmra.mrb[118].mxu0 %vm55_vm0, %v18207_v38 }
0x1ba2   :  { %15777 = vmatprep.mubr.msk.f32.mxu0 %vm55_vm0, %v18203_v29 }
0x1c70   :  { %v15751_v63 = vpop.f32.mrb[116].mxu0 }
0x1c71   :  { %v6067_v0 = vmul.f32 2.0, %v15751_v63  ;;  %v6047_v1 = vpop.f32.mrb[117].mxu0 }
0x1c72   :  { %v6066_v3 = vmul.f32 2.0, %v6047_v1 }
0x1c73   :  { %v19050_v6 = vsub.f32 %v6067_v0, %v18954_v2 }
0x1c74   :  { %v19053_v7 = vsub.f32 %v6066_v3, %v18957_v18  ;;  %v15754_v8 = vpop.f32.mrb[118].mxu0 }
0x1c75   :  { %v6069_v11 = vmul.f32 2.0, %v15754_v8  ;;  %v6057_v12 = vpop.f32.mrb[119].mxu0 }
0x1c76   :  { %v6068_v13 = vmul.f32 2.0, %v6057_v12  ;;  %15763 = vmatprep.mubr.msk.f32.mxu1 %vm4467_vm12, %v19053_v7  ;;  %v17177_v56 = vpack.c.bf16 %v19050_v6, %v19053_v7 }
0x1c77   :  { %v19060_v57 = vsub.f32 %v6069_v11, %v18964_v26  ;;  %15764 = vmatmul.mubr.msk.f32.vlgmr.msra.gmra.mrb[16].mxu1 %vm4467_vm12, %v19050_v6 }
0x1c78   :  { %v19065_v61 = vsub.f32 %v6068_v13, %v18969_v30  ;;  %17178 = vmatprep.subr.bf16.mxu0 %v17177_v56  ;;  %17188 = vmatpush3.bf16.msra.mxu1 %v17185_v60  ;;  %v6879_v60 = vld [vmem:[%s20717_s4 + $0x174] sm:$0xff] }
0x1c79   :  { %17180 = vmatpush3.bf16.msra.mxu0 %v17177_v56  ;;  %17191 = vmatprep.subr.msk.bf16.mxu1 %vm18666_vm11, %v17189_v16  ;;  %v17239_v63 = vpack.c.bf16 %v6879_v60, %v6878_v59  ;;  %v7481_v60 = vld [vmem:[%s20717_s4 + $0x1c0] sm:$0xff] }
0x1c7a   :  { %15766 = vmatprep.mubr.msk.f32.mxu1 %vm4467_vm12, %v19065_v61  ;;  %v17181_v62 = vpack.c.bf16 %v19060_v57, %v19065_v61 }
0x1c7b   :  { %15767 = vmatmul.mubr.msk.f32.gmra.mrb[18].mxu1 %vm4467_vm12, %v19060_v57 }
0x1c7c   :  { %17182 = vmatprep.subr.bf16.mxu0 %v17181_v62  ;;  %17194 = vmatpush3.bf16.msk.msra.mxu1 %vm18666_vm11, %v17189_v16  ;;  %v6881_v16 = vld [vmem:[%s20717_s4 + $0x184] sm:$0xf] }
0x1c7d   :  { %17184 = vmatpush3.bf16.msra.mxu0 %v17181_v62  ;;  %17204 = vmatprep.subr.bf16.mxu1 %v17203_v21  ;;  %v17243_v17 = vpack.c.bf16 %v6881_v16, %v6880_v15  ;;  %v7483_v16 = vld [vmem:[%s20717_s4 + $0x1d0] sm:$0xff] }
0x1c80   :  { %15778 = vmatmul.mubr.msk.f32.vlgmr.msra.gmra.mrb[120].mxu0 %vm55_vm0, %v18201_v27 }
0x1c81   :  { %15780 = vmatprep.mubr.msk.f32.mxu0 %vm55_vm0, %v18213_v40 }
0x1c84   :  { %15781 = vmatmul.mubr.msk.f32.gmra.mrb[122].mxu0 %vm55_vm0, %v18207_v38 }
0x1c85   :  { %15805 = vmatprep.mubr.msk.f32.mxu0 %vm55_vm0, %v18203_v29 }
0x1d53   :  { %v15779_v22 = vpop.f32.mrb[120].mxu0 }
0x1d54   :  { %v6268_v25 = vmul.f32 2.0, %v15779_v22  ;;  %v6248_v28 = vpop.f32.mrb[121].mxu0 }
0x1d55   :  { %v6267_v2 = vmul.f32 2.0, %v6248_v28 }
0x1d56   :  { %v19098_v18 = vsub.f32 %v6268_v25, %v19002_v43 }
0x1d57   :  { %v19101_v4 = vsub.f32 %v6267_v2, %v19005_v44  ;;  %v15782_v31 = vpop.f32.mrb[122].mxu0 }
0x1d58   :  { %v6270_v32 = vmul.f32 2.0, %v15782_v31  ;;  %v6258_v10 = vpop.f32.mrb[123].mxu0 }
0x1d59   :  { %v6269_v19 = vmul.f32 2.0, %v6258_v10  ;;  %15791 = vmatprep.mubr.msk.f32.mxu1 %vm4467_vm12, %v19101_v4  ;;  %v17195_v26 = vpack.c.bf16 %v19098_v18, %v19101_v4 }
0x1d5a   :  { %v19108_v30 = vsub.f32 %v6270_v32, %v19012_v50  ;;  %15792 = vmatmul.mubr.msk.f32.vlgmr.msra.gmra.mrb[16].mxu1 %vm4467_vm12, %v19098_v18 }
0x1d5b   :  { %v19113_v33 = vsub.f32 %v6269_v19, %v19017_v51  ;;  %17196 = vmatprep.subr.bf16.mxu0 %v17195_v26  ;;  %17206 = vmatpush3.bf16.msra.mxu1 %v17203_v21  ;;  %v7080_v21 = vld [vmem:[%s20717_s4 + $0x190] sm:$0xff] }
0x1d5c   :  { %17198 = vmatpush3.bf16.msra.mxu0 %v17195_v26  ;;  %17209 = vmatprep.subr.msk.bf16.mxu1 %vm18666_vm11, %v17207_v23  ;;  %v17257_v22 = vpack.c.bf16 %v7080_v21, %v7079_v20  ;;  %v7682_v21 = vld [vmem:[%s20717_s4 + $0x1dc] sm:$0xff] }
0x1d5d   :  { %15794 = vmatprep.mubr.msk.f32.mxu1 %vm4467_vm12, %v19113_v33  ;;  %v17199_v9 = vpack.c.bf16 %v19108_v30, %v19113_v33 }
0x1d5e   :  { %15795 = vmatmul.mubr.msk.f32.gmra.mrb[18].mxu1 %vm4467_vm12, %v19108_v30 }
0x1d5f   :  { %17200 = vmatprep.subr.bf16.mxu0 %v17199_v9  ;;  %17212 = vmatpush3.bf16.msk.msra.mxu1 %vm18666_vm11, %v17207_v23  ;;  %v7082_v23 = vld [vmem:[%s20717_s4 + $0x1a0] sm:$0xf] }
0x1d60   :  { %17202 = vmatpush3.bf16.msra.mxu0 %v17199_v9  ;;  %17222 = vmatprep.subr.bf16.mxu1 %v17221_v24  ;;  %v17261_v36 = vpack.c.bf16 %v7082_v23, %v7081_v35  ;;  %v7684_v23 = vld [vmem:[%s20717_s4 + $0x1ec] sm:$0xff] }
0x1d63   :  { %15806 = vmatmul.mubr.msk.f32.vlgmr.msra.gmra.mrb[124].mxu0 %vm55_vm0, %v18201_v27 }
0x1d64   :  { %15808 = vmatprep.mubr.msk.f32.mxu0 %vm55_vm0, %v18213_v40 }
0x1d67   :  { %15809 = vmatmul.mubr.msk.f32.gmra.mrb[126].mxu0 %vm55_vm0, %v18207_v38 }
0x1d68   :  { %15833 = vmatprep.mubr.msk.f32.mxu0 %vm55_vm0, %v18203_v29 }
0x1e36   :  { %v15807_v39 = vpop.f32.mrb[124].mxu0 }
0x1e37   :  { %v6469_v41 = vmul.f32 2.0, %v15807_v39  ;;  %v6449_v42 = vpop.f32.mrb[125].mxu0 }
0x1e38   :  { %v6468_v43 = vmul.f32 2.0, %v6449_v42 }
0x1e39   :  { %v19146_v44 = vsub.f32 %v6469_v41, %v19050_v6 }
0x1e3a   :  { %v19149_v45 = vsub.f32 %v6468_v43, %v19053_v7  ;;  %v15810_v46 = vpop.f32.mrb[126].mxu0 }
0x1e3b   :  { %v6471_v47 = vmul.f32 2.0, %v15810_v46  ;;  %v6459_v48 = vpop.f32.mrb[127].mxu0 }
0x1e3c   :  { %v6470_v49 = vmul.f32 2.0, %v6459_v48  ;;  %15819 = vmatprep.mubr.msk.f32.mxu1 %vm4467_vm12, %v19149_v45  ;;  %v17213_v50 = vpack.c.bf16 %v19146_v44, %v19149_v45 }
0x1e3d   :  { %v19156_v51 = vsub.f32 %v6471_v47, %v19060_v57  ;;  %15820 = vmatmul.mubr.msk.f32.vlgmr.msra.gmra.mrb[16].mxu1 %vm4467_vm12, %v19146_v44 }
0x1e3e   :  { %v19161_v52 = vsub.f32 %v6470_v49, %v19065_v61  ;;  %17214 = vmatprep.subr.bf16.mxu0 %v17213_v50  ;;  %17224 = vmatpush3.bf16.msra.mxu1 %v17221_v24  ;;  %v7281_v24 = vld [vmem:[%s20717_s4 + $0x1ac] sm:$0xff] }
0x1e3f   :  { %17216 = vmatpush3.bf16.msra.mxu0 %v17213_v50  ;;  %17227 = vmatprep.subr.msk.bf16.mxu1 %vm18666_vm11, %v17225_v58  ;;  %v17275_v39 = vpack.c.bf16 %v7281_v24, %v7280_v37  ;;  %v7883_v24 = vld [vmem:[%s20717_s4 + $0x1f8] sm:$0xff] }
0x1e40   :  { %15822 = vmatprep.mubr.msk.f32.mxu1 %vm4467_vm12, %v19161_v52  ;;  %v17217_v53 = vpack.c.bf16 %v19156_v51, %v19161_v52 }
0x1e41   :  { %15823 = vmatmul.mubr.msk.f32.gmra.mrb[18].mxu1 %vm4467_vm12, %v19156_v51 }
0x1e42   :  { %17218 = vmatprep.subr.bf16.mxu0 %v17217_v53  ;;  %17230 = vmatpush3.bf16.msk.msra.mxu1 %vm18666_vm11, %v17225_v58  ;;  %v7283_v58 = vld [vmem:[%s20717_s4 + $0x1bc] sm:$0xf] }
0x1e43   :  { %17220 = vmatpush3.bf16.msra.mxu0 %v17217_v53  ;;  %17240 = vmatprep.subr.bf16.mxu1 %v17239_v63  ;;  %v17279_v59 = vpack.c.bf16 %v7283_v58, %v7282_v55  ;;  %v7885_v58 = vld [vmem:[%s20717_s4 + $0x208] sm:$0xff] }
0x1e46   :  { %15834 = vmatmul.mubr.msk.f32.vlgmr.msra.gmra.mrb[128].mxu0 %vm55_vm0, %v18201_v27 }
0x1e47   :  { %15836 = vmatprep.mubr.msk.f32.mxu0 %vm55_vm0, %v18213_v40 }
0x1e4a   :  { %15837 = vmatmul.mubr.msk.f32.gmra.mrb[130].mxu0 %vm55_vm0, %v18207_v38 }
0x1e4b   :  { %15861 = vmatprep.mubr.msk.f32.mxu0 %vm55_vm0, %v18203_v29 }
0x1f19   :  { %v15835_v0 = vpop.f32.mrb[128].mxu0 }
0x1f1a   :  { %v6670_v1 = vmul.f32 2.0, %v15835_v0  ;;  %v6650_v3 = vpop.f32.mrb[129].mxu0 }
0x1f1b   :  { %v6669_v6 = vmul.f32 2.0, %v6650_v3 }
0x1f1c   :  { %v19194_v7 = vsub.f32 %v6670_v1, %v19098_v18 }
0x1f1d   :  { %v19197_v8 = vsub.f32 %v6669_v6, %v19101_v4  ;;  %v15838_v11 = vpop.f32.mrb[130].mxu0 }
0x1f1e   :  { %v6672_v12 = vmul.f32 2.0, %v15838_v11  ;;  %v6660_v13 = vpop.f32.mrb[131].mxu0 }
0x1f1f   :  { %v6671_v56 = vmul.f32 2.0, %v6660_v13  ;;  %15847 = vmatprep.mubr.msk.f32.mxu1 %vm4467_vm12, %v19197_v8  ;;  %v17231_v57 = vpack.c.bf16 %v19194_v7, %v19197_v8 }
0x1f20   :  { %v19204_v61 = vsub.f32 %v6672_v12, %v19108_v30  ;;  %15848 = vmatmul.mubr.msk.f32.vlgmr.msra.gmra.mrb[16].mxu1 %vm4467_vm12, %v19194_v7 }
0x1f21   :  { %v19209_v62 = vsub.f32 %v6671_v56, %v19113_v33  ;;  %17232 = vmatprep.subr.bf16.mxu0 %v17231_v57  ;;  %17242 = vmatpush3.bf16.msra.mxu1 %v17239_v63  ;;  %v7482_v63 = vld [vmem:[%s20717_s4 + $0x1c8] sm:$0xff] }
0x1f22   :  { %17234 = vmatpush3.bf16.msra.mxu0 %v17231_v57  ;;  %17245 = vmatprep.subr.msk.bf16.mxu1 %vm18666_vm11, %v17243_v17  ;;  %v17293_v0 = vpack.c.bf16 %v7482_v63, %v7481_v60  ;;  %v8084_v63 = vld [vmem:[%s20717_s4 + $0x214] sm:$0xff] }
0x1f23   :  { %15850 = vmatprep.mubr.msk.f32.mxu1 %vm4467_vm12, %v19209_v62  ;;  %v17235_v14 = vpack.c.bf16 %v19204_v61, %v19209_v62 }
0x1f24   :  { %15851 = vmatmul.mubr.msk.f32.gmra.mrb[18].mxu1 %vm4467_vm12, %v19204_v61 }
0x1f25   :  { %17236 = vmatprep.subr.bf16.mxu0 %v17235_v14  ;;  %17248 = vmatpush3.bf16.msk.msra.mxu1 %vm18666_vm11, %v17243_v17  ;;  %v7484_v17 = vld [vmem:[%s20717_s4 + $0x1d8] sm:$0xf] }
0x1f26   :  { %17238 = vmatpush3.bf16.msra.mxu0 %v17235_v14  ;;  %17258 = vmatprep.subr.bf16.mxu1 %v17257_v22  ;;  %v17297_v20 = vpack.c.bf16 %v7484_v17, %v7483_v16  ;;  %v8086_v17 = vld [vmem:[%s20717_s4 + $0x224] sm:$0xff] }
0x1f29   :  { %15862 = vmatmul.mubr.msk.f32.vlgmr.msra.gmra.mrb[132].mxu0 %vm55_vm0, %v18201_v27 }
0x1f2a   :  { %15864 = vmatprep.mubr.msk.f32.mxu0 %vm55_vm0, %v18213_v40 }
0x1f2d   :  { %15865 = vmatmul.mubr.msk.f32.gmra.mrb[134].mxu0 %vm55_vm0, %v18207_v38 }
0x1f2e   :  { %15889 = vmatprep.mubr.msk.f32.mxu0 %vm55_vm0, %v18203_v29 }
0x1ffc   :  { %v15863_v25 = vpop.f32.mrb[132].mxu0 }
0x1ffd   :  { %v6871_v28 = vmul.f32 2.0, %v15863_v25  ;;  %v6851_v2 = vpop.f32.mrb[133].mxu0 }
0x1ffe   :  { %v6870_v18 = vmul.f32 2.0, %v6851_v2 }
0x1fff   :  { %v19242_v4 = vsub.f32 %v6871_v28, %v19146_v44 }
0x2000   :  { %v19245_v31 = vsub.f32 %v6870_v18, %v19149_v45  ;;  %v15866_v32 = vpop.f32.mrb[134].mxu0 }
0x2001   :  { %v6873_v10 = vmul.f32 2.0, %v15866_v32  ;;  %v6861_v19 = vpop.f32.mrb[135].mxu0 }
0x2002   :  { %v6872_v26 = vmul.f32 2.0, %v6861_v19  ;;  %15875 = vmatprep.mubr.msk.f32.mxu1 %vm4467_vm12, %v19245_v31  ;;  %v17249_v30 = vpack.c.bf16 %v19242_v4, %v19245_v31 }
0x2003   :  { %v19252_v33 = vsub.f32 %v6873_v10, %v19156_v51  ;;  %15876 = vmatmul.mubr.msk.f32.vlgmr.msra.gmra.mrb[16].mxu1 %vm4467_vm12, %v19242_v4 }
0x2004   :  { %v19257_v9 = vsub.f32 %v6872_v26, %v19161_v52  ;;  %17250 = vmatprep.subr.bf16.mxu0 %v17249_v30  ;;  %17260 = vmatpush3.bf16.msra.mxu1 %v17257_v22  ;;  %v7683_v22 = vld [vmem:[%s20717_s4 + $0x1e4] sm:$0xff] }
0x2005   :  { %17252 = vmatpush3.bf16.msra.mxu0 %v17249_v30  ;;  %17263 = vmatprep.subr.msk.bf16.mxu1 %vm18666_vm11, %v17261_v36  ;;  %v17311_v25 = vpack.c.bf16 %v7683_v22, %v7682_v21  ;;  %v8285_v22 = vld [vmem:[%s20717_s4 + $0x230] sm:$0xff] }
0x2006   :  { %15878 = vmatprep.mubr.msk.f32.mxu1 %vm4467_vm12, %v19257_v9  ;;  %v17253_v34 = vpack.c.bf16 %v19252_v33, %v19257_v9 }
0x2007   :  { %15879 = vmatmul.mubr.msk.f32.gmra.mrb[18].mxu1 %vm4467_vm12, %v19252_v33 }
0x2008   :  { %17254 = vmatprep.subr.bf16.mxu0 %v17253_v34  ;;  %17266 = vmatpush3.bf16.msk.msra.mxu1 %vm18666_vm11, %v17261_v36  ;;  %v7685_v36 = vld [vmem:[%s20717_s4 + $0x1f4] sm:$0xf] }
0x2009   :  { %17256 = vmatpush3.bf16.msra.mxu0 %v17253_v34  ;;  %17276 = vmatprep.subr.bf16.mxu1 %v17275_v39  ;;  %v17315_v37 = vpack.c.bf16 %v7685_v36, %v7684_v23  ;;  %v8287_v36 = vld [vmem:[%s20717_s4 + $0x240] sm:$0xff] }
0x200c   :  { %15890 = vmatmul.mubr.msk.f32.vlgmr.msra.gmra.mrb[136].mxu0 %vm55_vm0, %v18201_v27 }
0x200d   :  { %15892 = vmatprep.mubr.msk.f32.mxu0 %vm55_vm0, %v18213_v40 }
0x2010   :  { %15893 = vmatmul.mubr.msk.f32.gmra.mrb[138].mxu0 %vm55_vm0, %v18207_v38 }
0x2011   :  { %15917 = vmatprep.mubr.msk.f32.mxu0 %vm55_vm0, %v18203_v29 }
0x20df   :  { %v15891_v41 = vpop.f32.mrb[136].mxu0 }
0x20e0   :  { %v7072_v42 = vmul.f32 2.0, %v15891_v41  ;;  %v7052_v43 = vpop.f32.mrb[137].mxu0 }
0x20e1   :  { %v7071_v44 = vmul.f32 2.0, %v7052_v43 }
0x20e2   :  { %v19290_v45 = vsub.f32 %v7072_v42, %v19194_v7 }
0x20e3   :  { %v19293_v46 = vsub.f32 %v7071_v44, %v19197_v8  ;;  %v15894_v47 = vpop.f32.mrb[138].mxu0 }
0x20e4   :  { %v7074_v48 = vmul.f32 2.0, %v15894_v47  ;;  %v7062_v49 = vpop.f32.mrb[139].mxu0 }
0x20e5   :  { %v7073_v50 = vmul.f32 2.0, %v7062_v49  ;;  %15903 = vmatprep.mubr.msk.f32.mxu1 %vm4467_vm12, %v19293_v46  ;;  %v17267_v51 = vpack.c.bf16 %v19290_v45, %v19293_v46 }
0x20e6   :  { %v19300_v52 = vsub.f32 %v7074_v48, %v19204_v61  ;;  %15904 = vmatmul.mubr.msk.f32.vlgmr.msra.gmra.mrb[16].mxu1 %vm4467_vm12, %v19290_v45 }
0x20e7   :  { %v19305_v53 = vsub.f32 %v7073_v50, %v19209_v62  ;;  %17268 = vmatprep.subr.bf16.mxu0 %v17267_v51  ;;  %17278 = vmatpush3.bf16.msra.mxu1 %v17275_v39  ;;  %v7884_v39 = vld [vmem:[%s20717_s4 + $0x200] sm:$0xff] }
0x20e8   :  { %17270 = vmatpush3.bf16.msra.mxu0 %v17267_v51  ;;  %17281 = vmatprep.subr.msk.bf16.mxu1 %vm18666_vm11, %v17279_v59  ;;  %v17329_v41 = vpack.c.bf16 %v7884_v39, %v7883_v24  ;;  %v8486_v39 = vld [vmem:[%s20717_s4 + $0x24c] sm:$0xff] }
0x20e9   :  { %15906 = vmatprep.mubr.msk.f32.mxu1 %vm4467_vm12, %v19305_v53  ;;  %v17271_v54 = vpack.c.bf16 %v19300_v52, %v19305_v53 }
0x20ea   :  { %15907 = vmatmul.mubr.msk.f32.gmra.mrb[18].mxu1 %vm4467_vm12, %v19300_v52 }
0x20eb   :  { %17272 = vmatprep.subr.bf16.mxu0 %v17271_v54  ;;  %17284 = vmatpush3.bf16.msk.msra.mxu1 %vm18666_vm11, %v17279_v59  ;;  %v7886_v59 = vld [vmem:[%s20717_s4 + $0x210] sm:$0xf] }
0x20ec   :  { %17274 = vmatpush3.bf16.msra.mxu0 %v17271_v54  ;;  %17294 = vmatprep.subr.bf16.mxu1 %v17293_v0  ;;  %v17333_v60 = vpack.c.bf16 %v7886_v59, %v7885_v58  ;;  %v18095_v59 = vld [vmem:[%s20713_s0] sm:$0xff] }
0x20ef   :  { %15918 = vmatmul.mubr.msk.f32.vlgmr.msra.gmra.mrb[140].mxu0 %vm55_vm0, %v18201_v27 }
0x20f0   :  { %15920 = vmatprep.mubr.msk.f32.mxu0 %vm55_vm0, %v18213_v40 }
0x20f3   :  { %15921 = vmatmul.mubr.msk.f32.gmra.mrb[142].mxu0 %vm55_vm0, %v18207_v38 }
0x20f4   :  { %15945 = vmatprep.mubr.msk.f32.mxu0 %vm55_vm0, %v18203_v29 }
0x21c2   :  { %v15919_v1 = vpop.f32.mrb[140].mxu0 }
0x21c3   :  { %v7273_v3 = vmul.f32 2.0, %v15919_v1  ;;  %v7253_v6 = vpop.f32.mrb[141].mxu0 }
0x21c4   :  { %v7272_v7 = vmul.f32 2.0, %v7253_v6 }
0x21c5   :  { %v19338_v8 = vsub.f32 %v7273_v3, %v19242_v4 }
0x21c6   :  { %v19341_v11 = vsub.f32 %v7272_v7, %v19245_v31  ;;  %v15922_v12 = vpop.f32.mrb[142].mxu0 }
0x21c7   :  { %v7275_v13 = vmul.f32 2.0, %v15922_v12  ;;  %v7263_v56 = vpop.f32.mrb[143].mxu0 }
0x21c8   :  { %v7274_v57 = vmul.f32 2.0, %v7263_v56  ;;  %15931 = vmatprep.mubr.msk.f32.mxu1 %vm4467_vm12, %v19341_v11  ;;  %v17285_v61 = vpack.c.bf16 %v19338_v8, %v19341_v11 }
0x21c9   :  { %v19348_v62 = vsub.f32 %v7275_v13, %v19252_v33  ;;  %15932 = vmatmul.mubr.msk.f32.vlgmr.msra.gmra.mrb[16].mxu1 %vm4467_vm12, %v19338_v8 }
0x21ca   :  { %v19353_v14 = vsub.f32 %v7274_v57, %v19257_v9  ;;  %17286 = vmatprep.subr.bf16.mxu0 %v17285_v61  ;;  %17296 = vmatpush3.bf16.msra.mxu1 %v17293_v0  ;;  %v8085_v0 = vld [vmem:[%s20717_s4 + $0x21c] sm:$0xff] }
0x21cb   :  { %17288 = vmatpush3.bf16.msra.mxu0 %v17285_v61  ;;  %17299 = vmatprep.subr.msk.bf16.mxu1 %vm18666_vm11, %v17297_v20  ;;  %v17347_v1 = vpack.c.bf16 %v8085_v0, %v8084_v63  ;;  %v8489_v63 = vld [vmem:[%s20717_s4 + $0x264] sm:$0xf] }
0x21cc   :  { %15934 = vmatprep.mubr.msk.f32.mxu1 %vm4467_vm12, %v19353_v14  ;;  %v17289_v15 = vpack.c.bf16 %v19348_v62, %v19353_v14 }
0x21cd   :  { %15935 = vmatmul.mubr.msk.f32.gmra.mrb[18].mxu1 %vm4467_vm12, %v19348_v62 }
0x21ce   :  { %17290 = vmatprep.subr.bf16.mxu0 %v17289_v15  ;;  %17302 = vmatpush3.bf16.msk.msra.mxu1 %vm18666_vm11, %v17297_v20  ;;  %v8087_v20 = vld [vmem:[%s20717_s4 + $0x22c] sm:$0xf] }
0x21cf   :  { %17292 = vmatpush3.bf16.msra.mxu0 %v17289_v15  ;;  %17312 = vmatprep.subr.bf16.mxu1 %v17311_v25  ;;  %v17351_v21 = vpack.c.bf16 %v8087_v20, %v8086_v17 }
0x21d2   :  { %15946 = vmatmul.mubr.msk.f32.vlgmr.msra.gmra.mrb[144].mxu0 %vm55_vm0, %v18201_v27 }
0x21d3   :  { %15948 = vmatprep.mubr.msk.f32.mxu0 %vm55_vm0, %v18213_v40 }
0x21d6   :  { %15949 = vmatmul.mubr.msk.f32.gmra.mrb[146].mxu0 %vm55_vm0, %v18207_v38 }
0x21d7   :  { %15973 = vmatprep.mubr.msk.f32.mxu0 %vm55_vm0, %v18203_v29 }
0x22a5   :  { %v15947_v28 = vpop.f32.mrb[144].mxu0 }
0x22a6   :  { %v7474_v2 = vmul.f32 2.0, %v15947_v28  ;;  %v7454_v18 = vpop.f32.mrb[145].mxu0 }
0x22a7   :  { %v7473_v4 = vmul.f32 2.0, %v7454_v18 }
0x22a8   :  { %v19386_v31 = vsub.f32 %v7474_v2, %v19290_v45 }
0x22a9   :  { %v19389_v32 = vsub.f32 %v7473_v4, %v19293_v46  ;;  %v15950_v10 = vpop.f32.mrb[146].mxu0 }
0x22aa   :  { %v7476_v19 = vmul.f32 2.0, %v15950_v10  ;;  %v7464_v26 = vpop.f32.mrb[147].mxu0 }
0x22ab   :  { %v7475_v30 = vmul.f32 2.0, %v7464_v26  ;;  %15959 = vmatprep.mubr.msk.f32.mxu1 %vm4467_vm12, %v19389_v32  ;;  %v17303_v33 = vpack.c.bf16 %v19386_v31, %v19389_v32 }
0x22ac   :  { %v19396_v9 = vsub.f32 %v7476_v19, %v19300_v52  ;;  %15960 = vmatmul.mubr.msk.f32.vlgmr.msra.gmra.mrb[16].mxu1 %vm4467_vm12, %v19386_v31 }
0x22ad   :  { %v19401_v34 = vsub.f32 %v7475_v30, %v19305_v53  ;;  %17304 = vmatprep.subr.bf16.mxu0 %v17303_v33  ;;  %17314 = vmatpush3.bf16.msra.mxu1 %v17311_v25  ;;  %v8286_v25 = vld [vmem:[%s20717_s4 + $0x238] sm:$0xff] }
0x22ae   :  { %17306 = vmatpush3.bf16.msra.mxu0 %v17303_v33  ;;  %17317 = vmatprep.subr.msk.bf16.mxu1 %vm18666_vm11, %v17315_v37  ;;  %v17365_v28 = vpack.c.bf16 %v8286_v25, %v8285_v22 }
0x22af   :  { %15962 = vmatprep.mubr.msk.f32.mxu1 %vm4467_vm12, %v19401_v34  ;;  %v17307_v35 = vpack.c.bf16 %v19396_v9, %v19401_v34 }
0x22b0   :  { %15963 = vmatmul.mubr.msk.f32.gmra.mrb[18].mxu1 %vm4467_vm12, %v19396_v9 }
0x22b1   :  { %17308 = vmatprep.subr.bf16.mxu0 %v17307_v35  ;;  %17320 = vmatpush3.bf16.msk.msra.mxu1 %vm18666_vm11, %v17315_v37  ;;  %v8288_v37 = vld [vmem:[%s20717_s4 + $0x248] sm:$0xf] }
0x22b2   :  { %17310 = vmatpush3.bf16.msra.mxu0 %v17307_v35  ;;  %17330 = vmatprep.subr.bf16.mxu1 %v17329_v41  ;;  %v17369_v24 = vpack.c.bf16 %v8288_v37, %v8287_v36 }
0x22b5   :  { %15974 = vmatmul.mubr.msk.f32.vlgmr.msra.gmra.mrb[148].mxu0 %vm55_vm0, %v18201_v27 }
0x22b6   :  { %15976 = vmatprep.mubr.msk.f32.mxu0 %vm55_vm0, %v18213_v40 }
0x22b9   :  { %15977 = vmatmul.mubr.msk.f32.gmra.mrb[150].mxu0 %vm55_vm0, %v18207_v38 }
0x22ba   :  { %16001 = vmatprep.mubr.msk.f32.mxu0 %vm55_vm0, %v18203_v29 }
0x2388   :  { %v15975_v42 = vpop.f32.mrb[148].mxu0 }
0x2389   :  { %v7675_v43 = vmul.f32 2.0, %v15975_v42  ;;  %v7655_v44 = vpop.f32.mrb[149].mxu0 }
0x238a   :  { %v7674_v45 = vmul.f32 2.0, %v7655_v44 }
0x238b   :  { %v19434_v46 = vsub.f32 %v7675_v43, %v19338_v8 }
0x238c   :  { %v19437_v47 = vsub.f32 %v7674_v45, %v19341_v11  ;;  %v15978_v48 = vpop.f32.mrb[150].mxu0 }
0x238d   :  { %v7677_v49 = vmul.f32 2.0, %v15978_v48  ;;  %v7665_v50 = vpop.f32.mrb[151].mxu0 }
0x238e   :  { %v7676_v51 = vmul.f32 2.0, %v7665_v50  ;;  %15987 = vmatprep.mubr.msk.f32.mxu1 %vm4467_vm12, %v19437_v47  ;;  %v17321_v52 = vpack.c.bf16 %v19434_v46, %v19437_v47 }
0x238f   :  { %v19444_v53 = vsub.f32 %v7677_v49, %v19348_v62  ;;  %15988 = vmatmul.mubr.msk.f32.vlgmr.msra.gmra.mrb[16].mxu1 %vm4467_vm12, %v19434_v46 }
0x2390   :  { %v19449_v54 = vsub.f32 %v7676_v51, %v19353_v14  ;;  %17322 = vmatprep.subr.bf16.mxu0 %v17321_v52  ;;  %17332 = vmatpush3.bf16.msra.mxu1 %v17329_v41  ;;  %v8487_v41 = vld [vmem:[%s20717_s4 + $0x254] sm:$0xff] }
0x2391   :  { %17324 = vmatpush3.bf16.msra.mxu0 %v17321_v52  ;;  %17335 = vmatprep.subr.msk.bf16.mxu1 %vm18666_vm11, %v17333_v60  ;;  %v17383_v42 = vpack.c.bf16 %v8487_v41, %v8486_v39 }
0x2392   :  { %15990 = vmatprep.mubr.msk.f32.mxu1 %vm4467_vm12, %v19449_v54  ;;  %v17325_v55 = vpack.c.bf16 %v19444_v53, %v19449_v54 }
0x2393   :  { %15991 = vmatmul.mubr.msk.f32.gmra.mrb[18].mxu1 %vm4467_vm12, %v19444_v53 }
0x2394   :  { %17326 = vmatprep.subr.bf16.mxu0 %v17325_v55  ;;  %17338 = vmatpush3.bf16.msk.msra.mxu1 %vm18666_vm11, %v17333_v60  ;;  %v8488_v60 = vld [vmem:[%s20717_s4 + $0x25c] sm:$0xff] }
0x2395   :  { %17328 = vmatpush3.bf16.msra.mxu0 %v17325_v55  ;;  %17348 = vmatprep.subr.bf16.mxu1 %v17347_v1  ;;  %v17387_v0 = vpack.c.bf16 %v8489_v63, %v8488_v60 }
0x2398   :  { %16002 = vmatmul.mubr.msk.f32.vlgmr.msra.gmra.mrb[152].mxu0 %vm55_vm0, %v18201_v27 }
0x2399   :  { %16004 = vmatprep.mubr.msk.f32.mxu0 %vm55_vm0, %v18213_v40 }
0x239c   :  { %16005 = vmatmul.mubr.msk.f32.gmra.mrb[154].mxu0 %vm55_vm0, %v18207_v38 }
0x239d   :  { %16029 = vmatprep.mubr.msk.f32.mxu0 %vm55_vm0, %v18203_v29 }
0x246b   :  { %v16003_v3 = vpop.f32.mrb[152].mxu0 }
0x246c   :  { %v7876_v6 = vmul.f32 2.0, %v16003_v3  ;;  %v7856_v7 = vpop.f32.mrb[153].mxu0 }
0x246d   :  { %v7875_v8 = vmul.f32 2.0, %v7856_v7 }
0x246e   :  { %v19482_v11 = vsub.f32 %v7876_v6, %v19386_v31 }
0x246f   :  { %v19485_v12 = vsub.f32 %v7875_v8, %v19389_v32  ;;  %v16006_v13 = vpop.f32.mrb[154].mxu0 }
0x2470   :  { %v7878_v56 = vmul.f32 2.0, %v16006_v13  ;;  %v7866_v57 = vpop.f32.mrb[155].mxu0 }
0x2471   :  { %v7877_v61 = vmul.f32 2.0, %v7866_v57  ;;  %16015 = vmatprep.mubr.msk.f32.mxu1 %vm4467_vm12, %v19485_v12  ;;  %v17339_v62 = vpack.c.bf16 %v19482_v11, %v19485_v12 }
0x2472   :  { %v19492_v14 = vsub.f32 %v7878_v56, %v19396_v9  ;;  %16016 = vmatmul.mubr.msk.f32.vlgmr.msra.gmra.mrb[16].mxu1 %vm4467_vm12, %v19482_v11 }
0x2473   :  { %v19497_v15 = vsub.f32 %v7877_v61, %v19401_v34  ;;  %17340 = vmatprep.subr.bf16.mxu0 %v17339_v62  ;;  %17350 = vmatpush3.bf16.msra.mxu1 %v17347_v1 }
0x2474   :  { %17342 = vmatpush3.bf16.msra.mxu0 %v17339_v62  ;;  %17353 = vmatprep.subr.msk.bf16.mxu1 %vm18666_vm11, %v17351_v21  ;;  %v13788_v62 = vld [vmem:[%s20718_s5] ss:$0 sm:$0xff] }
0x2475   :  { %16018 = vmatprep.mubr.msk.f32.mxu1 %vm4467_vm12, %v19497_v15  ;;  %v17343_v16 = vpack.c.bf16 %v19492_v14, %v19497_v15 }
0x2476   :  { %16019 = vmatmul.mubr.msk.f32.gmra.mrb[18].mxu1 %vm4467_vm12, %v19492_v14 }
0x2477   :  { %17344 = vmatprep.subr.bf16.mxu0 %v17343_v16  ;;  %17356 = vmatpush3.bf16.msk.msra.mxu1 %vm18666_vm11, %v17351_v21 }
0x2478   :  { %17346 = vmatpush3.bf16.msra.mxu0 %v17343_v16  ;;  %17366 = vmatprep.subr.bf16.mxu1 %v17365_v28 }
0x247b   :  { %16030 = vmatmul.mubr.msk.f32.vlgmr.msra.gmra.mrb[156].mxu0 %vm55_vm0, %v18201_v27 }
0x247c   :  { %16032 = vmatprep.mubr.msk.f32.mxu0 %vm55_vm0, %v18213_v40 }
0x247f   :  { %16033 = vmatmul.mubr.msk.f32.gmra.mrb[158].mxu0 %vm55_vm0, %v18207_v38 }
0x2480   :  { %16057 = vmatprep.mubr.msk.f32.mxu0 %vm55_vm0, %v18203_v29 }
0x254e   :  { %v16031_v2 = vpop.f32.mrb[156].mxu0 }
0x254f   :  { %v8077_v18 = vmul.f32 2.0, %v16031_v2  ;;  %v8057_v4 = vpop.f32.mrb[157].mxu0 }
0x2550   :  { %v8076_v31 = vmul.f32 2.0, %v8057_v4 }
0x2551   :  { %v19530_v32 = vsub.f32 %v8077_v18, %v19434_v46 }
0x2552   :  { %v19533_v10 = vsub.f32 %v8076_v31, %v19437_v47  ;;  %v16034_v19 = vpop.f32.mrb[158].mxu0 }
0x2553   :  { %v8079_v26 = vmul.f32 2.0, %v16034_v19  ;;  %v8067_v30 = vpop.f32.mrb[159].mxu0 }
0x2554   :  { %v8078_v33 = vmul.f32 2.0, %v8067_v30  ;;  %16043 = vmatprep.mubr.msk.f32.mxu1 %vm4467_vm12, %v19533_v10  ;;  %v17357_v9 = vpack.c.bf16 %v19530_v32, %v19533_v10 }
0x2555   :  { %v19540_v34 = vsub.f32 %v8079_v26, %v19444_v53  ;;  %16044 = vmatmul.mubr.msk.f32.vlgmr.msra.gmra.mrb[16].mxu1 %vm4467_vm12, %v19530_v32 }
0x2556   :  { %v19545_v35 = vsub.f32 %v8078_v33, %v19449_v54  ;;  %17358 = vmatprep.subr.bf16.mxu0 %v17357_v9  ;;  %17368 = vmatpush3.bf16.msra.mxu1 %v17365_v28 }
0x2557   :  { %17360 = vmatpush3.bf16.msra.mxu0 %v17357_v9  ;;  %17371 = vmatprep.subr.msk.bf16.mxu1 %vm18666_vm11, %v17369_v24 }
0x2558   :  { %16046 = vmatprep.mubr.msk.f32.mxu1 %vm4467_vm12, %v19545_v35  ;;  %v17361_v23 = vpack.c.bf16 %v19540_v34, %v19545_v35 }
0x2559   :  { %16047 = vmatmul.mubr.msk.f32.gmra.mrb[18].mxu1 %vm4467_vm12, %v19540_v34 }
0x255a   :  { %17362 = vmatprep.subr.bf16.mxu0 %v17361_v23  ;;  %17374 = vmatpush3.bf16.msk.msra.mxu1 %vm18666_vm11, %v17369_v24 }
0x255b   :  { %17364 = vmatpush3.bf16.msra.mxu0 %v17361_v23  ;;  %17384 = vmatprep.subr.bf16.mxu1 %v17383_v42 }
0x255e   :  { %16058 = vmatmul.mubr.msk.f32.vlgmr.msra.gmra.mrb[160].mxu0 %vm55_vm0, %v18201_v27 }
0x255f   :  { %16060 = vmatprep.mubr.msk.f32.mxu0 %vm55_vm0, %v18213_v40 }
0x2562   :  { %16061 = vmatmul.mubr.msk.f32.gmra.mrb[162].mxu0 %vm55_vm0, %v18207_v38 }
0x2563   :  { %16085 = vmatprep.mubr.msk.f32.mxu0 %vm55_vm0, %v18203_v29 }
0x2631   :  { %v16059_v43 = vpop.f32.mrb[160].mxu0 }
0x2632   :  { %v8278_v44 = vmul.f32 2.0, %v16059_v43  ;;  %v8258_v45 = vpop.f32.mrb[161].mxu0 }
0x2633   :  { %v8277_v46 = vmul.f32 2.0, %v8258_v45  ;;  %v18097_v45 = vld [vmem:[%s20713_s0 + $0x10] sm:$0xff] }
0x2634   :  { %v8282_v47 = vsub.f32 %v8278_v44, %v19482_v11  ;;  %v18096_v44 = vld [vmem:[%s20713_s0 + $0x8] sm:$0xff] }
0x2635   :  { %v8281_v48 = vsub.f32 %v8277_v46, %v19485_v12  ;;  %v16062_v49 = vpop.f32.mrb[162].mxu0  ;;  %v18098_v46 = vld [vmem:[%s20713_s0 + $0x18] sm:$0xff]  ;;  %s18105_s0 = smov 20  }
0x2636   :  { %v8280_v50 = vmul.f32 2.0, %v16062_v49  ;;  %v8268_v51 = vpop.f32.mrb[163].mxu0 }
0x2637   :  { %v8279_v52 = vmul.f32 2.0, %v8268_v51  ;;  %16071 = vmatprep.mubr.msk.f32.mxu1 %vm4467_vm12, %v8281_v48  ;;  %v17375_v53 = vpack.c.bf16 %v8282_v47, %v8281_v48 }
0x2638   :  { %v8284_v54 = vsub.f32 %v8280_v50, %v19492_v14  ;;  %16072 = vmatmul.mubr.msk.f32.vlgmr.msra.gmra.mrb[16].mxu1 %vm4467_vm12, %v8282_v47 }
0x2639   :  { %v8283_v55 = vsub.f32 %v8279_v52, %v19497_v15  ;;  %17376 = vmatprep.subr.bf16.mxu0 %v17375_v53  ;;  %17386 = vmatpush3.bf16.msra.mxu1 %v17383_v42 }
0x263a   :  { %17378 = vmatpush3.bf16.msra.mxu0 %v17375_v53  ;;  %17389 = vmatprep.subr.msk.bf16.mxu1 %vm18666_vm11, %v17387_v0 }
0x263b   :  { %16074 = vmatprep.mubr.msk.f32.mxu1 %vm4467_vm12, %v8283_v55  ;;  %v17379_v58 = vpack.c.bf16 %v8284_v54, %v8283_v55 }
0x263c   :  { %16075 = vmatmul.mubr.msk.f32.gmra.mrb[18].mxu1 %vm4467_vm12, %v8284_v54 }
0x263d   :  { %17380 = vmatprep.subr.bf16.mxu0 %v17379_v58  ;;  %17392 = vmatpush3.bf16.msk.msra.mxu1 %vm18666_vm11, %v17387_v0 }
0x263e   :  { %17382 = vmatpush3.bf16.msra.mxu0 %v17379_v58 }
0x2641   :  { %16086 = vmatmul.mubr.msk.f32.vlgmr.msra.gmra.mrb[164].mxu0 %vm55_vm0, %v18201_v27 }
0x2642   :  { %16088 = vmatprep.mubr.msk.f32.mxu0 %vm55_vm0, %v18213_v40 }
0x2645   :  { %16089 = vmatmul.mubr.msk.f32.gmra.mrb[166].mxu0 %vm55_vm0, %v18207_v38 }
0x2646   :  { %16113 = vmatprep.mubr.msk.f32.mxu0 %vm55_vm0, %v18095_v59 }
0x2714   :  { %v16087_v1 = vpop.f32.mrb[164].mxu0 }
0x2715   :  { %v8479_v3 = vmul.f32 2.0, %v16087_v1  ;;  %v8459_v6 = vpop.f32.mrb[165].mxu0 }
0x2716   :  { %v8478_v7 = vmul.f32 2.0, %v8459_v6 }
0x2717   :  { %v8483_v12 = vsub.f32 %v8479_v3, %v19530_v32 }
0x2718   :  { %v8482_v8 = vsub.f32 %v8478_v7, %v19533_v10  ;;  %v16090_v11 = vpop.f32.mrb[166].mxu0 }
0x2719   :  { %v8481_v13 = vmul.f32 2.0, %v16090_v11  ;;  %v8469_v56 = vpop.f32.mrb[167].mxu0 }
0x271a   :  { %v8480_v57 = vmul.f32 2.0, %v8469_v56  ;;  %16099 = vmatprep.mubr.msk.f32.mxu1 %vm4467_vm12, %v8482_v8 }
0x271b   :  { %16100 = vmatmul.mubr.msk.f32.vlgmr.msra.gmra.mrb[16].mxu1 %vm4467_vm12, %v8483_v12  ;;  %v8485_v5 = vsub.f32 %v8481_v13, %v19540_v34 }
0x271c   :  { %v8484_v61 = vsub.f32 %v8480_v57, %v19545_v35 }
0x271e   :  { %16102 = vmatprep.mubr.msk.f32.mxu1 %vm4467_vm12, %v8484_v61 }
0x271f   :  { %16103 = vmatmul.mubr.msk.f32.gmra.mrb[18].mxu1 %vm4467_vm12, %v8485_v5 }
0x2720   :  { %16141 = vmatprep.mubr.msk.f32.mxu1 %vm55_vm0, %v18203_v29 }
0x27ee   :  { %v16101_v14 = vpop.f32.mrb[16].mxu1 }
0x27ef   :  { %v8602_v15 = vadd.f32 %v16101_v14, %v13788_v62  ;;  %v8571_v16 = vpop.f32.mrb[17].mxu1 }
0x27f0   :  { %v8601_v17 = vadd.f32 %v13788_v62, %v8571_v16  ;;  %v9062_v16 = vld [vmem:[%s20719_s6 + $0x58] sm:$0xff] }
0x27f1   :  { %v13790_v20 = vmul.f32 -1.442695, %v8602_v15 }
0x27f2   :  { %v13789_v21 = vmul.f32 -1.442695, %v8601_v17  ;;  %v16104_v22 = vpop.f32.mrb[18].mxu1 }
0x27f3   :  { %18043 = vpow2.f32 %v13790_v20  ;;  %v8604_v25 = vadd.f32 %v16104_v22, %v13788_v62  ;;  %v8581_v28 = vpop.f32.mrb[19].mxu1 }
0x27f4   :  { %18045 = vpow2.f32 %v13789_v21  ;;  %v8603_v2 = vadd.f32 %v13788_v62, %v8581_v28  ;;  %v9063_v28 = vld [vmem:[%s20719_s6 + $0x60] sm:$0xff] }
0x27f5   :  { %v13792_v18 = vmul.f32 -1.442695, %v8604_v25 }
0x27f6   :  { %v13791_v4 = vmul.f32 -1.442695, %v8603_v2 }
0x27f7   :  { %18047 = vpow2.f32 %v13792_v18 }
0x27f8   :  { %18049 = vpow2.f32 %v13791_v4  ;;  %v9065_v4 = vld [vmem:[%s20719_s6 + $0x70] sm:$0xff] }
0x27fd   :  { %v18044_v31 = vpop.eup %18043 }
0x27fe   :  { %v18046_v32 = vpop.eup %18045  ;;  %v8618_v10 = vadd.f32 1.0, %v18044_v31  ;;  %v8958_v31 = vld [vmem:[%s20719_s6] sm:$0xff] }
0x27ff   :  { %v8617_v19 = vadd.f32 1.0, %v18046_v32  ;;  %v8959_v32 = vld [vmem:[%s20719_s6 + $0x8] sm:$0xff] }
0x2800   :  { %18051 = vrcp.f32 %v8618_v10  ;;  %v17433_v10 = vpack.c.bf16 %v8959_v32, %v8958_v31 }
0x2801   :  { %v18048_v26 = vpop.eup %18047  ;;  %18053 = vrcp.f32 %v8617_v19 }
0x2802   :  { %v18050_v30 = vpop.eup %18049  ;;  %v8620_v33 = vadd.f32 1.0, %v18048_v26 }
0x2803   :  { %v8619_v9 = vadd.f32 1.0, %v18050_v30 }
0x2804   :  { %18055 = vrcp.f32 %v8620_v33 }
0x2805   :  { %18057 = vrcp.f32 %v8619_v9 }
0x280a   :  { %v18052_v34 = vpop.eup %18051 }
0x280b   :  { %v18054_v35 = vpop.eup %18053  ;;  %v19618_v23 = vmul.f32 %v18052_v34, %v8602_v15  ;;  %v9061_v15 = vld [vmem:[%s20719_s6 + $0x50] sm:$0xff] }
0x280c   :  { %v19620_v36 = vmul.f32 %v18054_v35, %v8601_v17 }
0x280e   :  { %v18056_v37 = vpop.eup %18055  ;;  %v17393_v24 = vpack.c.bf16 %v19618_v23, %v19620_v36 }
0x280f   :  { %v18058_v39 = vpop.eup %18057  ;;  %v19624_v41 = vmul.f32 %v18056_v37, %v8604_v25  ;;  %v17425_v25 = vpack.c.bf16 %v9062_v16, %v9061_v15  ;;  %v8960_v37 = vld [vmem:[%s20719_s6 + $0x10] sm:$0xff]  ;;  %v9356_v16 = vld [vmem:[%s20719_s6 + $0x88] sm:$0xff] }
0x2810   :  { %v19626_v42 = vmul.f32 %v18058_v39, %v8603_v2  ;;  %17394 = vmatprep.subr.bf16.mxu0 %v17393_v24  ;;  %v9064_v2 = vld [vmem:[%s20719_s6 + $0x68] sm:$0xff] }
0x2811   :  { %17396 = vmatpush3.bf16.msra.mxu0 %v17393_v24  ;;  %v17429_v18 = vpack.c.bf16 %v9064_v2, %v9063_v28  ;;  %v9553_v28 = vld [vmem:[%s20719_s6 + $0xa0] sm:$0xff]  ;;  %v9554_v2 = vld [vmem:[%s20719_s6 + $0xa8] sm:$0xff] }
0x2812   :  { %v17397_v43 = vpack.c.bf16 %v19624_v41, %v19626_v42 }
0x2814   :  { %17398 = vmatprep.subr.bf16.mxu0 %v17397_v43 }
0x2815   :  { %17400 = vmatpush3.bf16.msra.mxu0 %v17397_v43 }
0x2816   :  { %17402 = vmatprep.subr.bf16.mxu0 %v17393_v24 }
0x2818   :  { %16114 = vmatmul.mubr.msk.f32.vlgmr.msra.gmra.mrb[168].mxu0 %vm55_vm0, %v18096_v44 }
0x2819   :  { %17404 = vmatpush3.bf16.msra.mxu0 %v17393_v24  ;;  %16116 = vmatprep.mubr.msk.f32.mxu0 %vm55_vm0, %v18097_v45  ;;  %v8961_v24 = vld [vmem:[%s20719_s6 + $0x18] sm:$0xff] }
0x281a   :  { %17406 = vmatprep.subr.bf16.mxu0 %v17397_v43 }
0x281c   :  { %16117 = vmatmul.mubr.msk.f32.gmra.mrb[170].mxu0 %vm55_vm0, %v18098_v46 }
0x281d   :  { %17408 = vmatpush3.bf16.msra.mxu0 %v17397_v43  ;;  %16127 = vmatprep.mubr.msk.f32.mxu0 %vm55_vm0, %v18203_v29 }
0x2820   :  { %16128 = vmatmul.mubr.msk.f32.vlgmr.msra.gmra.mrb[172].mxu0 %vm55_vm0, %v18201_v27 }
0x2821   :  { %16130 = vmatprep.mubr.msk.f32.mxu0 %vm55_vm0, %v18213_v40 }
0x2824   :  { %16131 = vmatmul.mubr.msk.f32.gmra.mrb[174].mxu0 %vm55_vm0, %v18207_v38 }
0x2825   :  { %16155 = vmatprep.mubr.msk.f32.mxu0 %vm55_vm0, %v18203_v29 }
0x28eb   :  { %v16115_v47 = vpop.f32.mrb[168].mxu0 }
0x28ec   :  { %v8699_v48 = vpop.f32.mrb[169].mxu0 }
0x28ed   :  { %v17409_v49 = vpack.c.bf16 %v16115_v47, %v8699_v48 }
0x28ef   :  { %v16118_v50 = vpop.f32.mrb[170].mxu0  ;;  %17410 = vmatprep.subr.bf16.mxu1 %v17409_v49 }
0x28f0   :  { %v8709_v51 = vpop.f32.mrb[171].mxu0  ;;  %17412 = vmatpush3.bf16.msra.mxu1 %v17409_v49  ;;  %v17437_v49 = vpack.c.bf16 %v8961_v24, %v8960_v37 }
0x28f1   :  { %v17413_v52 = vpack.c.bf16 %v16118_v50, %v8709_v51 }
0x28f3   :  { %v16129_v53 = vpop.f32.mrb[172].mxu0  ;;  %17414 = vmatprep.subr.bf16.mxu1 %v17413_v52 }
0x28f4   :  { %v8784_v54 = vpop.f32.mrb[173].mxu0  ;;  %17416 = vmatpush3.bf16.msra.mxu1 %v17413_v52  ;;  %v8963_v52 = vld [vmem:[%s20719_s6 + $0x28] sm:$0xff] }
0x28f7   :  { %v16132_v55 = vpop.f32.mrb[174].mxu0  ;;  %16142 = vmatmul.mubr.msk.f32.vlgmr.msra.gmra.mrb[20].mxu1 %vm55_vm0, %v18201_v27 }
0x28f8   :  { %v8794_v58 = vpop.f32.mrb[175].mxu0  ;;  %16144 = vmatprep.mubr.msk.f32.mxu1 %vm55_vm0, %v18213_v40 }
0x28fb   :  { %16145 = vmatmul.mubr.msk.f32.gmra.mrb[22].mxu1 %vm55_vm0, %v18207_v38 }
0x29ca   :  { %v16143_v59 = vpop.f32.mrb[20].mxu1 }
0x29cb   :  { %v8889_v60 = vmul.f32 2.0, %v16143_v59  ;;  %v8869_v63 = vpop.f32.mrb[21].mxu1  ;;  %v8964_v59 = vld [vmem:[%s20719_s6 + $0x30] sm:$0xff] }
0x29cc   :  { %v8888_v0 = vmul.f32 2.0, %v8869_v63 }
0x29cd   :  { %v8893_v1 = vsub.f32 %v8889_v60, %v16115_v47 }
0x29ce   :  { %v8892_v3 = vsub.f32 %v8888_v0, %v8699_v48  ;;  %v16146_v6 = vpop.f32.mrb[22].mxu1  ;;  %v8966_v0 = vld [vmem:[%s20719_s6 + $0x40] sm:$0xff] }
0x29cf   :  { %v8891_v7 = vmul.f32 2.0, %v16146_v6  ;;  %8923 = vrot.lane.b32.xlu1 %v8893_v1, %s18105_s0  ;;  %v8879_v8 = vpop.f32.mrb[23].mxu1  ;;  %v8967_v1 = vld [vmem:[%s20719_s6 + $0x48] sm:$0xff] }
0x29d0   :  { %v8890_v11 = vmul.f32 2.0, %v8879_v8  ;;  %8921 = vrot.lane.b32.xlu0 %v8892_v3, %s18105_s0  ;;  %v17449_v3 = vpack.c.bf16 %v8967_v1, %v8966_v0 }
0x29d1   :  { %v8895_v12 = vsub.f32 %v8891_v7, %v16118_v50 }
0x29d2   :  { %v8894_v13 = vsub.f32 %v8890_v11, %v8709_v51 }
0x29d3   :  { %8927 = vrot.lane.b32.xlu1 %v8895_v12, %s18105_s0 }
0x29d4   :  { %8925 = vrot.lane.b32.xlu0 %v8894_v13, %s18105_s0 }
0x29d7   :  { %8902 = vrot.lane.b32.xlu1 %v16115_v47, %s18105_s0 }
0x29d8   :  { %8900 = vrot.lane.b32.xlu0 %v8699_v48, %s18105_s0 }
0x29db   :  { %8906 = vrot.lane.b32.xlu1 %v16118_v50, %s18105_s0 }
0x29dc   :  { %8904 = vrot.lane.b32.xlu0 %v8709_v51, %s18105_s0 }
0x2a41   :  { %v8924_v56 = vpop.permute.xlu1 %8923 }
0x2a42   :  { %v8922_v57 = vpop.permute.xlu0 %8921  ;;  %v19659_v61 = vsel %vm8912_vm14, %v16129_v53, %v8924_v56 }
0x2a43   :  { %8943 = vrot.lane.b32.xlu1 %v19659_v61, %s18106_s24  ;;  %v19663_v5 = vsel %vm8912_vm14, %v8784_v54, %v8922_v57 }
0x2a44   :  { %8941 = vrot.lane.b32.xlu0 %v19663_v5, %s18106_s24  ;;  %v17417_v62 = vpack.c.bf16 %v19659_v61, %v19663_v5 }
0x2a45   :  { %v8928_v14 = vpop.permute.xlu1 %8927 }
0x2a46   :  { %v8926_v17 = vpop.permute.xlu0 %8925  ;;  %17418 = vmatprep.subr.bf16.mxu0 %v17417_v62  ;;  %v19675_v20 = vsel %vm8912_vm14, %v16132_v55, %v8928_v14  ;;  %v9355_v14 = vld [vmem:[%s20719_s6 + $0x80] sm:$0xff] }
0x2a47   :  { %17420 = vmatpush3.bf16.msra.mxu0 %v17417_v62  ;;  %8947 = vrot.lane.b32.xlu1 %v19675_v20, %s18106_s24  ;;  %v19679_v21 = vsel %vm8912_vm14, %v8794_v58, %v8926_v17  ;;  %v9354_v62 = vld [vmem:[%s20719_s6 + $0x78] sm:$0xff]  ;;  %v9357_v17 = vld [vmem:[%s20719_s6 + $0x90] sm:$0xff] }
0x2a48   :  { %8945 = vrot.lane.b32.xlu0 %v19679_v21, %s18106_s24  ;;  %v17421_v22 = vpack.c.bf16 %v19675_v20, %v19679_v21  ;;  %v17461_v15 = vpack.c.bf16 %v9355_v14, %v9354_v62 }
0x2a49   :  { %v8903_v19 = vpop.permute.xlu1 %8902 }
0x2a4a   :  { %17422 = vmatprep.subr.bf16.mxu0 %v17421_v22  ;;  %v8901_v26 = vpop.permute.xlu0 %8900  ;;  %v8914_v34 = vsel %vm8912_vm14, %v19618_v23, %v8903_v19  ;;  %17462 = vmatprep.subr.bf16.mxu1 %v17461_v15 }
0x2a4b   :  { %17424 = vmatpush3.bf16.msra.mxu0 %v17421_v22  ;;  %v8913_v39 = vsel %vm8912_vm14, %v19620_v36, %v8901_v26  ;;  %v8962_v36 = vld [vmem:[%s20719_s6 + $0x20] sm:$0xff]  ;;  %17464 = vmatpush3.bf16.msra.mxu1 %v17461_v15  ;;  %v17465_v22 = vpack.c.bf16 %v9357_v17, %v9356_v16 }
0x2a4c   :  { %17426 = vmatprep.subr.bf16.mxu0 %v17425_v25  ;;  %v17441_v58 = vpack.c.bf16 %v8963_v52, %v8962_v36 }
0x2a4d   :  { %v8907_v43 = vpop.permute.xlu1 %8906  ;;  %17466 = vmatprep.subr.bf16.mxu1 %v17465_v22 }
0x2a4e   :  { %16156 = vmatmul.mubr.msk.f32.vlgmr.msra.gmra.mrb[176].mxu0 %vm55_vm0, %v18201_v27  ;;  %v8905_v45 = vpop.permute.xlu0 %8904  ;;  %v8916_v50 = vsel %vm8912_vm14, %v19624_v41, %v8907_v43 }
0x2a4f   :  { %16158 = vmatprep.mubr.msk.f32.mxu0 %vm55_vm0, %v18213_v40  ;;  %17428 = vmatpush3.bf16.msra.mxu0 %v17425_v25  ;;  %v8915_v53 = vsel %vm8912_vm14, %v19626_v42, %v8905_v45  ;;  %v8965_v42 = vld [vmem:[%s20719_s6 + $0x38] sm:$0xff] }
0x2a50   :  { %17430 = vmatprep.subr.bf16.mxu0 %v17429_v18  ;;  %v17445_v63 = vpack.c.bf16 %v8965_v42, %v8964_v59  ;;  %17468 = vmatpush3.bf16.msra.mxu1 %v17465_v22  ;;  %v9358_v25 = vld [vmem:[%s20719_s6 + $0x98] sm:$0xff] }
0x2a51   :  { %16225 = vmatprep.subr.mxu1 %v9358_v25 }
0x2a52   :  { %16159 = vmatmul.mubr.msk.f32.gmra.mrb[178].mxu0 %vm55_vm0, %v18207_v38 }
0x2a53   :  { %17432 = vmatpush3.bf16.msra.mxu0 %v17429_v18  ;;  %v17477_v18 = vpack.c.bf16 %v9554_v2, %v9553_v28 }
0x2a54   :  { %16169 = vmatprep.subr.mxu0 %v9065_v4  ;;  %16226 = vmatpush3.msra.mxu1 %v9358_v25 }
0x2a55   :  { %17478 = vmatprep.subr.bf16.mxu1 %v17477_v18 }
0x2a57   :  { %16170 = vmatpush3.msra.mxu0 %v9065_v4 }
0x2a58   :  { %17434 = vmatprep.subr.bf16.mxu0 %v17433_v10 }
0x2ab5   :  { %v8944_v6 = vpop.permute.xlu1 %8943 }
0x2ab6   :  { %v8942_v41 = vpop.permute.xlu0 %8941  ;;  %v8955_v11 = vsel %vm8953_vm15, %v8914_v34, %v8944_v6  ;;  %v9756_v6 = vld [vmem:[%s20719_s6 + $0xe8] sm:$0xff] }
0x2ab7   :  { %v8954_v60 = vsel %vm8953_vm15, %v8913_v39, %v8942_v41 }
0x2ab9   :  { %v8948_v12 = vpop.permute.xlu1 %8947 }
0x2aba   :  { %v8946_v8 = vpop.permute.xlu0 %8945  ;;  %v8957_v57 = vsel %vm8953_vm15, %v8916_v50, %v8948_v12 }
0x2abb   :  { %v8956_v13 = vsel %vm8953_vm15, %v8915_v53, %v8946_v8  ;;  %v9952_v8 = vld [vmem:[%s20719_s6 + $0xf8] sm:$0xff] }
0x2b21   :  { %v16157_v30 = vpop.f32.mrb[176].mxu0 }
0x2b22   :  { %v9054_v33 = vmul.f32 2.0, %v16157_v30  ;;  %v9034_v9 = vpop.f32.mrb[177].mxu0 }
0x2b23   :  { %v9053_v35 = vmul.f32 2.0, %v9034_v9 }
0x2b24   :  { %v19715_v44 = vsub.f32 %v9054_v33, %v8914_v34 }
0x2b25   :  { %v19717_v46 = vsub.f32 %v9053_v35, %v8913_v39  ;;  %v16160_v47 = vpop.f32.mrb[178].mxu0 }
0x2b26   :  { %v9056_v23 = vmul.f32 2.0, %v16160_v47  ;;  %v9044_v48 = vpop.f32.mrb[179].mxu0 }
0x2b27   :  { %v9055_v51 = vmul.f32 2.0, %v9044_v48  ;;  %16171 = vmatprep.mubr.msk.f32.mxu0 %vm8953_vm15, %v19717_v46  ;;  %v17453_v7 = vpack.c.bf16 %v19715_v44, %v19717_v46  ;;  %v9752_v48 = vld [vmem:[%s20719_s6 + $0xc8] sm:$0xff] }
0x2b28   :  { %v19731_v54 = vsub.f32 %v9056_v23, %v8916_v50  ;;  %16172 = vmatmul.mubr.msk.f32.vlgmr.msra.gmra.mrb[180].mxu0 %vm8953_vm15, %v19715_v44  ;;  %v9557_v23 = vld [vmem:[%s20719_s6 + $0xc0] sm:$0xff] }
0x2b29   :  { %v19735_v55 = vsub.f32 %v9055_v51, %v8915_v53  ;;  %17436 = vmatpush3.bf16.msra.mxu0 %v17433_v10 }
0x2b2a   :  { %17438 = vmatprep.subr.bf16.mxu0 %v17437_v49 }
0x2b2b   :  { %16174 = vmatprep.mubr.msk.f32.mxu0 %vm8953_vm15, %v19735_v55  ;;  %v17457_v56 = vpack.c.bf16 %v19731_v54, %v19735_v55 }
0x2b2c   :  { %16175 = vmatmul.mubr.msk.f32.gmra.mrb[182].mxu0 %vm8953_vm15, %v19731_v54 }
0x2b2d   :  { %17440 = vmatpush3.bf16.msra.mxu0 %v17437_v49  ;;  %16197 = vmatprep.mubr.msk.f32.mxu0 %vm9163_vm1, %v8954_v60  ;;  %v9753_v49 = vld [vmem:[%s20719_s6 + $0xd0] sm:$0xff] }
0x2b2e   :  { %17442 = vmatprep.subr.bf16.mxu0 %v17441_v58  ;;  %v17493_v50 = vpack.c.bf16 %v9753_v49, %v9752_v48 }
0x2b31   :  { %17444 = vmatpush3.bf16.msra.mxu0 %v17441_v58 }
0x2b32   :  { %17446 = vmatprep.subr.bf16.mxu0 %v17445_v63 }
0x2b35   :  { %17448 = vmatpush3.bf16.msra.mxu0 %v17445_v63 }
0x2b36   :  { %17450 = vmatprep.subr.bf16.mxu0 %v17449_v3 }
0x2b39   :  { %17452 = vmatpush3.bf16.msra.mxu0 %v17449_v3 }
0x2b3a   :  { %17454 = vmatprep.subr.bf16.mxu0 %v17453_v7 }
0x2b3c   :  { %16198 = vmatmul.mubr.msk.f32.vlgmr.msra.gmra.mrb[180].mxu0 %vm9163_vm1, %v8955_v11 }
0x2b3d   :  { %16200 = vmatprep.mubr.msk.f32.mxu0 %vm9163_vm1, %v8956_v13  ;;  %17456 = vmatpush3.bf16.msra.mxu0 %v17453_v7  ;;  %v9951_v7 = vld [vmem:[%s20719_s6 + $0xf0] sm:$0xff] }
0x2b3e   :  { %17458 = vmatprep.subr.bf16.mxu0 %v17457_v56  ;;  %v17509_v11 = vpack.c.bf16 %v9952_v8, %v9951_v7 }
0x2b40   :  { %16201 = vmatmul.mubr.msk.f32.gmra.mrb[182].mxu0 %vm9163_vm1, %v8957_v57 }
0x2b41   :  { %17460 = vmatpush3.bf16.msra.mxu0 %v17457_v56  ;;  %16211 = vmatprep.mubr.msk.f32.mxu0 %vm55_vm0, %v18203_v29 }
0x2b44   :  { %16212 = vmatmul.mubr.msk.f32.vlgmr.msra.gmra.mrb[184].mxu0 %vm55_vm0, %v18201_v27 }
0x2b45   :  { %16214 = vmatprep.mubr.msk.f32.mxu0 %vm55_vm0, %v18213_v40 }
0x2b48   :  { %16215 = vmatmul.mubr.msk.f32.gmra.mrb[186].mxu0 %vm55_vm0, %v18207_v38 }
0x2b49   :  { %16241 = vmatprep.mubr.msk.f32.mxu0 %vm55_vm0, %v18203_v29 }
0x2c0f   :  { %v19796_v4 = vpop.f32.mrb[180].mxu0 }
0x2c10   :  { %v19798_v31 = vpop.f32.mrb[181].mxu0 }
0x2c13   :  { %v19800_v32 = vpop.f32.mrb[182].mxu0 }
0x2c14   :  { %v19802_v10 = vpop.f32.mrb[183].mxu0 }
0x2c17   :  { %v16213_v19 = vpop.f32.mrb[184].mxu0 }
0x2c18   :  { %v9347_v26 = vmul.f32 2.0, %v16213_v19  ;;  %v9327_v30 = vpop.f32.mrb[185].mxu0  ;;  %v9953_v19 = vld [vmem:[%s20719_s6 + $0x100] sm:$0xff] }
0x2c19   :  { %v9346_v33 = vmul.f32 2.0, %v9327_v30 }
0x2c1a   :  { %v19805_v9 = vsub.f32 %v9347_v26, %v19659_v61  ;;  %v9954_v26 = vld [vmem:[%s20719_s6 + $0x108] sm:$0xff] }
0x2c1b   :  { %v19808_v34 = vsub.f32 %v9346_v33, %v19663_v5  ;;  %v16216_v35 = vpop.f32.mrb[186].mxu0  ;;  %v17513_v30 = vpack.c.bf16 %v9954_v26, %v9953_v19  ;;  %v9955_v33 = vld [vmem:[%s20719_s6 + $0x110] sm:$0xff] }
0x2c1c   :  { %v9349_v37 = vmul.f32 2.0, %v16216_v35  ;;  %v9337_v24 = vpop.f32.mrb[187].mxu0 }
0x2c1d   :  { %v9348_v39 = vmul.f32 2.0, %v9337_v24  ;;  %16227 = vmatprep.mubr.msk.f32.mxu1 %vm8953_vm15, %v19808_v34  ;;  %v17469_v43 = vpack.c.bf16 %v19805_v9, %v19808_v34 }
0x2c1e   :  { %v19815_v45 = vsub.f32 %v9349_v37, %v19675_v20  ;;  %16228 = vmatmul.mubr.msk.f32.vlgmr.msra.gmra.mrb[24].mxu1 %vm8953_vm15, %v19805_v9  ;;  %v9555_v20 = vld [vmem:[%s20719_s6 + $0xb0] sm:$0xff] }
0x2c1f   :  { %v19820_v61 = vsub.f32 %v9348_v39, %v19679_v21  ;;  %17470 = vmatprep.subr.bf16.mxu0 %v17469_v43  ;;  %17480 = vmatpush3.bf16.msra.mxu1 %v17477_v18  ;;  %v9556_v21 = vld [vmem:[%s20719_s6 + $0xb8] sm:$0xff] }
0x2c20   :  { %17472 = vmatpush3.bf16.msra.mxu0 %v17469_v43  ;;  %v17481_v47 = vpack.c.bf16 %v9556_v21, %v9555_v20 }
0x2c21   :  { %16230 = vmatprep.mubr.msk.f32.mxu1 %vm8953_vm15, %v19820_v61  ;;  %v17473_v5 = vpack.c.bf16 %v19815_v45, %v19820_v61 }
0x2c22   :  { %16231 = vmatmul.mubr.msk.f32.gmra.mrb[26].mxu1 %vm8953_vm15, %v19815_v45  ;;  %17482 = vmatprep.subr.bf16.mxu1 %v17481_v47 }
0x2c23   :  { %17474 = vmatprep.subr.bf16.mxu0 %v17473_v5  ;;  %17484 = vmatpush3.bf16.msra.mxu1 %v17481_v47 }
0x2c24   :  { %17476 = vmatpush3.bf16.msra.mxu0 %v17473_v5  ;;  %16255 = vmatprep.subr.mxu1 %v9557_v23 }
0x2c27   :  { %16242 = vmatmul.mubr.msk.f32.vlgmr.msra.gmra.mrb[188].mxu0 %vm55_vm0, %v18201_v27  ;;  %16256 = vmatpush3.msra.mxu1 %v9557_v23 }
0x2c28   :  { %16244 = vmatprep.mubr.msk.f32.mxu0 %vm55_vm0, %v18213_v40  ;;  %17494 = vmatprep.subr.bf16.mxu1 %v17493_v50 }
0x2c2b   :  { %16245 = vmatmul.mubr.msk.f32.gmra.mrb[190].mxu0 %vm55_vm0, %v18207_v38 }
0x2c2c   :  { %16271 = vmatprep.mubr.msk.f32.mxu0 %vm55_vm0, %v18203_v29 }
0x2cfa   :  { %v16243_v51 = vpop.f32.mrb[188].mxu0 }
0x2cfb   :  { %v9546_v36 = vmul.f32 2.0, %v16243_v51  ;;  %v9526_v52 = vpop.f32.mrb[189].mxu0  ;;  %v10152_v51 = vld [vmem:[%s20719_s6 + $0x128] sm:$0xff] }
0x2cfc   :  { %v9545_v53 = vmul.f32 2.0, %v9526_v52 }
0x2cfd   :  { %v19852_v41 = vsub.f32 %v9546_v36, %v19715_v44  ;;  %v10153_v36 = vld [vmem:[%s20719_s6 + $0x130] sm:$0xff] }
0x2cfe   :  { %v19855_v58 = vsub.f32 %v9545_v53, %v19717_v46  ;;  %v16246_v59 = vpop.f32.mrb[190].mxu0  ;;  %v17529_v52 = vpack.c.bf16 %v10153_v36, %v10152_v51  ;;  %v10154_v53 = vld [vmem:[%s20719_s6 + $0x138] sm:$0xff] }
0x2cff   :  { %v9548_v42 = vmul.f32 2.0, %v16246_v59  ;;  %v9536_v60 = vpop.f32.mrb[191].mxu0 }
0x2d00   :  { %v9547_v63 = vmul.f32 2.0, %v9536_v60  ;;  %16257 = vmatprep.mubr.msk.f32.mxu1 %vm8953_vm15, %v19855_v58  ;;  %v17485_v0 = vpack.c.bf16 %v19852_v41, %v19855_v58 }
0x2d01   :  { %v19862_v1 = vsub.f32 %v9548_v42, %v19731_v54  ;;  %16258 = vmatmul.mubr.msk.f32.vlgmr.msra.gmra.mrb[24].mxu1 %vm8953_vm15, %v19852_v41  ;;  %v9754_v54 = vld [vmem:[%s20719_s6 + $0xd8] sm:$0xff] }
0x2d02   :  { %v19867_v44 = vsub.f32 %v9547_v63, %v19735_v55  ;;  %17486 = vmatprep.subr.bf16.mxu0 %v17485_v0  ;;  %17496 = vmatpush3.bf16.msra.mxu1 %v17493_v50  ;;  %v9755_v55 = vld [vmem:[%s20719_s6 + $0xe0] sm:$0xff] }
0x2d03   :  { %17488 = vmatpush3.bf16.msra.mxu0 %v17485_v0  ;;  %v17497_v3 = vpack.c.bf16 %v9755_v55, %v9754_v54 }
0x2d04   :  { %16260 = vmatprep.mubr.msk.f32.mxu1 %vm8953_vm15, %v19867_v44  ;;  %v17489_v46 = vpack.c.bf16 %v19862_v1, %v19867_v44 }
0x2d05   :  { %16261 = vmatmul.mubr.msk.f32.gmra.mrb[26].mxu1 %vm8953_vm15, %v19862_v1  ;;  %17498 = vmatprep.subr.bf16.mxu1 %v17497_v3 }
0x2d06   :  { %17490 = vmatprep.subr.bf16.mxu0 %v17489_v46  ;;  %17500 = vmatpush3.bf16.msra.mxu1 %v17497_v3 }
0x2d07   :  { %17492 = vmatpush3.bf16.msra.mxu0 %v17489_v46  ;;  %16285 = vmatprep.subr.mxu1 %v9756_v6 }
0x2d0a   :  { %16272 = vmatmul.mubr.msk.f32.vlgmr.msra.gmra.mrb[192].mxu0 %vm55_vm0, %v18201_v27  ;;  %16286 = vmatpush3.msra.mxu1 %v9756_v6 }
0x2d0b   :  { %16274 = vmatprep.mubr.msk.f32.mxu0 %vm55_vm0, %v18213_v40  ;;  %17510 = vmatprep.subr.bf16.mxu1 %v17509_v11 }
0x2d0e   :  { %16275 = vmatmul.mubr.msk.f32.gmra.mrb[194].mxu0 %vm55_vm0, %v18207_v38 }
0x2d0f   :  { %16301 = vmatprep.mubr.msk.f32.mxu0 %vm55_vm0, %v18203_v29 }
0x2ddd   :  { %v16273_v12 = vpop.f32.mrb[192].mxu0 }
0x2dde   :  { %v9745_v13 = vmul.f32 2.0, %v16273_v12  ;;  %v9725_v56 = vpop.f32.mrb[193].mxu0  ;;  %v10351_v12 = vld [vmem:[%s20719_s6 + $0x150] sm:$0xff] }
0x2ddf   :  { %v9744_v57 = vmul.f32 2.0, %v9725_v56 }
0x2de0   :  { %v19899_v62 = vsub.f32 %v9745_v13, %v19805_v9  ;;  %v10150_v9 = vld [vmem:[%s20719_s6 + $0x118] sm:$0xff] }
0x2de1   :  { %v19902_v14 = vsub.f32 %v9744_v57, %v19808_v34  ;;  %v16276_v15 = vpop.f32.mrb[194].mxu0  ;;  %v10151_v34 = vld [vmem:[%s20719_s6 + $0x120] sm:$0xff]  ;;  %v10352_v13 = vld [vmem:[%s20719_s6 + $0x158] sm:$0xff] }
0x2de2   :  { %v9747_v16 = vmul.f32 2.0, %v16276_v15  ;;  %v9735_v17 = vpop.f32.mrb[195].mxu0  ;;  %v17525_v35 = vpack.c.bf16 %v10151_v34, %v10150_v9  ;;  %v17545_v56 = vpack.c.bf16 %v10352_v13, %v10351_v12  ;;  %v10353_v57 = vld [vmem:[%s20719_s6 + $0x160] sm:$0xff] }
0x2de3   :  { %v9746_v22 = vmul.f32 2.0, %v9735_v17  ;;  %16287 = vmatprep.mubr.msk.f32.mxu1 %vm8953_vm15, %v19902_v14  ;;  %v17501_v25 = vpack.c.bf16 %v19899_v62, %v19902_v14 }
0x2de4   :  { %v19909_v28 = vsub.f32 %v9747_v16, %v19815_v45  ;;  %16288 = vmatmul.mubr.msk.f32.vlgmr.msra.gmra.mrb[24].mxu1 %vm8953_vm15, %v19899_v62 }
0x2de5   :  { %v19914_v2 = vsub.f32 %v9746_v22, %v19820_v61  ;;  %17502 = vmatprep.subr.bf16.mxu0 %v17501_v25  ;;  %17512 = vmatpush3.bf16.msra.mxu1 %v17509_v11 }
0x2de6   :  { %17504 = vmatpush3.bf16.msra.mxu0 %v17501_v25  ;;  %17514 = vmatprep.subr.bf16.mxu1 %v17513_v30 }
0x2de7   :  { %16290 = vmatprep.mubr.msk.f32.mxu1 %vm8953_vm15, %v19914_v2  ;;  %v17505_v18 = vpack.c.bf16 %v19909_v28, %v19914_v2 }
0x2de8   :  { %16291 = vmatmul.mubr.msk.f32.gmra.mrb[26].mxu1 %vm8953_vm15, %v19909_v28 }
0x2de9   :  { %17506 = vmatprep.subr.bf16.mxu0 %v17505_v18  ;;  %17516 = vmatpush3.bf16.msra.mxu1 %v17513_v30 }
0x2dea   :  { %17508 = vmatpush3.bf16.msra.mxu0 %v17505_v18  ;;  %16315 = vmatprep.subr.mxu1 %v9955_v33 }
0x2ded   :  { %16302 = vmatmul.mubr.msk.f32.vlgmr.msra.gmra.mrb[196].mxu0 %vm55_vm0, %v18201_v27  ;;  %16316 = vmatpush3.msra.mxu1 %v9955_v33 }
0x2dee   :  { %16304 = vmatprep.mubr.msk.f32.mxu0 %vm55_vm0, %v18213_v40  ;;  %17526 = vmatprep.subr.bf16.mxu1 %v17525_v35 }
0x2df1   :  { %16305 = vmatmul.mubr.msk.f32.gmra.mrb[198].mxu0 %vm55_vm0, %v18207_v38 }
0x2df2   :  { %16331 = vmatprep.mubr.msk.f32.mxu0 %vm55_vm0, %v18203_v29 }
0x2ec0   :  { %v16303_v37 = vpop.f32.mrb[196].mxu0 }
0x2ec1   :  { %v9944_v24 = vmul.f32 2.0, %v16303_v37  ;;  %v9924_v39 = vpop.f32.mrb[197].mxu0  ;;  %v10550_v37 = vld [vmem:[%s20719_s6 + $0x178] sm:$0xff] }
0x2ec2   :  { %v9943_v43 = vmul.f32 2.0, %v9924_v39 }
0x2ec3   :  { %v19946_v45 = vsub.f32 %v9944_v24, %v19852_v41  ;;  %v10349_v41 = vld [vmem:[%s20719_s6 + $0x140] sm:$0xff] }
0x2ec4   :  { %v19949_v61 = vsub.f32 %v9943_v43, %v19855_v58  ;;  %v16306_v5 = vpop.f32.mrb[198].mxu0  ;;  %v10350_v58 = vld [vmem:[%s20719_s6 + $0x148] sm:$0xff]  ;;  %v10551_v24 = vld [vmem:[%s20719_s6 + $0x180] sm:$0xff] }
0x2ec5   :  { %v9946_v20 = vmul.f32 2.0, %v16306_v5  ;;  %v9934_v21 = vpop.f32.mrb[199].mxu0  ;;  %v17541_v59 = vpack.c.bf16 %v10350_v58, %v10349_v41  ;;  %v17561_v39 = vpack.c.bf16 %v10551_v24, %v10550_v37  ;;  %v10552_v43 = vld [vmem:[%s20719_s6 + $0x188] sm:$0xff] }
0x2ec6   :  { %v9945_v47 = vmul.f32 2.0, %v9934_v21  ;;  %16317 = vmatprep.mubr.msk.f32.mxu1 %vm8953_vm15, %v19949_v61  ;;  %v17517_v23 = vpack.c.bf16 %v19946_v45, %v19949_v61 }
0x2ec7   :  { %v19956_v48 = vsub.f32 %v9946_v20, %v19862_v1  ;;  %16318 = vmatmul.mubr.msk.f32.vlgmr.msra.gmra.mrb[24].mxu1 %vm8953_vm15, %v19946_v45 }
0x2ec8   :  { %v19961_v49 = vsub.f32 %v9945_v47, %v19867_v44  ;;  %17518 = vmatprep.subr.bf16.mxu0 %v17517_v23  ;;  %17528 = vmatpush3.bf16.msra.mxu1 %v17525_v35 }
0x2ec9   :  { %17520 = vmatpush3.bf16.msra.mxu0 %v17517_v23  ;;  %17530 = vmatprep.subr.bf16.mxu1 %v17529_v52 }
0x2eca   :  { %16320 = vmatprep.mubr.msk.f32.mxu1 %vm8953_vm15, %v19961_v49  ;;  %v17521_v50 = vpack.c.bf16 %v19956_v48, %v19961_v49 }
0x2ecb   :  { %16321 = vmatmul.mubr.msk.f32.gmra.mrb[26].mxu1 %vm8953_vm15, %v19956_v48 }
0x2ecc   :  { %17522 = vmatprep.subr.bf16.mxu0 %v17521_v50  ;;  %17532 = vmatpush3.bf16.msra.mxu1 %v17529_v52 }
0x2ecd   :  { %17524 = vmatpush3.bf16.msra.mxu0 %v17521_v50  ;;  %16345 = vmatprep.subr.mxu1 %v10154_v53 }
0x2ed0   :  { %16332 = vmatmul.mubr.msk.f32.vlgmr.msra.gmra.mrb[200].mxu0 %vm55_vm0, %v18201_v27  ;;  %16346 = vmatpush3.msra.mxu1 %v10154_v53 }
0x2ed1   :  { %16334 = vmatprep.mubr.msk.f32.mxu0 %vm55_vm0, %v18213_v40  ;;  %17542 = vmatprep.subr.bf16.mxu1 %v17541_v59 }
0x2ed4   :  { %16335 = vmatmul.mubr.msk.f32.gmra.mrb[202].mxu0 %vm55_vm0, %v18207_v38 }
0x2ed5   :  { %16361 = vmatprep.mubr.msk.f32.mxu0 %vm55_vm0, %v18203_v29 }
0x2fa3   :  { %v16333_v42 = vpop.f32.mrb[200].mxu0 }
0x2fa4   :  { %v10143_v60 = vmul.f32 2.0, %v16333_v42  ;;  %v10123_v63 = vpop.f32.mrb[201].mxu0  ;;  %v10749_v42 = vld [vmem:[%s20719_s6 + $0x1a0] sm:$0xff] }
0x2fa5   :  { %v10142_v0 = vmul.f32 2.0, %v10123_v63 }
0x2fa6   :  { %v19993_v1 = vsub.f32 %v10143_v60, %v19899_v62  ;;  %v10548_v62 = vld [vmem:[%s20719_s6 + $0x168] sm:$0xff] }
0x2fa7   :  { %v19996_v44 = vsub.f32 %v10142_v0, %v19902_v14  ;;  %v16336_v46 = vpop.f32.mrb[202].mxu0  ;;  %v10549_v14 = vld [vmem:[%s20719_s6 + $0x170] sm:$0xff]  ;;  %v10750_v60 = vld [vmem:[%s20719_s6 + $0x1a8] sm:$0xff] }
0x2fa8   :  { %v10145_v54 = vmul.f32 2.0, %v16336_v46  ;;  %v10133_v55 = vpop.f32.mrb[203].mxu0  ;;  %v17557_v15 = vpack.c.bf16 %v10549_v14, %v10548_v62  ;;  %v17577_v63 = vpack.c.bf16 %v10750_v60, %v10749_v42  ;;  %v10751_v0 = vld [vmem:[%s20719_s6 + $0x1b0] sm:$0xff] }
0x2fa9   :  { %v10144_v3 = vmul.f32 2.0, %v10133_v55  ;;  %16347 = vmatprep.mubr.msk.f32.mxu1 %vm8953_vm15, %v19996_v44  ;;  %v17533_v6 = vpack.c.bf16 %v19993_v1, %v19996_v44 }
0x2faa   :  { %v20003_v7 = vsub.f32 %v10145_v54, %v19909_v28  ;;  %16348 = vmatmul.mubr.msk.f32.vlgmr.msra.gmra.mrb[24].mxu1 %vm8953_vm15, %v19993_v1 }
0x2fab   :  { %v20008_v8 = vsub.f32 %v10144_v3, %v19914_v2  ;;  %17534 = vmatprep.subr.bf16.mxu0 %v17533_v6  ;;  %17544 = vmatpush3.bf16.msra.mxu1 %v17541_v59 }
0x2fac   :  { %17536 = vmatpush3.bf16.msra.mxu0 %v17533_v6  ;;  %17546 = vmatprep.subr.bf16.mxu1 %v17545_v56 }
0x2fad   :  { %16350 = vmatprep.mubr.msk.f32.mxu1 %vm8953_vm15, %v20008_v8  ;;  %v17537_v11 = vpack.c.bf16 %v20003_v7, %v20008_v8 }
0x2fae   :  { %16351 = vmatmul.mubr.msk.f32.gmra.mrb[26].mxu1 %vm8953_vm15, %v20003_v7 }
0x2faf   :  { %17538 = vmatprep.subr.bf16.mxu0 %v17537_v11  ;;  %17548 = vmatpush3.bf16.msra.mxu1 %v17545_v56 }
0x2fb0   :  { %17540 = vmatpush3.bf16.msra.mxu0 %v17537_v11  ;;  %16375 = vmatprep.subr.mxu1 %v10353_v57 }
0x2fb3   :  { %16362 = vmatmul.mubr.msk.f32.vlgmr.msra.gmra.mrb[204].mxu0 %vm55_vm0, %v18201_v27  ;;  %16376 = vmatpush3.msra.mxu1 %v10353_v57 }
0x2fb4   :  { %16364 = vmatprep.mubr.msk.f32.mxu0 %vm55_vm0, %v18213_v40  ;;  %17558 = vmatprep.subr.bf16.mxu1 %v17557_v15 }
0x2fb7   :  { %16365 = vmatmul.mubr.msk.f32.gmra.mrb[206].mxu0 %vm55_vm0, %v18207_v38 }
0x2fb8   :  { %16391 = vmatprep.mubr.msk.f32.mxu0 %vm55_vm0, %v18203_v29 }
0x3086   :  { %v16363_v16 = vpop.f32.mrb[204].mxu0 }
0x3087   :  { %v10342_v17 = vmul.f32 2.0, %v16363_v16  ;;  %v10322_v22 = vpop.f32.mrb[205].mxu0  ;;  %v10948_v16 = vld [vmem:[%s20719_s6 + $0x1c8] sm:$0xff] }
0x3088   :  { %v10341_v25 = vmul.f32 2.0, %v10322_v22 }
0x3089   :  { %v20040_v28 = vsub.f32 %v10342_v17, %v19946_v45  ;;  %v10747_v45 = vld [vmem:[%s20719_s6 + $0x190] sm:$0xff] }
0x308a   :  { %v20043_v2 = vsub.f32 %v10341_v25, %v19949_v61  ;;  %v16366_v18 = vpop.f32.mrb[206].mxu0  ;;  %v10748_v61 = vld [vmem:[%s20719_s6 + $0x198] sm:$0xff]  ;;  %v10949_v17 = vld [vmem:[%s20719_s6 + $0x1d0] sm:$0xff] }
0x308b   :  { %v10344_v19 = vmul.f32 2.0, %v16366_v18  ;;  %v10332_v26 = vpop.f32.mrb[207].mxu0  ;;  %v17573_v5 = vpack.c.bf16 %v10748_v61, %v10747_v45  ;;  %v17593_v22 = vpack.c.bf16 %v10949_v17, %v10948_v16  ;;  %v10950_v25 = vld [vmem:[%s20719_s6 + $0x1d8] sm:$0xff] }
0x308c   :  { %v10343_v30 = vmul.f32 2.0, %v10332_v26  ;;  %16377 = vmatprep.mubr.msk.f32.mxu1 %vm8953_vm15, %v20043_v2  ;;  %v17549_v33 = vpack.c.bf16 %v20040_v28, %v20043_v2 }
0x308d   :  { %v20050_v9 = vsub.f32 %v10344_v19, %v19956_v48  ;;  %16378 = vmatmul.mubr.msk.f32.vlgmr.msra.gmra.mrb[24].mxu1 %vm8953_vm15, %v20040_v28 }
0x308e   :  { %v20055_v34 = vsub.f32 %v10343_v30, %v19961_v49  ;;  %17550 = vmatprep.subr.bf16.mxu0 %v17549_v33  ;;  %17560 = vmatpush3.bf16.msra.mxu1 %v17557_v15 }
0x308f   :  { %17552 = vmatpush3.bf16.msra.mxu0 %v17549_v33  ;;  %17562 = vmatprep.subr.bf16.mxu1 %v17561_v39 }
0x3090   :  { %16380 = vmatprep.mubr.msk.f32.mxu1 %vm8953_vm15, %v20055_v34  ;;  %v17553_v35 = vpack.c.bf16 %v20050_v9, %v20055_v34 }
0x3091   :  { %16381 = vmatmul.mubr.msk.f32.gmra.mrb[26].mxu1 %vm8953_vm15, %v20050_v9 }
0x3092   :  { %17554 = vmatprep.subr.bf16.mxu0 %v17553_v35  ;;  %17564 = vmatpush3.bf16.msra.mxu1 %v17561_v39 }
0x3093   :  { %17556 = vmatpush3.bf16.msra.mxu0 %v17553_v35  ;;  %16405 = vmatprep.subr.mxu1 %v10552_v43 }
0x3096   :  { %16392 = vmatmul.mubr.msk.f32.vlgmr.msra.gmra.mrb[208].mxu0 %vm55_vm0, %v18201_v27  ;;  %16406 = vmatpush3.msra.mxu1 %v10552_v43 }
0x3097   :  { %16394 = vmatprep.mubr.msk.f32.mxu0 %vm55_vm0, %v18213_v40  ;;  %17574 = vmatprep.subr.bf16.mxu1 %v17573_v5 }
0x309a   :  { %16395 = vmatmul.mubr.msk.f32.gmra.mrb[210].mxu0 %vm55_vm0, %v18207_v38 }
0x309b   :  { %16421 = vmatprep.mubr.msk.f32.mxu0 %vm55_vm0, %v18203_v29 }
0x3169   :  { %v16393_v20 = vpop.f32.mrb[208].mxu0 }
0x316a   :  { %v10541_v21 = vmul.f32 2.0, %v16393_v20  ;;  %v10521_v47 = vpop.f32.mrb[209].mxu0  ;;  %v11147_v20 = vld [vmem:[%s20719_s6 + $0x1f0] sm:$0xff] }
0x316b   :  { %v10540_v23 = vmul.f32 2.0, %v10521_v47 }
0x316c   :  { %v20087_v48 = vsub.f32 %v10541_v21, %v19993_v1  ;;  %v10946_v1 = vld [vmem:[%s20719_s6 + $0x1b8] sm:$0xff] }
0x316d   :  { %v20090_v49 = vsub.f32 %v10540_v23, %v19996_v44  ;;  %v16396_v50 = vpop.f32.mrb[210].mxu0  ;;  %v10947_v44 = vld [vmem:[%s20719_s6 + $0x1c0] sm:$0xff]  ;;  %v11148_v21 = vld [vmem:[%s20719_s6 + $0x1f8] sm:$0xff] }
0x316e   :  { %v10543_v51 = vmul.f32 2.0, %v16396_v50  ;;  %v10531_v36 = vpop.f32.mrb[211].mxu0  ;;  %v17589_v46 = vpack.c.bf16 %v10947_v44, %v10946_v1  ;;  %v17609_v47 = vpack.c.bf16 %v11148_v21, %v11147_v20  ;;  %v11149_v23 = vld [vmem:[%s20719_s6 + $0x200] sm:$0xff] }
0x316f   :  { %v10542_v52 = vmul.f32 2.0, %v10531_v36  ;;  %16407 = vmatprep.mubr.msk.f32.mxu1 %vm8953_vm15, %v20090_v49  ;;  %v17565_v53 = vpack.c.bf16 %v20087_v48, %v20090_v49 }
0x3170   :  { %v20097_v41 = vsub.f32 %v10543_v51, %v20003_v7  ;;  %16408 = vmatmul.mubr.msk.f32.vlgmr.msra.gmra.mrb[24].mxu1 %vm8953_vm15, %v20087_v48 }
0x3171   :  { %v20102_v58 = vsub.f32 %v10542_v52, %v20008_v8  ;;  %17566 = vmatprep.subr.bf16.mxu0 %v17565_v53  ;;  %17576 = vmatpush3.bf16.msra.mxu1 %v17573_v5 }
0x3172   :  { %17568 = vmatpush3.bf16.msra.mxu0 %v17565_v53  ;;  %17578 = vmatprep.subr.bf16.mxu1 %v17577_v63 }
0x3173   :  { %16410 = vmatprep.mubr.msk.f32.mxu1 %vm8953_vm15, %v20102_v58  ;;  %v17569_v59 = vpack.c.bf16 %v20097_v41, %v20102_v58 }
0x3174   :  { %16411 = vmatmul.mubr.msk.f32.gmra.mrb[26].mxu1 %vm8953_vm15, %v20097_v41 }
0x3175   :  { %17570 = vmatprep.subr.bf16.mxu0 %v17569_v59  ;;  %17580 = vmatpush3.bf16.msra.mxu1 %v17577_v63 }
0x3176   :  { %17572 = vmatpush3.bf16.msra.mxu0 %v17569_v59  ;;  %16435 = vmatprep.subr.mxu1 %v10751_v0 }
0x3179   :  { %16422 = vmatmul.mubr.msk.f32.vlgmr.msra.gmra.mrb[212].mxu0 %vm55_vm0, %v18201_v27  ;;  %16436 = vmatpush3.msra.mxu1 %v10751_v0 }
0x317a   :  { %16424 = vmatprep.mubr.msk.f32.mxu0 %vm55_vm0, %v18213_v40  ;;  %17590 = vmatprep.subr.bf16.mxu1 %v17589_v46 }
0x317d   :  { %16425 = vmatmul.mubr.msk.f32.gmra.mrb[214].mxu0 %vm55_vm0, %v18207_v38 }
0x317e   :  { %16451 = vmatprep.mubr.msk.f32.mxu0 %vm55_vm0, %v18203_v29 }
0x324c   :  { %v16423_v54 = vpop.f32.mrb[212].mxu0 }
0x324d   :  { %v10740_v55 = vmul.f32 2.0, %v16423_v54  ;;  %v10720_v3 = vpop.f32.mrb[213].mxu0  ;;  %v11346_v54 = vld [vmem:[%s20719_s6 + $0x218] sm:$0xff] }
0x324e   :  { %v10739_v6 = vmul.f32 2.0, %v10720_v3 }
0x324f   :  { %v20134_v7 = vsub.f32 %v10740_v55, %v20040_v28  ;;  %v11145_v28 = vld [vmem:[%s20719_s6 + $0x1e0] sm:$0xff] }
0x3250   :  { %v20137_v8 = vsub.f32 %v10739_v6, %v20043_v2  ;;  %v16426_v11 = vpop.f32.mrb[214].mxu0  ;;  %v11146_v2 = vld [vmem:[%s20719_s6 + $0x1e8] sm:$0xff]  ;;  %v11347_v55 = vld [vmem:[%s20719_s6 + $0x220] sm:$0xff] }
0x3251   :  { %v10742_v12 = vmul.f32 2.0, %v16426_v11  ;;  %v10730_v13 = vpop.f32.mrb[215].mxu0  ;;  %v17605_v18 = vpack.c.bf16 %v11146_v2, %v11145_v28  ;;  %v17625_v3 = vpack.c.bf16 %v11347_v55, %v11346_v54  ;;  %v11348_v6 = vld [vmem:[%s20719_s6 + $0x228] sm:$0xff] }
0x3252   :  { %v10741_v56 = vmul.f32 2.0, %v10730_v13  ;;  %16437 = vmatprep.mubr.msk.f32.mxu1 %vm8953_vm15, %v20137_v8  ;;  %v17581_v57 = vpack.c.bf16 %v20134_v7, %v20137_v8 }
0x3253   :  { %v20144_v62 = vsub.f32 %v10742_v12, %v20050_v9  ;;  %16438 = vmatmul.mubr.msk.f32.vlgmr.msra.gmra.mrb[24].mxu1 %vm8953_vm15, %v20134_v7 }
0x3254   :  { %v20149_v14 = vsub.f32 %v10741_v56, %v20055_v34  ;;  %17582 = vmatprep.subr.bf16.mxu0 %v17581_v57  ;;  %17592 = vmatpush3.bf16.msra.mxu1 %v17589_v46 }
0x3255   :  { %17584 = vmatpush3.bf16.msra.mxu0 %v17581_v57  ;;  %17594 = vmatprep.subr.bf16.mxu1 %v17593_v22 }
0x3256   :  { %16440 = vmatprep.mubr.msk.f32.mxu1 %vm8953_vm15, %v20149_v14  ;;  %v17585_v15 = vpack.c.bf16 %v20144_v62, %v20149_v14 }
0x3257   :  { %16441 = vmatmul.mubr.msk.f32.gmra.mrb[26].mxu1 %vm8953_vm15, %v20144_v62 }
0x3258   :  { %17586 = vmatprep.subr.bf16.mxu0 %v17585_v15  ;;  %17596 = vmatpush3.bf16.msra.mxu1 %v17593_v22 }
0x3259   :  { %17588 = vmatpush3.bf16.msra.mxu0 %v17585_v15  ;;  %16465 = vmatprep.subr.mxu1 %v10950_v25 }
0x325c   :  { %16452 = vmatmul.mubr.msk.f32.vlgmr.msra.gmra.mrb[216].mxu0 %vm55_vm0, %v18201_v27  ;;  %16466 = vmatpush3.msra.mxu1 %v10950_v25 }
0x325d   :  { %16454 = vmatprep.mubr.msk.f32.mxu0 %vm55_vm0, %v18213_v40  ;;  %17606 = vmatprep.subr.bf16.mxu1 %v17605_v18 }
0x3260   :  { %16455 = vmatmul.mubr.msk.f32.gmra.mrb[218].mxu0 %vm55_vm0, %v18207_v38 }
0x3261   :  { %16481 = vmatprep.mubr.msk.f32.mxu0 %vm55_vm0, %v18203_v29 }
0x332f   :  { %v16453_v19 = vpop.f32.mrb[216].mxu0 }
0x3330   :  { %v10939_v26 = vmul.f32 2.0, %v16453_v19  ;;  %v10919_v30 = vpop.f32.mrb[217].mxu0  ;;  %v11545_v19 = vld [vmem:[%s20719_s6 + $0x240] sm:$0xff] }
0x3331   :  { %v10938_v33 = vmul.f32 2.0, %v10919_v30 }
0x3332   :  { %v20181_v9 = vsub.f32 %v10939_v26, %v20087_v48  ;;  %v11344_v48 = vld [vmem:[%s20719_s6 + $0x208] sm:$0xff] }
0x3333   :  { %v20184_v34 = vsub.f32 %v10938_v33, %v20090_v49  ;;  %v16456_v35 = vpop.f32.mrb[218].mxu0  ;;  %v11345_v49 = vld [vmem:[%s20719_s6 + $0x210] sm:$0xff]  ;;  %v11546_v26 = vld [vmem:[%s20719_s6 + $0x248] sm:$0xff] }
0x3334   :  { %v10941_v37 = vmul.f32 2.0, %v16456_v35  ;;  %v10929_v24 = vpop.f32.mrb[219].mxu0  ;;  %v17621_v50 = vpack.c.bf16 %v11345_v49, %v11344_v48  ;;  %v17641_v30 = vpack.c.bf16 %v11546_v26, %v11545_v19  ;;  %v11547_v33 = vld [vmem:[%s20719_s6 + $0x250] sm:$0xff] }
0x3335   :  { %v10940_v39 = vmul.f32 2.0, %v10929_v24  ;;  %16467 = vmatprep.mubr.msk.f32.mxu1 %vm8953_vm15, %v20184_v34  ;;  %v17597_v43 = vpack.c.bf16 %v20181_v9, %v20184_v34 }
0x3336   :  { %v20191_v45 = vsub.f32 %v10941_v37, %v20097_v41  ;;  %16468 = vmatmul.mubr.msk.f32.vlgmr.msra.gmra.mrb[24].mxu1 %vm8953_vm15, %v20181_v9 }
0x3337   :  { %v20196_v61 = vsub.f32 %v10940_v39, %v20102_v58  ;;  %17598 = vmatprep.subr.bf16.mxu0 %v17597_v43  ;;  %17608 = vmatpush3.bf16.msra.mxu1 %v17605_v18 }
0x3338   :  { %17600 = vmatpush3.bf16.msra.mxu0 %v17597_v43  ;;  %17610 = vmatprep.subr.bf16.mxu1 %v17609_v47 }
0x3339   :  { %16470 = vmatprep.mubr.msk.f32.mxu1 %vm8953_vm15, %v20196_v61  ;;  %v17601_v5 = vpack.c.bf16 %v20191_v45, %v20196_v61 }
0x333a   :  { %16471 = vmatmul.mubr.msk.f32.gmra.mrb[26].mxu1 %vm8953_vm15, %v20191_v45 }
0x333b   :  { %17602 = vmatprep.subr.bf16.mxu0 %v17601_v5  ;;  %17612 = vmatpush3.bf16.msra.mxu1 %v17609_v47 }
0x333c   :  { %17604 = vmatpush3.bf16.msra.mxu0 %v17601_v5  ;;  %16495 = vmatprep.subr.mxu1 %v11149_v23 }
0x333f   :  { %16482 = vmatmul.mubr.msk.f32.vlgmr.msra.gmra.mrb[220].mxu0 %vm55_vm0, %v18201_v27  ;;  %16496 = vmatpush3.msra.mxu1 %v11149_v23 }
0x3340   :  { %16484 = vmatprep.mubr.msk.f32.mxu0 %vm55_vm0, %v18213_v40  ;;  %17622 = vmatprep.subr.bf16.mxu1 %v17621_v50 }
0x3343   :  { %16485 = vmatmul.mubr.msk.f32.gmra.mrb[222].mxu0 %vm55_vm0, %v18207_v38 }
0x3344   :  { %16511 = vmatprep.mubr.msk.f32.mxu0 %vm55_vm0, %v18203_v29 }
0x3412   :  { %v16483_v51 = vpop.f32.mrb[220].mxu0 }
0x3413   :  { %v11138_v36 = vmul.f32 2.0, %v16483_v51  ;;  %v11118_v52 = vpop.f32.mrb[221].mxu0  ;;  %v11744_v51 = vld [vmem:[%s20719_s6 + $0x268] sm:$0xff] }
0x3414   :  { %v11137_v53 = vmul.f32 2.0, %v11118_v52 }
0x3415   :  { %v20228_v41 = vsub.f32 %v11138_v36, %v20134_v7  ;;  %v11543_v7 = vld [vmem:[%s20719_s6 + $0x230] sm:$0xff] }
0x3416   :  { %v20231_v58 = vsub.f32 %v11137_v53, %v20137_v8  ;;  %v16486_v59 = vpop.f32.mrb[222].mxu0  ;;  %v11544_v8 = vld [vmem:[%s20719_s6 + $0x238] sm:$0xff]  ;;  %v11745_v36 = vld [vmem:[%s20719_s6 + $0x270] sm:$0xff] }
0x3417   :  { %v11140_v42 = vmul.f32 2.0, %v16486_v59  ;;  %v11128_v60 = vpop.f32.mrb[223].mxu0  ;;  %v17637_v11 = vpack.c.bf16 %v11544_v8, %v11543_v7  ;;  %v17657_v52 = vpack.c.bf16 %v11745_v36, %v11744_v51  ;;  %v11746_v53 = vld [vmem:[%s20719_s6 + $0x278] sm:$0xff] }
0x3418   :  { %v11139_v63 = vmul.f32 2.0, %v11128_v60  ;;  %16497 = vmatprep.mubr.msk.f32.mxu1 %vm8953_vm15, %v20231_v58  ;;  %v17613_v0 = vpack.c.bf16 %v20228_v41, %v20231_v58 }
0x3419   :  { %v20238_v1 = vsub.f32 %v11140_v42, %v20144_v62  ;;  %16498 = vmatmul.mubr.msk.f32.vlgmr.msra.gmra.mrb[24].mxu1 %vm8953_vm15, %v20228_v41 }
0x341a   :  { %v20243_v44 = vsub.f32 %v11139_v63, %v20149_v14  ;;  %17614 = vmatprep.subr.bf16.mxu0 %v17613_v0  ;;  %17624 = vmatpush3.bf16.msra.mxu1 %v17621_v50 }
0x341b   :  { %17616 = vmatpush3.bf16.msra.mxu0 %v17613_v0  ;;  %17626 = vmatprep.subr.bf16.mxu1 %v17625_v3 }
0x341c   :  { %16500 = vmatprep.mubr.msk.f32.mxu1 %vm8953_vm15, %v20243_v44  ;;  %v17617_v46 = vpack.c.bf16 %v20238_v1, %v20243_v44 }
0x341d   :  { %16501 = vmatmul.mubr.msk.f32.gmra.mrb[26].mxu1 %vm8953_vm15, %v20238_v1 }
0x341e   :  { %17618 = vmatprep.subr.bf16.mxu0 %v17617_v46  ;;  %17628 = vmatpush3.bf16.msra.mxu1 %v17625_v3 }
0x341f   :  { %17620 = vmatpush3.bf16.msra.mxu0 %v17617_v46  ;;  %16525 = vmatprep.subr.mxu1 %v11348_v6 }
0x3422   :  { %16512 = vmatmul.mubr.msk.f32.vlgmr.msra.gmra.mrb[224].mxu0 %vm55_vm0, %v18201_v27  ;;  %16526 = vmatpush3.msra.mxu1 %v11348_v6 }
0x3423   :  { %16514 = vmatprep.mubr.msk.f32.mxu0 %vm55_vm0, %v18213_v40  ;;  %17638 = vmatprep.subr.bf16.mxu1 %v17637_v11 }
0x3426   :  { %16515 = vmatmul.mubr.msk.f32.gmra.mrb[226].mxu0 %vm55_vm0, %v18207_v38 }
0x3427   :  { %16541 = vmatprep.mubr.msk.f32.mxu0 %vm55_vm0, %v18203_v29 }
0x34f5   :  { %v16513_v12 = vpop.f32.mrb[224].mxu0 }
0x34f6   :  { %v11337_v13 = vmul.f32 2.0, %v16513_v12  ;;  %v11317_v56 = vpop.f32.mrb[225].mxu0  ;;  %v11943_v12 = vld [vmem:[%s20719_s6 + $0x290] sm:$0xff] }
0x34f7   :  { %v11336_v57 = vmul.f32 2.0, %v11317_v56 }
0x34f8   :  { %v20275_v62 = vsub.f32 %v11337_v13, %v20181_v9  ;;  %v11742_v9 = vld [vmem:[%s20719_s6 + $0x258] sm:$0xff] }
0x34f9   :  { %v20278_v14 = vsub.f32 %v11336_v57, %v20184_v34  ;;  %v16516_v15 = vpop.f32.mrb[226].mxu0  ;;  %v11743_v34 = vld [vmem:[%s20719_s6 + $0x260] sm:$0xff]  ;;  %v11944_v13 = vld [vmem:[%s20719_s6 + $0x298] sm:$0xff] }
0x34fa   :  { %v11339_v16 = vmul.f32 2.0, %v16516_v15  ;;  %v11327_v17 = vpop.f32.mrb[227].mxu0  ;;  %v17653_v35 = vpack.c.bf16 %v11743_v34, %v11742_v9  ;;  %v17673_v56 = vpack.c.bf16 %v11944_v13, %v11943_v12  ;;  %v11945_v57 = vld [vmem:[%s20719_s6 + $0x2a0] sm:$0xff] }
0x34fb   :  { %v11338_v22 = vmul.f32 2.0, %v11327_v17  ;;  %16527 = vmatprep.mubr.msk.f32.mxu1 %vm8953_vm15, %v20278_v14  ;;  %v17629_v25 = vpack.c.bf16 %v20275_v62, %v20278_v14 }
0x34fc   :  { %v20285_v28 = vsub.f32 %v11339_v16, %v20191_v45  ;;  %16528 = vmatmul.mubr.msk.f32.vlgmr.msra.gmra.mrb[24].mxu1 %vm8953_vm15, %v20275_v62 }
0x34fd   :  { %v20290_v2 = vsub.f32 %v11338_v22, %v20196_v61  ;;  %17630 = vmatprep.subr.bf16.mxu0 %v17629_v25  ;;  %17640 = vmatpush3.bf16.msra.mxu1 %v17637_v11 }
0x34fe   :  { %17632 = vmatpush3.bf16.msra.mxu0 %v17629_v25  ;;  %17642 = vmatprep.subr.bf16.mxu1 %v17641_v30 }
0x34ff   :  { %16530 = vmatprep.mubr.msk.f32.mxu1 %vm8953_vm15, %v20290_v2  ;;  %v17633_v18 = vpack.c.bf16 %v20285_v28, %v20290_v2 }
0x3500   :  { %16531 = vmatmul.mubr.msk.f32.gmra.mrb[26].mxu1 %vm8953_vm15, %v20285_v28 }
0x3501   :  { %17634 = vmatprep.subr.bf16.mxu0 %v17633_v18  ;;  %17644 = vmatpush3.bf16.msra.mxu1 %v17641_v30 }
0x3502   :  { %17636 = vmatpush3.bf16.msra.mxu0 %v17633_v18  ;;  %16555 = vmatprep.subr.mxu1 %v11547_v33 }
0x3505   :  { %16542 = vmatmul.mubr.msk.f32.vlgmr.msra.gmra.mrb[228].mxu0 %vm55_vm0, %v18201_v27  ;;  %16556 = vmatpush3.msra.mxu1 %v11547_v33 }
0x3506   :  { %16544 = vmatprep.mubr.msk.f32.mxu0 %vm55_vm0, %v18213_v40  ;;  %17654 = vmatprep.subr.bf16.mxu1 %v17653_v35 }
0x3509   :  { %16545 = vmatmul.mubr.msk.f32.gmra.mrb[230].mxu0 %vm55_vm0, %v18207_v38 }
0x350a   :  { %16571 = vmatprep.mubr.msk.f32.mxu0 %vm55_vm0, %v18203_v29 }
0x35d8   :  { %v16543_v37 = vpop.f32.mrb[228].mxu0 }
0x35d9   :  { %v11536_v24 = vmul.f32 2.0, %v16543_v37  ;;  %v11516_v39 = vpop.f32.mrb[229].mxu0  ;;  %v12142_v37 = vld [vmem:[%s20719_s6 + $0x2b8] sm:$0xff] }
0x35da   :  { %v11535_v43 = vmul.f32 2.0, %v11516_v39 }
0x35db   :  { %v20322_v45 = vsub.f32 %v11536_v24, %v20228_v41  ;;  %v11941_v41 = vld [vmem:[%s20719_s6 + $0x280] sm:$0xff] }
0x35dc   :  { %v20325_v61 = vsub.f32 %v11535_v43, %v20231_v58  ;;  %v16546_v5 = vpop.f32.mrb[230].mxu0  ;;  %v11942_v58 = vld [vmem:[%s20719_s6 + $0x288] sm:$0xff]  ;;  %v12143_v24 = vld [vmem:[%s20719_s6 + $0x2c0] sm:$0xff] }
0x35dd   :  { %v11538_v20 = vmul.f32 2.0, %v16546_v5  ;;  %v11526_v21 = vpop.f32.mrb[231].mxu0  ;;  %v17669_v59 = vpack.c.bf16 %v11942_v58, %v11941_v41  ;;  %v17689_v39 = vpack.c.bf16 %v12143_v24, %v12142_v37  ;;  %v12144_v43 = vld [vmem:[%s20719_s6 + $0x2c8] sm:$0xff] }
0x35de   :  { %v11537_v47 = vmul.f32 2.0, %v11526_v21  ;;  %16557 = vmatprep.mubr.msk.f32.mxu1 %vm8953_vm15, %v20325_v61  ;;  %v17645_v23 = vpack.c.bf16 %v20322_v45, %v20325_v61 }
0x35df   :  { %v20332_v48 = vsub.f32 %v11538_v20, %v20238_v1  ;;  %16558 = vmatmul.mubr.msk.f32.vlgmr.msra.gmra.mrb[24].mxu1 %vm8953_vm15, %v20322_v45 }
0x35e0   :  { %v20337_v49 = vsub.f32 %v11537_v47, %v20243_v44  ;;  %17646 = vmatprep.subr.bf16.mxu0 %v17645_v23  ;;  %17656 = vmatpush3.bf16.msra.mxu1 %v17653_v35 }
0x35e1   :  { %17648 = vmatpush3.bf16.msra.mxu0 %v17645_v23  ;;  %17658 = vmatprep.subr.bf16.mxu1 %v17657_v52 }
0x35e2   :  { %16560 = vmatprep.mubr.msk.f32.mxu1 %vm8953_vm15, %v20337_v49  ;;  %v17649_v50 = vpack.c.bf16 %v20332_v48, %v20337_v49 }
0x35e3   :  { %16561 = vmatmul.mubr.msk.f32.gmra.mrb[26].mxu1 %vm8953_vm15, %v20332_v48 }
0x35e4   :  { %17650 = vmatprep.subr.bf16.mxu0 %v17649_v50  ;;  %17660 = vmatpush3.bf16.msra.mxu1 %v17657_v52 }
0x35e5   :  { %17652 = vmatpush3.bf16.msra.mxu0 %v17649_v50  ;;  %16585 = vmatprep.subr.mxu1 %v11746_v53 }
0x35e8   :  { %16572 = vmatmul.mubr.msk.f32.vlgmr.msra.gmra.mrb[232].mxu0 %vm55_vm0, %v18201_v27  ;;  %16586 = vmatpush3.msra.mxu1 %v11746_v53 }
0x35e9   :  { %16574 = vmatprep.mubr.msk.f32.mxu0 %vm55_vm0, %v18213_v40  ;;  %17670 = vmatprep.subr.bf16.mxu1 %v17669_v59 }
0x35ec   :  { %16575 = vmatmul.mubr.msk.f32.gmra.mrb[234].mxu0 %vm55_vm0, %v18207_v38 }
0x35ed   :  { %16601 = vmatprep.mubr.msk.f32.mxu0 %vm55_vm0, %v18203_v29 }
0x36bb   :  { %v16573_v42 = vpop.f32.mrb[232].mxu0 }
0x36bc   :  { %v11735_v60 = vmul.f32 2.0, %v16573_v42  ;;  %v11715_v63 = vpop.f32.mrb[233].mxu0  ;;  %v12341_v42 = vld [vmem:[%s20719_s6 + $0x2e0] sm:$0xff] }
0x36bd   :  { %v11734_v0 = vmul.f32 2.0, %v11715_v63 }
0x36be   :  { %v20369_v1 = vsub.f32 %v11735_v60, %v20275_v62  ;;  %v12140_v62 = vld [vmem:[%s20719_s6 + $0x2a8] sm:$0xff] }
0x36bf   :  { %v20372_v44 = vsub.f32 %v11734_v0, %v20278_v14  ;;  %v16576_v46 = vpop.f32.mrb[234].mxu0  ;;  %v12141_v14 = vld [vmem:[%s20719_s6 + $0x2b0] sm:$0xff]  ;;  %v12342_v60 = vld [vmem:[%s20719_s6 + $0x2e8] sm:$0xff] }
0x36c0   :  { %v11737_v54 = vmul.f32 2.0, %v16576_v46  ;;  %v11725_v55 = vpop.f32.mrb[235].mxu0  ;;  %v17685_v15 = vpack.c.bf16 %v12141_v14, %v12140_v62  ;;  %v17705_v63 = vpack.c.bf16 %v12342_v60, %v12341_v42  ;;  %v12343_v0 = vld [vmem:[%s20719_s6 + $0x2f0] sm:$0xff] }
0x36c1   :  { %v11736_v3 = vmul.f32 2.0, %v11725_v55  ;;  %16587 = vmatprep.mubr.msk.f32.mxu1 %vm8953_vm15, %v20372_v44  ;;  %v17661_v6 = vpack.c.bf16 %v20369_v1, %v20372_v44 }
0x36c2   :  { %v20379_v7 = vsub.f32 %v11737_v54, %v20285_v28  ;;  %16588 = vmatmul.mubr.msk.f32.vlgmr.msra.gmra.mrb[24].mxu1 %vm8953_vm15, %v20369_v1 }
0x36c3   :  { %v20384_v8 = vsub.f32 %v11736_v3, %v20290_v2  ;;  %17662 = vmatprep.subr.bf16.mxu0 %v17661_v6  ;;  %17672 = vmatpush3.bf16.msra.mxu1 %v17669_v59 }
0x36c4   :  { %17664 = vmatpush3.bf16.msra.mxu0 %v17661_v6  ;;  %17674 = vmatprep.subr.bf16.mxu1 %v17673_v56 }
0x36c5   :  { %16590 = vmatprep.mubr.msk.f32.mxu1 %vm8953_vm15, %v20384_v8  ;;  %v17665_v11 = vpack.c.bf16 %v20379_v7, %v20384_v8 }
0x36c6   :  { %16591 = vmatmul.mubr.msk.f32.gmra.mrb[26].mxu1 %vm8953_vm15, %v20379_v7 }
0x36c7   :  { %17666 = vmatprep.subr.bf16.mxu0 %v17665_v11  ;;  %17676 = vmatpush3.bf16.msra.mxu1 %v17673_v56 }
0x36c8   :  { %17668 = vmatpush3.bf16.msra.mxu0 %v17665_v11  ;;  %16615 = vmatprep.subr.mxu1 %v11945_v57 }
0x36cb   :  { %16602 = vmatmul.mubr.msk.f32.vlgmr.msra.gmra.mrb[236].mxu0 %vm55_vm0, %v18201_v27  ;;  %16616 = vmatpush3.msra.mxu1 %v11945_v57 }
0x36cc   :  { %16604 = vmatprep.mubr.msk.f32.mxu0 %vm55_vm0, %v18213_v40  ;;  %17686 = vmatprep.subr.bf16.mxu1 %v17685_v15 }
0x36cf   :  { %16605 = vmatmul.mubr.msk.f32.gmra.mrb[238].mxu0 %vm55_vm0, %v18207_v38 }
0x36d0   :  { %16631 = vmatprep.mubr.msk.f32.mxu0 %vm55_vm0, %v18203_v29 }
0x379e   :  { %v16603_v16 = vpop.f32.mrb[236].mxu0 }
0x379f   :  { %v11934_v17 = vmul.f32 2.0, %v16603_v16  ;;  %v11914_v22 = vpop.f32.mrb[237].mxu0  ;;  %v12540_v16 = vld [vmem:[%s20719_s6 + $0x308] sm:$0xff] }
0x37a0   :  { %v11933_v25 = vmul.f32 2.0, %v11914_v22 }
0x37a1   :  { %v20416_v28 = vsub.f32 %v11934_v17, %v20322_v45  ;;  %v12339_v45 = vld [vmem:[%s20719_s6 + $0x2d0] sm:$0xff] }
0x37a2   :  { %v20419_v2 = vsub.f32 %v11933_v25, %v20325_v61  ;;  %v16606_v18 = vpop.f32.mrb[238].mxu0  ;;  %v12340_v61 = vld [vmem:[%s20719_s6 + $0x2d8] sm:$0xff]  ;;  %v12541_v17 = vld [vmem:[%s20719_s6 + $0x310] sm:$0xff] }
0x37a3   :  { %v11936_v19 = vmul.f32 2.0, %v16606_v18  ;;  %v11924_v26 = vpop.f32.mrb[239].mxu0  ;;  %v17701_v5 = vpack.c.bf16 %v12340_v61, %v12339_v45  ;;  %v17721_v22 = vpack.c.bf16 %v12541_v17, %v12540_v16  ;;  %v12542_v25 = vld [vmem:[%s20719_s6 + $0x318] sm:$0xff] }
0x37a4   :  { %v11935_v30 = vmul.f32 2.0, %v11924_v26  ;;  %16617 = vmatprep.mubr.msk.f32.mxu1 %vm8953_vm15, %v20419_v2  ;;  %v17677_v33 = vpack.c.bf16 %v20416_v28, %v20419_v2 }
0x37a5   :  { %v20426_v9 = vsub.f32 %v11936_v19, %v20332_v48  ;;  %16618 = vmatmul.mubr.msk.f32.vlgmr.msra.gmra.mrb[24].mxu1 %vm8953_vm15, %v20416_v28 }
0x37a6   :  { %v20431_v34 = vsub.f32 %v11935_v30, %v20337_v49  ;;  %17678 = vmatprep.subr.bf16.mxu0 %v17677_v33  ;;  %17688 = vmatpush3.bf16.msra.mxu1 %v17685_v15 }
0x37a7   :  { %17680 = vmatpush3.bf16.msra.mxu0 %v17677_v33  ;;  %17690 = vmatprep.subr.bf16.mxu1 %v17689_v39 }
0x37a8   :  { %16620 = vmatprep.mubr.msk.f32.mxu1 %vm8953_vm15, %v20431_v34  ;;  %v17681_v35 = vpack.c.bf16 %v20426_v9, %v20431_v34 }
0x37a9   :  { %16621 = vmatmul.mubr.msk.f32.gmra.mrb[26].mxu1 %vm8953_vm15, %v20426_v9 }
0x37aa   :  { %17682 = vmatprep.subr.bf16.mxu0 %v17681_v35  ;;  %17692 = vmatpush3.bf16.msra.mxu1 %v17689_v39 }
0x37ab   :  { %17684 = vmatpush3.bf16.msra.mxu0 %v17681_v35  ;;  %16645 = vmatprep.subr.mxu1 %v12144_v43 }
0x37ae   :  { %16632 = vmatmul.mubr.msk.f32.vlgmr.msra.gmra.mrb[240].mxu0 %vm55_vm0, %v18201_v27  ;;  %16646 = vmatpush3.msra.mxu1 %v12144_v43 }
0x37af   :  { %16634 = vmatprep.mubr.msk.f32.mxu0 %vm55_vm0, %v18213_v40  ;;  %17702 = vmatprep.subr.bf16.mxu1 %v17701_v5 }
0x37b2   :  { %16635 = vmatmul.mubr.msk.f32.gmra.mrb[242].mxu0 %vm55_vm0, %v18207_v38 }
0x37b3   :  { %16661 = vmatprep.mubr.msk.f32.mxu0 %vm55_vm0, %v18203_v29 }
0x3881   :  { %v16633_v20 = vpop.f32.mrb[240].mxu0 }
0x3882   :  { %v12133_v21 = vmul.f32 2.0, %v16633_v20  ;;  %v12113_v47 = vpop.f32.mrb[241].mxu0  ;;  %v12739_v20 = vld [vmem:[%s20719_s6 + $0x330] sm:$0xff] }
0x3883   :  { %v12132_v23 = vmul.f32 2.0, %v12113_v47 }
0x3884   :  { %v20463_v48 = vsub.f32 %v12133_v21, %v20369_v1  ;;  %v12538_v1 = vld [vmem:[%s20719_s6 + $0x2f8] sm:$0xff] }
0x3885   :  { %v20466_v49 = vsub.f32 %v12132_v23, %v20372_v44  ;;  %v16636_v50 = vpop.f32.mrb[242].mxu0  ;;  %v12539_v44 = vld [vmem:[%s20719_s6 + $0x300] sm:$0xff]  ;;  %v12740_v21 = vld [vmem:[%s20719_s6 + $0x338] sm:$0xff] }
0x3886   :  { %v12135_v51 = vmul.f32 2.0, %v16636_v50  ;;  %v12123_v36 = vpop.f32.mrb[243].mxu0  ;;  %v17717_v46 = vpack.c.bf16 %v12539_v44, %v12538_v1  ;;  %v17737_v47 = vpack.c.bf16 %v12740_v21, %v12739_v20  ;;  %v12741_v23 = vld [vmem:[%s20719_s6 + $0x340] sm:$0xff]  ;;  %v13282_v21 = vld [vmem:[%s20720_s8 + $0x10] sm:$0xff] }
0x3887   :  { %v12134_v52 = vmul.f32 2.0, %v12123_v36  ;;  %16647 = vmatprep.mubr.msk.f32.mxu1 %vm8953_vm15, %v20466_v49  ;;  %v17693_v53 = vpack.c.bf16 %v20463_v48, %v20466_v49 }
0x3888   :  { %v20473_v41 = vsub.f32 %v12135_v51, %v20379_v7  ;;  %16648 = vmatmul.mubr.msk.f32.vlgmr.msra.gmra.mrb[24].mxu1 %vm8953_vm15, %v20463_v48 }
0x3889   :  { %v20478_v58 = vsub.f32 %v12134_v52, %v20384_v8  ;;  %17694 = vmatprep.subr.bf16.mxu0 %v17693_v53  ;;  %17704 = vmatpush3.bf16.msra.mxu1 %v17701_v5 }
0x388a   :  { %17696 = vmatpush3.bf16.msra.mxu0 %v17693_v53  ;;  %17706 = vmatprep.subr.bf16.mxu1 %v17705_v63 }
0x388b   :  { %16650 = vmatprep.mubr.msk.f32.mxu1 %vm8953_vm15, %v20478_v58  ;;  %v17697_v59 = vpack.c.bf16 %v20473_v41, %v20478_v58 }
0x388c   :  { %16651 = vmatmul.mubr.msk.f32.gmra.mrb[26].mxu1 %vm8953_vm15, %v20473_v41 }
0x388d   :  { %17698 = vmatprep.subr.bf16.mxu0 %v17697_v59  ;;  %17708 = vmatpush3.bf16.msra.mxu1 %v17705_v63 }
0x388e   :  { %17700 = vmatpush3.bf16.msra.mxu0 %v17697_v59  ;;  %16675 = vmatprep.subr.mxu1 %v12343_v0 }
0x3891   :  { %16662 = vmatmul.mubr.msk.f32.vlgmr.msra.gmra.mrb[244].mxu0 %vm55_vm0, %v18201_v27  ;;  %16676 = vmatpush3.msra.mxu1 %v12343_v0 }
0x3892   :  { %16664 = vmatprep.mubr.msk.f32.mxu0 %vm55_vm0, %v18213_v40  ;;  %17718 = vmatprep.subr.bf16.mxu1 %v17717_v46 }
0x3895   :  { %16665 = vmatmul.mubr.msk.f32.gmra.mrb[246].mxu0 %vm55_vm0, %v18207_v38 }
0x3896   :  { %16691 = vmatprep.mubr.msk.f32.mxu0 %vm55_vm0, %v18203_v29 }
0x3964   :  { %v16663_v54 = vpop.f32.mrb[244].mxu0 }
0x3965   :  { %v12332_v55 = vmul.f32 2.0, %v16663_v54  ;;  %v12312_v3 = vpop.f32.mrb[245].mxu0  ;;  %v12938_v54 = vld [vmem:[%s20719_s6 + $0x358] sm:$0xff] }
0x3966   :  { %v12331_v6 = vmul.f32 2.0, %v12312_v3 }
0x3967   :  { %v20510_v7 = vsub.f32 %v12332_v55, %v20416_v28  ;;  %v12737_v28 = vld [vmem:[%s20719_s6 + $0x320] sm:$0xff] }
0x3968   :  { %v20513_v8 = vsub.f32 %v12331_v6, %v20419_v2  ;;  %v16666_v11 = vpop.f32.mrb[246].mxu0  ;;  %v12738_v2 = vld [vmem:[%s20719_s6 + $0x328] sm:$0xff]  ;;  %v12939_v55 = vld [vmem:[%s20719_s6 + $0x360] sm:$0xff] }
0x3969   :  { %v12334_v12 = vmul.f32 2.0, %v16666_v11  ;;  %v12322_v13 = vpop.f32.mrb[247].mxu0  ;;  %v17733_v18 = vpack.c.bf16 %v12738_v2, %v12737_v28  ;;  %v17753_v3 = vpack.c.bf16 %v12939_v55, %v12938_v54  ;;  %v12940_v6 = vld [vmem:[%s20719_s6 + $0x368] sm:$0xff] }
0x396a   :  { %v12333_v56 = vmul.f32 2.0, %v12322_v13  ;;  %16677 = vmatprep.mubr.msk.f32.mxu1 %vm8953_vm15, %v20513_v8  ;;  %v17709_v57 = vpack.c.bf16 %v20510_v7, %v20513_v8 }
0x396b   :  { %v20520_v62 = vsub.f32 %v12334_v12, %v20426_v9  ;;  %16678 = vmatmul.mubr.msk.f32.vlgmr.msra.gmra.mrb[24].mxu1 %vm8953_vm15, %v20510_v7 }
0x396c   :  { %v20525_v14 = vsub.f32 %v12333_v56, %v20431_v34  ;;  %17710 = vmatprep.subr.bf16.mxu0 %v17709_v57  ;;  %17720 = vmatpush3.bf16.msra.mxu1 %v17717_v46 }
0x396d   :  { %17712 = vmatpush3.bf16.msra.mxu0 %v17709_v57  ;;  %17722 = vmatprep.subr.bf16.mxu1 %v17721_v22 }
0x396e   :  { %16680 = vmatprep.mubr.msk.f32.mxu1 %vm8953_vm15, %v20525_v14  ;;  %v17713_v15 = vpack.c.bf16 %v20520_v62, %v20525_v14 }
0x396f   :  { %16681 = vmatmul.mubr.msk.f32.gmra.mrb[26].mxu1 %vm8953_vm15, %v20520_v62 }
0x3970   :  { %17714 = vmatprep.subr.bf16.mxu0 %v17713_v15  ;;  %17724 = vmatpush3.bf16.msra.mxu1 %v17721_v22 }
0x3971   :  { %17716 = vmatpush3.bf16.msra.mxu0 %v17713_v15  ;;  %16705 = vmatprep.subr.mxu1 %v12542_v25 }
0x3974   :  { %16692 = vmatmul.mubr.msk.f32.vlgmr.msra.gmra.mrb[248].mxu0 %vm55_vm0, %v18201_v27  ;;  %16706 = vmatpush3.msra.mxu1 %v12542_v25 }
0x3975   :  { %16694 = vmatprep.mubr.msk.f32.mxu0 %vm55_vm0, %v18213_v40  ;;  %17734 = vmatprep.subr.bf16.mxu1 %v17733_v18 }
0x3978   :  { %16695 = vmatmul.mubr.msk.f32.gmra.mrb[250].mxu0 %vm55_vm0, %v18207_v38 }
0x3979   :  { %16721 = vmatprep.mubr.msk.f32.mxu0 %vm55_vm0, %v18203_v29 }
0x3a47   :  { %v16693_v19 = vpop.f32.mrb[248].mxu0 }
0x3a48   :  { %v12531_v26 = vmul.f32 2.0, %v16693_v19  ;;  %v12511_v30 = vpop.f32.mrb[249].mxu0  ;;  %v13138_v19 = vld [vmem:[%s20719_s6 + $0x388] sm:$0xff] }
0x3a49   :  { %v12530_v33 = vmul.f32 2.0, %v12511_v30 }
0x3a4a   :  { %v20557_v9 = vsub.f32 %v12531_v26, %v20463_v48  ;;  %v12936_v48 = vld [vmem:[%s20719_s6 + $0x348] sm:$0xff] }
0x3a4b   :  { %v20560_v34 = vsub.f32 %v12530_v33, %v20466_v49  ;;  %v16696_v35 = vpop.f32.mrb[250].mxu0  ;;  %v12937_v49 = vld [vmem:[%s20719_s6 + $0x350] sm:$0xff] }
0x3a4c   :  { %v12533_v37 = vmul.f32 2.0, %v16696_v35  ;;  %v12521_v24 = vpop.f32.mrb[251].mxu0  ;;  %v17749_v50 = vpack.c.bf16 %v12937_v49, %v12936_v48  ;;  %v13977_v49 = vld [vmem:[%s20721_s7] ss:$0 sm:$0xff] }
0x3a4d   :  { %v12532_v39 = vmul.f32 2.0, %v12521_v24  ;;  %16707 = vmatprep.mubr.msk.f32.mxu1 %vm8953_vm15, %v20560_v34  ;;  %v17725_v43 = vpack.c.bf16 %v20557_v9, %v20560_v34 }
0x3a4e   :  { %v20567_v45 = vsub.f32 %v12533_v37, %v20473_v41  ;;  %16708 = vmatmul.mubr.msk.f32.vlgmr.msra.gmra.mrb[24].mxu1 %vm8953_vm15, %v20557_v9 }
0x3a4f   :  { %v20572_v61 = vsub.f32 %v12532_v39, %v20478_v58  ;;  %17726 = vmatprep.subr.bf16.mxu0 %v17725_v43  ;;  %17736 = vmatpush3.bf16.msra.mxu1 %v17733_v18  ;;  %v13137_v18 = vld [vmem:[%s20719_s6 + $0x380] sm:$0xff] }
0x3a50   :  { %17728 = vmatpush3.bf16.msra.mxu0 %v17725_v43  ;;  %17738 = vmatprep.subr.bf16.mxu1 %v17737_v47  ;;  %v17769_v26 = vpack.c.bf16 %v13138_v19, %v13137_v18 }
0x3a51   :  { %16710 = vmatprep.mubr.msk.f32.mxu1 %vm8953_vm15, %v20572_v61  ;;  %v17729_v5 = vpack.c.bf16 %v20567_v45, %v20572_v61 }
0x3a52   :  { %16711 = vmatmul.mubr.msk.f32.gmra.mrb[26].mxu1 %vm8953_vm15, %v20567_v45 }
0x3a53   :  { %17730 = vmatprep.subr.bf16.mxu0 %v17729_v5  ;;  %17740 = vmatpush3.bf16.msra.mxu1 %v17737_v47  ;;  %v13283_v47 = vld [vmem:[%s20720_s8 + $0x18] sm:$0x7] }
0x3a54   :  { %17732 = vmatpush3.bf16.msra.mxu0 %v17729_v5  ;;  %16735 = vmatprep.subr.mxu1 %v12741_v23  ;;  %v13281_v5 = vld [vmem:[%s20720_s8 + $0x8] sm:$0xff] }
0x3a57   :  { %16722 = vmatmul.mubr.msk.f32.vlgmr.msra.gmra.mrb[252].mxu0 %vm55_vm0, %v18201_v27  ;;  %16736 = vmatpush3.msra.mxu1 %v12741_v23  ;;  %v17777_v23 = vpack.c.bf16 %v13283_v47, %v13282_v21 }
0x3a58   :  { %16724 = vmatprep.mubr.msk.f32.mxu0 %vm55_vm0, %v18213_v40  ;;  %17750 = vmatprep.subr.bf16.mxu1 %v17749_v50 }
0x3a5b   :  { %16725 = vmatmul.mubr.msk.f32.gmra.mrb[254].mxu0 %vm55_vm0, %v18207_v38 }
0x3a5c   :  { %16751 = vmatprep.mubr.msk.f32.mxu0 %vm55_vm0, %v18203_v29 }
0x3b2a   :  { %v16723_v51 = vpop.f32.mrb[252].mxu0 }
0x3b2b   :  { %v12730_v36 = vmul.f32 2.0, %v16723_v51  ;;  %v12710_v52 = vpop.f32.mrb[253].mxu0 }
0x3b2c   :  { %v12729_v53 = vmul.f32 2.0, %v12710_v52 }
0x3b2d   :  { %v20604_v41 = vsub.f32 %v12730_v36, %v20510_v7  ;;  %v13136_v7 = vld [vmem:[%s20719_s6 + $0x378] sm:$0xff] }
0x3b2e   :  { %v20607_v58 = vsub.f32 %v12729_v53, %v20513_v8  ;;  %v16726_v59 = vpop.f32.mrb[254].mxu0 }
0x3b2f   :  { %v12732_v42 = vmul.f32 2.0, %v16726_v59  ;;  %v12720_v60 = vpop.f32.mrb[255].mxu0 }
0x3b30   :  { %v12731_v63 = vmul.f32 2.0, %v12720_v60  ;;  %16737 = vmatprep.mubr.msk.f32.mxu1 %vm8953_vm15, %v20607_v58  ;;  %v17741_v0 = vpack.c.bf16 %v20604_v41, %v20607_v58 }
0x3b31   :  { %v20614_v1 = vsub.f32 %v12732_v42, %v20520_v62  ;;  %16738 = vmatmul.mubr.msk.f32.vlgmr.msra.gmra.mrb[24].mxu1 %vm8953_vm15, %v20604_v41 }
0x3b32   :  { %v20619_v44 = vsub.f32 %v12731_v63, %v20525_v14  ;;  %17742 = vmatprep.subr.bf16.mxu0 %v17741_v0  ;;  %17752 = vmatpush3.bf16.msra.mxu1 %v17749_v50 }
0x3b33   :  { %17744 = vmatpush3.bf16.msra.mxu0 %v17741_v0  ;;  %17754 = vmatprep.subr.bf16.mxu1 %v17753_v3 }
0x3b34   :  { %16740 = vmatprep.mubr.msk.f32.mxu1 %vm8953_vm15, %v20619_v44  ;;  %v17745_v46 = vpack.c.bf16 %v20614_v1, %v20619_v44 }
0x3b35   :  { %16741 = vmatmul.mubr.msk.f32.gmra.mrb[26].mxu1 %vm8953_vm15, %v20614_v1 }
0x3b36   :  { %17746 = vmatprep.subr.bf16.mxu0 %v17745_v46  ;;  %17756 = vmatpush3.bf16.msra.mxu1 %v17753_v3 }
0x3b37   :  { %17748 = vmatpush3.bf16.msra.mxu0 %v17745_v46  ;;  %16765 = vmatprep.subr.mxu1 %v12940_v6 }
0x3b3a   :  { %16752 = vmatmul.mubr.msk.f32.vlgmr.msra.gmra.mrb[0].mxu0 %vm55_vm0, %v18201_v27  ;;  %16766 = vmatpush3.msra.mxu1 %v12940_v6 }
0x3b3b   :  { %16754 = vmatprep.mubr.msk.f32.mxu0 %vm55_vm0, %v18213_v40 }
0x3b3e   :  { %16755 = vmatmul.mubr.msk.f32.gmra.mrb[2].mxu0 %vm55_vm0, %v18207_v38 }
0x3b3f   :  { %16781 = vmatprep.mubr.msk.f32.mxu0 %vm55_vm0, %v18203_v29  ;;  %v13135_v29 = vld [vmem:[%s20719_s6 + $0x370] sm:$0xff] }
0x3b40   :  { %v17765_v8 = vpack.c.bf16 %v13136_v7, %v13135_v29 }
0x3b42   :  { %17766 = vmatprep.subr.bf16.mxu1 %v17765_v8 }
0x3c0d   :  { %v16753_v11 = vpop.f32.mrb[0].mxu0 }
0x3c0e   :  { %v12929_v12 = vmul.f32 2.0, %v16753_v11  ;;  %v12909_v13 = vpop.f32.mrb[1].mxu0 }
0x3c0f   :  { %v12928_v56 = vmul.f32 2.0, %v12909_v13 }
0x3c10   :  { %v12933_v57 = vsub.f32 %v12929_v12, %v20557_v9 }
0x3c11   :  { %v12932_v62 = vsub.f32 %v12928_v56, %v20560_v34  ;;  %v16756_v14 = vpop.f32.mrb[2].mxu0 }
0x3c12   :  { %v12931_v15 = vmul.f32 2.0, %v16756_v14  ;;  %v12919_v16 = vpop.f32.mrb[3].mxu0 }
0x3c13   :  { %v12930_v17 = vmul.f32 2.0, %v12919_v16  ;;  %16767 = vmatprep.mubr.msk.f32.mxu1 %vm8953_vm15, %v12932_v62  ;;  %v17757_v22 = vpack.c.bf16 %v12933_v57, %v12932_v62 }
0x3c14   :  { %v12935_v25 = vsub.f32 %v12931_v15, %v20567_v45  ;;  %16768 = vmatmul.mubr.msk.f32.vlgmr.msra.gmra.mrb[24].mxu1 %vm8953_vm15, %v12933_v57 }
0x3c15   :  { %v12934_v28 = vsub.f32 %v12930_v17, %v20572_v61  ;;  %17758 = vmatprep.subr.bf16.mxu0 %v17757_v22  ;;  %17768 = vmatpush3.bf16.msra.mxu1 %v17765_v8  ;;  %v13280_v61 = vld [vmem:[%s20720_s8] sm:$0xff] }
0x3c16   :  { %17760 = vmatpush3.bf16.msra.mxu0 %v17757_v22  ;;  %17770 = vmatprep.subr.bf16.mxu1 %v17769_v26  ;;  %v17773_v20 = vpack.c.bf16 %v13281_v5, %v13280_v61 }
0x3c17   :  { %16770 = vmatprep.mubr.msk.f32.mxu1 %vm8953_vm15, %v12934_v28  ;;  %v17761_v2 = vpack.c.bf16 %v12935_v25, %v12934_v28 }
0x3c18   :  { %16771 = vmatmul.mubr.msk.f32.gmra.mrb[26].mxu1 %vm8953_vm15, %v12935_v25 }
0x3c19   :  { %17762 = vmatprep.subr.bf16.mxu0 %v17761_v2  ;;  %17772 = vmatpush3.bf16.msra.mxu1 %v17769_v26 }
0x3c1a   :  { %17764 = vmatpush3.bf16.msra.mxu0 %v17761_v2 }
0x3c1b   :  { %17774 = vmatprep.subr.bf16.mxu0 %v17773_v20 }
0x3c1d   :  { %16782 = vmatmul.mubr.msk.f32.vlgmr.msra.gmra.mrb[4].mxu0 %vm55_vm0, %v18201_v27  ;;  %v13139_v27 = vld [vmem:[%s20719_s6 + $0x390] sm:$0xff] }
0x3c1e   :  { %16784 = vmatprep.mubr.msk.f32.mxu0 %vm55_vm0, %v18213_v40  ;;  %16795 = vmatprep.subr.mxu1 %v13139_v27 }
0x3c1f   :  { %16796 = vmatpush3.msra.mxu1 %v13139_v27  ;;  %17776 = vmatpush3.bf16.msra.mxu0 %v17773_v20 }
0x3c21   :  { %16785 = vmatmul.mubr.msk.f32.gmra.mrb[6].mxu0 %vm55_vm0, %v18207_v38  ;;  %vm13297_vm0 = vcmask 1042432  }
0x3c22   :  { %vm17778_vm2 = vmpackc.low %vm13297_vm0, %vm18104_vm10 }
0x3c23   :  { %17779 = vmatprep.subr.msk.bf16.mxu0 %vm17778_vm2, %v17777_v23 }
0x3c24   :  { %17782 = vmatpush3.bf16.msk.msra.mxu0 %vm17778_vm2, %v17777_v23 }
0x3cf0   :  { %v16783_v40 = vpop.f32.mrb[4].mxu0 }
0x3cf1   :  { %v13128_v30 = vmul.f32 2.0, %v16783_v40  ;;  %v13108_v38 = vpop.f32.mrb[5].mxu0 }
0x3cf2   :  { %v13127_v33 = vmul.f32 2.0, %v13108_v38 }
0x3cf3   :  { %v13132_v35 = vsub.f32 %v13128_v30, %v20604_v41 }
0x3cf4   :  { %v13131_v9 = vsub.f32 %v13127_v33, %v20607_v58  ;;  %v16786_v34 = vpop.f32.mrb[6].mxu0 }
0x3cf5   :  { %v13130_v37 = vmul.f32 2.0, %v16786_v34  ;;  %v13118_v24 = vpop.f32.mrb[7].mxu0 }
0x3cf6   :  { %v13129_v39 = vmul.f32 2.0, %v13118_v24  ;;  %16797 = vmatprep.mubr.msk.f32.mxu1 %vm8953_vm15, %v13131_v9 }
0x3cf7   :  { %16798 = vmatmul.mubr.msk.f32.vlgmr.msra.gmra.mrb[24].mxu1 %vm8953_vm15, %v13132_v35  ;;  %v13134_v45 = vsub.f32 %v13130_v37, %v20614_v1 }
0x3cf8   :  { %v13133_v43 = vsub.f32 %v13129_v39, %v20619_v44 }
0x3cfa   :  { %16800 = vmatprep.mubr.msk.f32.mxu1 %vm8953_vm15, %v13133_v43 }
0x3cfb   :  { %16801 = vmatmul.mubr.msk.f32.gmra.mrb[26].mxu1 %vm8953_vm15, %v13134_v45 }
0x3dca   :  { %v16799_v48 = vpop.f32.mrb[24].mxu1 }
0x3dcb   :  { %v17783_v50 = vadd.f32 %v16799_v48, %v19796_v4  ;;  %v13218_v51 = vpop.f32.mrb[25].mxu1 }
0x3dcc   :  { %v17784_v36 = vadd.f32 %v13218_v51, %v19798_v31 }
0x3dcd   :  { %v13249_v52 = vadd.f32 %v17783_v50, %v13977_v49 }
0x3dce   :  { %v13248_v53 = vadd.f32 %v17784_v36, %v13977_v49  ;;  %v16802_v41 = vpop.f32.mrb[26].mxu1 }
0x3dcf   :  { %v13979_v58 = vmul.f32 -1.442695, %v13249_v52  ;;  %v17785_v59 = vadd.f32 %v16802_v41, %v19800_v32  ;;  %v13228_v42 = vpop.f32.mrb[27].mxu1 }
0x3dd0   :  { %v13978_v60 = vmul.f32 -1.442695, %v13248_v53  ;;  %v17786_v63 = vadd.f32 %v13228_v42, %v19802_v10 }
0x3dd1   :  { %18059 = vpow2.f32 %v13979_v58  ;;  %v13251_v0 = vadd.f32 %v17785_v59, %v13977_v49 }
0x3dd2   :  { %18061 = vpow2.f32 %v13978_v60  ;;  %v13250_v1 = vadd.f32 %v17786_v63, %v13977_v49 }
0x3dd3   :  { %v13981_v44 = vmul.f32 -1.442695, %v13251_v0 }
0x3dd4   :  { %v13980_v46 = vmul.f32 -1.442695, %v13250_v1 }
0x3dd5   :  { %18063 = vpow2.f32 %v13981_v44 }
0x3dd6   :  { %18065 = vpow2.f32 %v13980_v46 }
0x3ddb   :  { %v18060_v4 = vpop.eup %18059 }
0x3ddc   :  { %v18062_v31 = vpop.eup %18061  ;;  %v13265_v54 = vadd.f32 1.0, %v18060_v4 }
0x3ddd   :  { %v13264_v55 = vadd.f32 1.0, %v18062_v31 }
0x3dde   :  { %18067 = vrcp.f32 %v13265_v54 }
0x3ddf   :  { %v18064_v3 = vpop.eup %18063  ;;  %18069 = vrcp.f32 %v13264_v55 }
0x3de0   :  { %v18066_v32 = vpop.eup %18065  ;;  %v13267_v6 = vadd.f32 1.0, %v18064_v3 }
0x3de1   :  { %v13266_v29 = vadd.f32 1.0, %v18066_v32 }
0x3de2   :  { %18071 = vrcp.f32 %v13267_v6 }
0x3de3   :  { %18073 = vrcp.f32 %v13266_v29 }
0x3de8   :  { %v18068_v10 = vpop.eup %18067 }
0x3de9   :  { %v18070_v7 = vpop.eup %18069  ;;  %v13277_v11 = vmul.f32 %v18068_v10, %v13249_v52 }
0x3dea   :  { %v13276_v8 = vmul.f32 %v18070_v7, %v13248_v53 }
0x3dec   :  { %v18072_v12 = vpop.eup %18071  ;;  %16811 = vmatprep.mubr.msk.f32.mxu0 %vm13284_vm3, %v13276_v8 }
0x3ded   :  { %v18074_v13 = vpop.eup %18073  ;;  %16812 = vmatmul.mubr.msk.f32.vlgmr.msra.gmra.mrb[8].mxu0 %vm13284_vm3, %v13277_v11  ;;  %v13279_v57 = vmul.f32 %v18072_v12, %v13251_v0 }
0x3dee   :  { %v13278_v56 = vmul.f32 %v18074_v13, %v13250_v1 }
0x3df0   :  { %16814 = vmatprep.mubr.msk.f32.mxu0 %vm13284_vm3, %v13278_v56 }
0x3df1   :  { %16815 = vmatmul.mubr.msk.f32.gmra.mrb[10].mxu0 %vm13284_vm3, %v13279_v57 }
0x3ec0   :  { %v16813_v62 = vpop.f32.mrb[8].mxu0 }
0x3ec1   :  { %v13988_v14 = vmul.f32 -1.442695, %v16813_v62  ;;  %v13367_v15 = vpop.f32.mrb[9].mxu0 }
0x3ec2   :  { %v13987_v16 = vmul.f32 -1.442695, %v13367_v15 }
0x3ec3   :  { %18075 = vpow2.f32 %v13988_v14 }
0x3ec4   :  { %18077 = vpow2.f32 %v13987_v16  ;;  %v16816_v17 = vpop.f32.mrb[10].mxu0 }
0x3ec5   :  { %v13990_v22 = vmul.f32 -1.442695, %v16816_v17  ;;  %v13377_v25 = vpop.f32.mrb[11].mxu0 }
0x3ec6   :  { %v13989_v28 = vmul.f32 -1.442695, %v13377_v25 }
0x3ec7   :  { %18079 = vpow2.f32 %v13990_v22 }
0x3ec8   :  { %18081 = vpow2.f32 %v13989_v28 }
0x3ecd   :  { %v18076_v2 = vpop.eup %18075 }
0x3ece   :  { %v18078_v18 = vpop.eup %18077  ;;  %v13399_v19 = vadd.f32 1.0, %v18076_v2 }
0x3ecf   :  { %v13398_v26 = vadd.f32 1.0, %v18078_v18 }
0x3ed0   :  { %18083 = vrcp.f32 %v13399_v19 }
0x3ed1   :  { %v18080_v27 = vpop.eup %18079  ;;  %18085 = vrcp.f32 %v13398_v26 }
0x3ed2   :  { %v18082_v40 = vpop.eup %18081  ;;  %v13401_v30 = vadd.f32 1.0, %v18080_v27 }
0x3ed3   :  { %v13400_v38 = vadd.f32 1.0, %v18082_v40 }
0x3ed4   :  { %18087 = vrcp.f32 %v13401_v30 }
0x3ed5   :  { %18089 = vrcp.f32 %v13400_v38 }
0x3eda   :  { %v18084_v33 = vpop.eup %18083 }
0x3edb   :  { %v18086_v9 = vpop.eup %18085  ;;  %13412 = vst.msk [vmem:[%s20722_s9 + $0x8] sm:$0xff] %vm13410_vm4, %v18084_v33 }
0x3edc   :  { %13411 = vst.msk [vmem:[%s20722_s9] sm:$0xff] %vm13410_vm4, %v18086_v9 }
0x3ede   :  { %v18088_v34 = vpop.eup %18087 }
0x3edf   :  { %v18090_v35 = vpop.eup %18089  ;;  %13414 = vst.msk [vmem:[%s20722_s9 + $0x18] sm:$0xff] %vm13410_vm4, %v18088_v34 }
0x3ee0   :  { %13413 = vst.msk [vmem:[%s20722_s9 + $0x10] sm:$0xff] %vm13410_vm4, %v18090_v35 }

</bundles_post_ra>
